<compile_context>
chip_gen: v6e
topology: v6e:2x2x1
jax: 0.10.0
libtpu: 0.0.40
codegen_flags: <defaults>
</compile_context>

<pallas_src>
import numpy as np
import jax
import jax.numpy as jnp
from jax.experimental import pallas as pl
from jax.experimental.pallas import tpu as pltpu

LATENT_DIM = 100
N_CLASSES = 1
IMG_SHAPE = (3, 60, 25)
IMG_FLAT = int(np.prod(IMG_SHAPE))          # 4500
LRELU_SLOPE = 0.2
BN_EPS = 0.8

IN_DIM = LATENT_DIM + N_CLASSES             # 101
IN_PAD = 128                                # padded K for first matmul
OUT_PAD = 4608                              # 36 * 128, padded final-layer width
TN = 512                                    # final-layer output tile (lanes)
assert OUT_PAD % TN == 0 and OUT_PAD >= IMG_FLAT


def _leaky_relu(x):
    return jnp.where(x > 0, x, LRELU_SLOPE * x)


def _batchnorm(x, gamma, beta):
    # Training-mode BatchNorm1d, biased variance, eps=0.8 — fused form:
    #   y = x * scale + shift,  scale = gamma * rsqrt(var + eps),  shift = beta - mean*scale
    mean = jnp.mean(x, axis=0, keepdims=True)
    meansq = jnp.mean(x * x, axis=0, keepdims=True)
    var = meansq - mean * mean
    scale = gamma * jax.lax.rsqrt(var + BN_EPS)
    shift = beta - mean * scale
    return x * scale + shift


def _bf16(x):
    return x.astype(jnp.bfloat16)


def generator_kernel(x_ref,
                     w1_ref, b1_ref,
                     w2_ref, b2_ref, g2_ref, be2_ref,
                     w3_ref, b3_ref, g3_ref, be3_ref,
                     w4_ref, b4_ref, g4_ref, be4_ref,
                     w5_ref, b5_ref,
                     out_ref):
    # Layers 1-4 are recomputed every grid step. Their weights stay resident in VMEM
    # (constant index maps => DMA'd once), the recompute is cheap at small B and is
    # hidden under the w5 tile DMA; this keeps the kernel correct when the N-grid is
    # sharded across TensorCores ("parallel" semantics).
    x = x_ref[...]                                                          # (B, 128) f32

    # block 1: Linear(128->128 padded K), no BN
    h = jnp.dot(_bf16(x), w1_ref[...], preferred_element_type=jnp.float32) + b1_ref[...]
    h = _leaky_relu(h)
    # block 2: Linear(128->256) + BN + LeakyReLU
    h = jnp.dot(_bf16(h), w2_ref[...], preferred_element_type=jnp.float32) + b2_ref[...]
    h = _leaky_relu(_batchnorm(h, g2_ref[...], be2_ref[...]))
    # block 3: Linear(256->512) + BN + LeakyReLU
    h = jnp.dot(_bf16(h), w3_ref[...], preferred_element_type=jnp.float32) + b3_ref[...]
    h = _leaky_relu(_batchnorm(h, g3_ref[...], be3_ref[...]))
    # block 4: Linear(512->1024) + BN + LeakyReLU
    h = jnp.dot(_bf16(h), w4_ref[...], preferred_element_type=jnp.float32) + b4_ref[...]
    h = _leaky_relu(_batchnorm(h, g4_ref[...], be4_ref[...]))

    # final layer tile: (B, 1024) @ (1024, TN) + Tanh — w5 streams tile-by-tile.
    o = jnp.dot(_bf16(h), w5_ref[...], preferred_element_type=jnp.float32) + b5_ref[...]
    out_ref[...] = jnp.tanh(o)


def init_params(key):
    """Deterministic synthetic parameters (shapes match the PyTorch module, padded)."""
    keys = jax.random.split(key, 6)
    params = {"label_emb": jax.random.normal(keys[0], (N_CLASSES, N_CLASSES), jnp.float32)}

    def dense(k, din, dout, pad_in=0, pad_out=0):
        w = jax.random.normal(k, (din, dout), jnp.float32) * 0.02
        w = jnp.pad(w, ((0, pad_in), (0, pad_out)))           # zero padding (exact semantics)
        b = jnp.zeros((1, dout + pad_out), jnp.float32)
        return w.astype(jnp.bfloat16), b                      # weights bf16, bias f32

    params["w1"], params["b1"] = dense(keys[1], IN_DIM, 128, pad_in=IN_PAD - IN_DIM)
    params["w2"], params["b2"] = dense(keys[2], 128, 256)
    params["w3"], params["b3"] = dense(keys[3], 256, 512)
    params["w4"], params["b4"] = dense(keys[4], 512, 1024)
    params["w5"], params["b5"] = dense(keys[5], 1024, IMG_FLAT, pad_out=OUT_PAD - IMG_FLAT)
    for i, c in ((2, 256), (3, 512), (4, 1024)):
        params[f"g{i}"] = jnp.ones((1, c), jnp.float32)       # BN gamma (PyTorch default)
        params[f"be{i}"] = jnp.zeros((1, c), jnp.float32)     # BN beta
    return params


def generator_forward(noise, labels, params):
    # Glue in plain JAX: embedding lookup + concat (tiny gather), then fused MLP kernel.
    emb = params["label_emb"][labels]                         # (B, n_classes)
    gen_input = jnp.concatenate([emb, noise], axis=-1)        # (B, 101)
    B = gen_input.shape[0]
    gen_input = jnp.pad(gen_input, ((0, 0), (0, IN_PAD - IN_DIM)))   # (B, 128)

    def full(shape):
        return pl.BlockSpec(shape, lambda j: (0, 0))

    in_specs = [
        full((B, IN_PAD)),                                    # gen_input (full batch, resident)
        full((IN_PAD, 128)), full((1, 128)),                  # w1, b1
        full((128, 256)), full((1, 256)), full((1, 256)), full((1, 256)),   # w2, b2, g2, be2
        full((256, 512)), full((1, 512)), full((1, 512)), full((1, 512)),   # w3, b3, g3, be3
        full((512, 1024)), full((1, 1024)), full((1, 1024)), full((1, 1024)),  # w4, b4, g4, be4
        pl.BlockSpec((1024, TN), lambda j: (0, j)),           # w5 tile (streams, double-buffered)
        pl.BlockSpec((1, TN), lambda j: (0, j)),              # b5 tile
    ]

    out = pl.pallas_call(
        generator_kernel,
        out_shape=jax.ShapeDtypeStruct((B, OUT_PAD), jnp.float32),
        grid=(OUT_PAD // TN,),                                # 9 output-column tiles
        in_specs=in_specs,
        out_specs=pl.BlockSpec((B, TN), lambda j: (0, j)),
        compiler_params=pltpu.CompilerParams(
            dimension_semantics=("parallel",),                # shards across v7x's 2 TCs
        ),
    )(gen_input,
      params["w1"], params["b1"],
      params["w2"], params["b2"], params["g2"], params["be2"],
      params["w3"], params["b3"], params["g3"], params["be3"],
      params["w4"], params["b4"], params["g4"], params["be4"],
      params["w5"], params["b5"])

    img = out[:, :IMG_FLAT]                                   # drop zero-padded columns
    return img.reshape(B, *IMG_SHAPE)                         # NCHW, matches PyTorch view


if __name__ == "__main__":
    key = jax.random.PRNGKey(0)
    pkey, nkey = jax.random.split(key)
    params = init_params(pkey)

    B = 8
    noise = jax.random.normal(nkey, (B, LATENT_DIM), jnp.float32)
    labels = jnp.zeros((B,), jnp.int32)   # n_classes=1 -> only valid label is 0

    img = generator_forward(noise, labels, params)
    jax.block_until_ready(img)
    assert img.shape == (B, *IMG_SHAPE) and img.dtype == jnp.float32
    assert bool(jnp.all(jnp.isfinite(img)))
    print("KERNEL_OK")
</pallas_src>

<mosaic_0001>
module attributes {stable_mosaic.version = 11 : i64} {
  func.func @generator_kernel(%arg0: i32, %arg1: memref<8x128xf32, #tpu.memory_space<vmem>>, %arg2: memref<128x128xbf16, #tpu.memory_space<vmem>>, %arg3: memref<1x128xf32, #tpu.memory_space<vmem>>, %arg4: memref<128x256xbf16, #tpu.memory_space<vmem>>, %arg5: memref<1x256xf32, #tpu.memory_space<vmem>>, %arg6: memref<1x256xf32, #tpu.memory_space<vmem>>, %arg7: memref<1x256xf32, #tpu.memory_space<vmem>>, %arg8: memref<256x512xbf16, #tpu.memory_space<vmem>>, %arg9: memref<1x512xf32, #tpu.memory_space<vmem>>, %arg10: memref<1x512xf32, #tpu.memory_space<vmem>>, %arg11: memref<1x512xf32, #tpu.memory_space<vmem>>, %arg12: memref<512x1024xbf16, #tpu.memory_space<vmem>>, %arg13: memref<1x1024xf32, #tpu.memory_space<vmem>>, %arg14: memref<1x1024xf32, #tpu.memory_space<vmem>>, %arg15: memref<1x1024xf32, #tpu.memory_space<vmem>>, %arg16: memref<1024x512xbf16, #tpu.memory_space<vmem>>, %arg17: memref<1x512xf32, #tpu.memory_space<vmem>>, %arg18: memref<8x512xf32, #tpu.memory_space<vmem>>) attributes {dimension_semantics = [#tpu.dimension_semantics<parallel>], iteration_bounds = array<i64: 9>, scalar_prefetch = 0 : i64, scratch_operands = 0 : i64, tpu.core_type = #tpu.core_type<tc>, window_params = [{pipeline_mode = #tpu.pipeline_mode<synchronous>, transform_indices = @transform_0, window_bounds = array<i64: 8, 128>}, {pipeline_mode = #tpu.pipeline_mode<synchronous>, transform_indices = @transform_1, window_bounds = array<i64: 128, 128>}, {pipeline_mode = #tpu.pipeline_mode<synchronous>, transform_indices = @transform_2, window_bounds = array<i64: 1, 128>}, {pipeline_mode = #tpu.pipeline_mode<synchronous>, transform_indices = @transform_3, window_bounds = array<i64: 128, 256>}, {pipeline_mode = #tpu.pipeline_mode<synchronous>, transform_indices = @transform_4, window_bounds = array<i64: 1, 256>}, {pipeline_mode = #tpu.pipeline_mode<synchronous>, transform_indices = @transform_5, window_bounds = array<i64: 1, 256>}, {pipeline_mode = #tpu.pipeline_mode<synchronous>, transform_indices = @transform_6, window_bounds = array<i64: 1, 256>}, {pipeline_mode = #tpu.pipeline_mode<synchronous>, transform_indices = @transform_7, window_bounds = array<i64: 256, 512>}, {pipeline_mode = #tpu.pipeline_mode<synchronous>, transform_indices = @transform_8, window_bounds = array<i64: 1, 512>}, {pipeline_mode = #tpu.pipeline_mode<synchronous>, transform_indices = @transform_9, window_bounds = array<i64: 1, 512>}, {pipeline_mode = #tpu.pipeline_mode<synchronous>, transform_indices = @transform_10, window_bounds = array<i64: 1, 512>}, {pipeline_mode = #tpu.pipeline_mode<synchronous>, transform_indices = @transform_11, window_bounds = array<i64: 512, 1024>}, {pipeline_mode = #tpu.pipeline_mode<synchronous>, transform_indices = @transform_12, window_bounds = array<i64: 1, 1024>}, {pipeline_mode = #tpu.pipeline_mode<synchronous>, transform_indices = @transform_13, window_bounds = array<i64: 1, 1024>}, {pipeline_mode = #tpu.pipeline_mode<synchronous>, transform_indices = @transform_14, window_bounds = array<i64: 1, 1024>}, {transform_indices = @transform_15, window_bounds = array<i64: 1024, 512>}, {transform_indices = @transform_16, window_bounds = array<i64: 1, 512>}, {transform_indices = @transform_17, window_bounds = array<i64: 8, 512>}]} {
    %c0 = arith.constant 0 : index
    %c0_0 = arith.constant 0 : index
    %0 = vector.load %arg1[%c0, %c0_0] : memref<8x128xf32, #tpu.memory_space<vmem>>, vector<8x128xf32>
    %1 = arith.truncf %0 : vector<8x128xf32> to vector<8x128xbf16>
    %c0_1 = arith.constant 0 : index
    %c0_2 = arith.constant 0 : index
    %2 = vector.load %arg2[%c0_1, %c0_2] : memref<128x128xbf16, #tpu.memory_space<vmem>>, vector<128x128xbf16>
    %cst = arith.constant dense<0.000000e+00> : vector<8x128xf32>
    %3 = tpu.matmul %1, %2, %cst {dimension_numbers = #tpu.dot_dimension_numbers<[1], [0], [0], [1], [0, 0, 1, 1], [], []>} : vector<8x128xbf16>, vector<128x128xbf16>, vector<8x128xf32> -> vector<8x128xf32>
    %c0_3 = arith.constant 0 : index
    %c0_4 = arith.constant 0 : index
    %4 = vector.load %arg3[%c0_3, %c0_4] : memref<1x128xf32, #tpu.memory_space<vmem>>, vector<1x128xf32>
    %5 = vector.broadcast %4 : vector<1x128xf32> to vector<8x128xf32>
    %6 = arith.addf %3, %5 : vector<8x128xf32>
    %cst_5 = arith.constant 0.000000e+00 : f32
    %7 = vector.broadcast %cst_5 : f32 to vector<8x128xf32>
    %8 = arith.cmpf ogt, %6, %7 : vector<8x128xf32>
    %cst_6 = arith.constant 2.000000e-01 : f32
    %9 = vector.broadcast %cst_6 : f32 to vector<8x128xf32>
    %10 = arith.mulf %9, %6 : vector<8x128xf32>
    %11 = arith.select %8, %6, %10 : vector<8x128xi1>, vector<8x128xf32>
    %12 = arith.truncf %11 : vector<8x128xf32> to vector<8x128xbf16>
    %c0_7 = arith.constant 0 : index
    %c0_8 = arith.constant 0 : index
    %13 = vector.load %arg4[%c0_7, %c0_8] : memref<128x256xbf16, #tpu.memory_space<vmem>>, vector<128x256xbf16>
    %cst_9 = arith.constant dense<0.000000e+00> : vector<8x256xf32>
    %14 = tpu.matmul %12, %13, %cst_9 {dimension_numbers = #tpu.dot_dimension_numbers<[1], [0], [0], [1], [0, 0, 1, 1], [], []>} : vector<8x128xbf16>, vector<128x256xbf16>, vector<8x256xf32> -> vector<8x256xf32>
    %c0_10 = arith.constant 0 : index
    %c0_11 = arith.constant 0 : index
    %15 = vector.load %arg5[%c0_10, %c0_11] : memref<1x256xf32, #tpu.memory_space<vmem>>, vector<1x256xf32>
    %16 = vector.broadcast %15 : vector<1x256xf32> to vector<8x256xf32>
    %17 = arith.addf %14, %16 : vector<8x256xf32>
    %c0_12 = arith.constant 0 : index
    %c0_13 = arith.constant 0 : index
    %18 = vector.load %arg6[%c0_12, %c0_13] : memref<1x256xf32, #tpu.memory_space<vmem>>, vector<1x256xf32>
    %c0_14 = arith.constant 0 : index
    %c0_15 = arith.constant 0 : index
    %19 = vector.load %arg7[%c0_14, %c0_15] : memref<1x256xf32, #tpu.memory_space<vmem>>, vector<1x256xf32>
    %cst_16 = arith.constant dense<0.000000e+00> : vector<256xf32>
    %20 = vector.multi_reduction <add>, %17, %cst_16 [0] : vector<8x256xf32> to vector<256xf32>
    %21 = vector.shape_cast %20 : vector<256xf32> to vector<1x256xf32>
    %cst_17 = arith.constant 8.000000e+00 : f32
    %22 = vector.broadcast %cst_17 : f32 to vector<1x256xf32>
    %23 = arith.divf %21, %22 : vector<1x256xf32>
    %24 = arith.mulf %17, %17 : vector<8x256xf32>
    %cst_18 = arith.constant dense<0.000000e+00> : vector<256xf32>
    %25 = vector.multi_reduction <add>, %24, %cst_18 [0] : vector<8x256xf32> to vector<256xf32>
    %26 = vector.shape_cast %25 : vector<256xf32> to vector<1x256xf32>
    %cst_19 = arith.constant 8.000000e+00 : f32
    %27 = vector.broadcast %cst_19 : f32 to vector<1x256xf32>
    %28 = arith.divf %26, %27 : vector<1x256xf32>
    %29 = arith.mulf %23, %23 : vector<1x256xf32>
    %30 = arith.subf %28, %29 : vector<1x256xf32>
    %cst_20 = arith.constant 8.000000e-01 : f32
    %31 = vector.broadcast %cst_20 : f32 to vector<1x256xf32>
    %32 = arith.addf %30, %31 : vector<1x256xf32>
    %33 = math.rsqrt %32 : vector<1x256xf32>
    %34 = arith.mulf %18, %33 : vector<1x256xf32>
    %35 = arith.mulf %23, %34 : vector<1x256xf32>
    %36 = arith.subf %19, %35 : vector<1x256xf32>
    %37 = vector.broadcast %34 : vector<1x256xf32> to vector<8x256xf32>
    %38 = arith.mulf %17, %37 : vector<8x256xf32>
    %39 = vector.broadcast %36 : vector<1x256xf32> to vector<8x256xf32>
    %40 = arith.addf %38, %39 : vector<8x256xf32>
    %cst_21 = arith.constant 0.000000e+00 : f32
    %41 = vector.broadcast %cst_21 : f32 to vector<8x256xf32>
    %42 = arith.cmpf ogt, %40, %41 : vector<8x256xf32>
    %cst_22 = arith.constant 2.000000e-01 : f32
    %43 = vector.broadcast %cst_22 : f32 to vector<8x256xf32>
    %44 = arith.mulf %43, %40 : vector<8x256xf32>
    %45 = arith.select %42, %40, %44 : vector<8x256xi1>, vector<8x256xf32>
    %46 = arith.truncf %45 : vector<8x256xf32> to vector<8x256xbf16>
    %c0_23 = arith.constant 0 : index
    %c0_24 = arith.constant 0 : index
    %47 = vector.load %arg8[%c0_23, %c0_24] : memref<256x512xbf16, #tpu.memory_space<vmem>>, vector<256x512xbf16>
    %cst_25 = arith.constant dense<0.000000e+00> : vector<8x512xf32>
    %48 = tpu.matmul %46, %47, %cst_25 {dimension_numbers = #tpu.dot_dimension_numbers<[1], [0], [0], [1], [0, 0, 1, 1], [], []>} : vector<8x256xbf16>, vector<256x512xbf16>, vector<8x512xf32> -> vector<8x512xf32>
    %c0_26 = arith.constant 0 : index
    %c0_27 = arith.constant 0 : index
    %49 = vector.load %arg9[%c0_26, %c0_27] : memref<1x512xf32, #tpu.memory_space<vmem>>, vector<1x512xf32>
    %50 = vector.broadcast %49 : vector<1x512xf32> to vector<8x512xf32>
    %51 = arith.addf %48, %50 : vector<8x512xf32>
    %c0_28 = arith.constant 0 : index
    %c0_29 = arith.constant 0 : index
    %52 = vector.load %arg10[%c0_28, %c0_29] : memref<1x512xf32, #tpu.memory_space<vmem>>, vector<1x512xf32>
    %c0_30 = arith.constant 0 : index
    %c0_31 = arith.constant 0 : index
    %53 = vector.load %arg11[%c0_30, %c0_31] : memref<1x512xf32, #tpu.memory_space<vmem>>, vector<1x512xf32>
    %cst_32 = arith.constant dense<0.000000e+00> : vector<512xf32>
    %54 = vector.multi_reduction <add>, %51, %cst_32 [0] : vector<8x512xf32> to vector<512xf32>
    %55 = vector.shape_cast %54 : vector<512xf32> to vector<1x512xf32>
    %cst_33 = arith.constant 8.000000e+00 : f32
    %56 = vector.broadcast %cst_33 : f32 to vector<1x512xf32>
    %57 = arith.divf %55, %56 : vector<1x512xf32>
    %58 = arith.mulf %51, %51 : vector<8x512xf32>
    %cst_34 = arith.constant dense<0.000000e+00> : vector<512xf32>
    %59 = vector.multi_reduction <add>, %58, %cst_34 [0] : vector<8x512xf32> to vector<512xf32>
    %60 = vector.shape_cast %59 : vector<512xf32> to vector<1x512xf32>
    %cst_35 = arith.constant 8.000000e+00 : f32
    %61 = vector.broadcast %cst_35 : f32 to vector<1x512xf32>
    %62 = arith.divf %60, %61 : vector<1x512xf32>
    %63 = arith.mulf %57, %57 : vector<1x512xf32>
    %64 = arith.subf %62, %63 : vector<1x512xf32>
    %cst_36 = arith.constant 8.000000e-01 : f32
    %65 = vector.broadcast %cst_36 : f32 to vector<1x512xf32>
    %66 = arith.addf %64, %65 : vector<1x512xf32>
    %67 = math.rsqrt %66 : vector<1x512xf32>
    %68 = arith.mulf %52, %67 : vector<1x512xf32>
    %69 = arith.mulf %57, %68 : vector<1x512xf32>
    %70 = arith.subf %53, %69 : vector<1x512xf32>
    %71 = vector.broadcast %68 : vector<1x512xf32> to vector<8x512xf32>
    %72 = arith.mulf %51, %71 : vector<8x512xf32>
    %73 = vector.broadcast %70 : vector<1x512xf32> to vector<8x512xf32>
    %74 = arith.addf %72, %73 : vector<8x512xf32>
    %cst_37 = arith.constant 0.000000e+00 : f32
    %75 = vector.broadcast %cst_37 : f32 to vector<8x512xf32>
    %76 = arith.cmpf ogt, %74, %75 : vector<8x512xf32>
    %cst_38 = arith.constant 2.000000e-01 : f32
    %77 = vector.broadcast %cst_38 : f32 to vector<8x512xf32>
    %78 = arith.mulf %77, %74 : vector<8x512xf32>
    %79 = arith.select %76, %74, %78 : vector<8x512xi1>, vector<8x512xf32>
    %80 = arith.truncf %79 : vector<8x512xf32> to vector<8x512xbf16>
    %c0_39 = arith.constant 0 : index
    %c0_40 = arith.constant 0 : index
    %81 = vector.load %arg12[%c0_39, %c0_40] : memref<512x1024xbf16, #tpu.memory_space<vmem>>, vector<512x1024xbf16>
    %cst_41 = arith.constant dense<0.000000e+00> : vector<8x1024xf32>
    %82 = tpu.matmul %80, %81, %cst_41 {dimension_numbers = #tpu.dot_dimension_numbers<[1], [0], [0], [1], [0, 0, 1, 1], [], []>} : vector<8x512xbf16>, vector<512x1024xbf16>, vector<8x1024xf32> -> vector<8x1024xf32>
    %c0_42 = arith.constant 0 : index
    %c0_43 = arith.constant 0 : index
    %83 = vector.load %arg13[%c0_42, %c0_43] : memref<1x1024xf32, #tpu.memory_space<vmem>>, vector<1x1024xf32>
    %84 = vector.broadcast %83 : vector<1x1024xf32> to vector<8x1024xf32>
    %85 = arith.addf %82, %84 : vector<8x1024xf32>
    %c0_44 = arith.constant 0 : index
    %c0_45 = arith.constant 0 : index
    %86 = vector.load %arg14[%c0_44, %c0_45] : memref<1x1024xf32, #tpu.memory_space<vmem>>, vector<1x1024xf32>
    %c0_46 = arith.constant 0 : index
    %c0_47 = arith.constant 0 : index
    %87 = vector.load %arg15[%c0_46, %c0_47] : memref<1x1024xf32, #tpu.memory_space<vmem>>, vector<1x1024xf32>
    %cst_48 = arith.constant dense<0.000000e+00> : vector<1024xf32>
    %88 = vector.multi_reduction <add>, %85, %cst_48 [0] : vector<8x1024xf32> to vector<1024xf32>
    %89 = vector.shape_cast %88 : vector<1024xf32> to vector<1x1024xf32>
    %cst_49 = arith.constant 8.000000e+00 : f32
    %90 = vector.broadcast %cst_49 : f32 to vector<1x1024xf32>
    %91 = arith.divf %89, %90 : vector<1x1024xf32>
    %92 = arith.mulf %85, %85 : vector<8x1024xf32>
    %cst_50 = arith.constant dense<0.000000e+00> : vector<1024xf32>
    %93 = vector.multi_reduction <add>, %92, %cst_50 [0] : vector<8x1024xf32> to vector<1024xf32>
    %94 = vector.shape_cast %93 : vector<1024xf32> to vector<1x1024xf32>
    %cst_51 = arith.constant 8.000000e+00 : f32
    %95 = vector.broadcast %cst_51 : f32 to vector<1x1024xf32>
    %96 = arith.divf %94, %95 : vector<1x1024xf32>
    %97 = arith.mulf %91, %91 : vector<1x1024xf32>
    %98 = arith.subf %96, %97 : vector<1x1024xf32>
    %cst_52 = arith.constant 8.000000e-01 : f32
    %99 = vector.broadcast %cst_52 : f32 to vector<1x1024xf32>
    %100 = arith.addf %98, %99 : vector<1x1024xf32>
    %101 = math.rsqrt %100 : vector<1x1024xf32>
    %102 = arith.mulf %86, %101 : vector<1x1024xf32>
    %103 = arith.mulf %91, %102 : vector<1x1024xf32>
    %104 = arith.subf %87, %103 : vector<1x1024xf32>
    %105 = vector.broadcast %102 : vector<1x1024xf32> to vector<8x1024xf32>
    %106 = arith.mulf %85, %105 : vector<8x1024xf32>
    %107 = vector.broadcast %104 : vector<1x1024xf32> to vector<8x1024xf32>
    %108 = arith.addf %106, %107 : vector<8x1024xf32>
    %cst_53 = arith.constant 0.000000e+00 : f32
    %109 = vector.broadcast %cst_53 : f32 to vector<8x1024xf32>
    %110 = arith.cmpf ogt, %108, %109 : vector<8x1024xf32>
    %cst_54 = arith.constant 2.000000e-01 : f32
    %111 = vector.broadcast %cst_54 : f32 to vector<8x1024xf32>
    %112 = arith.mulf %111, %108 : vector<8x1024xf32>
    %113 = arith.select %110, %108, %112 : vector<8x1024xi1>, vector<8x1024xf32>
    %114 = arith.truncf %113 : vector<8x1024xf32> to vector<8x1024xbf16>
    %c0_55 = arith.constant 0 : index
    %c0_56 = arith.constant 0 : index
    %115 = vector.load %arg16[%c0_55, %c0_56] : memref<1024x512xbf16, #tpu.memory_space<vmem>>, vector<1024x512xbf16>
    %cst_57 = arith.constant dense<0.000000e+00> : vector<8x512xf32>
    %116 = tpu.matmul %114, %115, %cst_57 {dimension_numbers = #tpu.dot_dimension_numbers<[1], [0], [0], [1], [0, 0, 1, 1], [], []>} : vector<8x1024xbf16>, vector<1024x512xbf16>, vector<8x512xf32> -> vector<8x512xf32>
    %c0_58 = arith.constant 0 : index
    %c0_59 = arith.constant 0 : index
    %117 = vector.load %arg17[%c0_58, %c0_59] : memref<1x512xf32, #tpu.memory_space<vmem>>, vector<1x512xf32>
    %118 = vector.broadcast %117 : vector<1x512xf32> to vector<8x512xf32>
    %119 = arith.addf %116, %118 : vector<8x512xf32>
    %120 = math.tanh %119 : vector<8x512xf32>
    %c0_60 = arith.constant 0 : index
    %c0_61 = arith.constant 0 : index
    %121 = vector.load %arg18[%c0_60, %c0_61] : memref<8x512xf32, #tpu.memory_space<vmem>>, vector<8x512xf32>
    tpu.vector_store %arg18[%c0_60, %c0_61], %120 {strides = array<i32>} : memref<8x512xf32, #tpu.memory_space<vmem>>, vector<8x512xf32>,
    return
  }
  func.func @transform_0(%arg0: i32) -> (i32, i32) {
    %c0_i32 = arith.constant 0 : i32
    %c0_i32_0 = arith.constant 0 : i32
    %c0_i32_1 = arith.constant 0 : i32
    return %c0_i32, %c0_i32_0 : i32, i32
  }
  func.func @transform_1(%arg0: i32) -> (i32, i32) {
    %c0_i32 = arith.constant 0 : i32
    %c0_i32_0 = arith.constant 0 : i32
    %c0_i32_1 = arith.constant 0 : i32
    return %c0_i32, %c0_i32_0 : i32, i32
  }
  func.func @transform_2(%arg0: i32) -> (i32, i32) {
    %c0_i32 = arith.constant 0 : i32
    %c0_i32_0 = arith.constant 0 : i32
    %c0_i32_1 = arith.constant 0 : i32
    return %c0_i32, %c0_i32_0 : i32, i32
  }
  func.func @transform_3(%arg0: i32) -> (i32, i32) {
    %c0_i32 = arith.constant 0 : i32
    %c0_i32_0 = arith.constant 0 : i32
    %c0_i32_1 = arith.constant 0 : i32
    return %c0_i32, %c0_i32_0 : i32, i32
  }
  func.func @transform_4(%arg0: i32) -> (i32, i32) {
    %c0_i32 = arith.constant 0 : i32
    %c0_i32_0 = arith.constant 0 : i32
    %c0_i32_1 = arith.constant 0 : i32
    return %c0_i32, %c0_i32_0 : i32, i32
  }
  func.func @transform_5(%arg0: i32) -> (i32, i32) {
    %c0_i32 = arith.constant 0 : i32
    %c0_i32_0 = arith.constant 0 : i32
    %c0_i32_1 = arith.constant 0 : i32
    return %c0_i32, %c0_i32_0 : i32, i32
  }
  func.func @transform_6(%arg0: i32) -> (i32, i32) {
    %c0_i32 = arith.constant 0 : i32
    %c0_i32_0 = arith.constant 0 : i32
    %c0_i32_1 = arith.constant 0 : i32
    return %c0_i32, %c0_i32_0 : i32, i32
  }
  func.func @transform_7(%arg0: i32) -> (i32, i32) {
    %c0_i32 = arith.constant 0 : i32
    %c0_i32_0 = arith.constant 0 : i32
    %c0_i32_1 = arith.constant 0 : i32
    return %c0_i32, %c0_i32_0 : i32, i32
  }
  func.func @transform_8(%arg0: i32) -> (i32, i32) {
    %c0_i32 = arith.constant 0 : i32
    %c0_i32_0 = arith.constant 0 : i32
    %c0_i32_1 = arith.constant 0 : i32
    return %c0_i32, %c0_i32_0 : i32, i32
  }
  func.func @transform_9(%arg0: i32) -> (i32, i32) {
    %c0_i32 = arith.constant 0 : i32
    %c0_i32_0 = arith.constant 0 : i32
    %c0_i32_1 = arith.constant 0 : i32
    return %c0_i32, %c0_i32_0 : i32, i32
  }
  func.func @transform_10(%arg0: i32) -> (i32, i32) {
    %c0_i32 = arith.constant 0 : i32
    %c0_i32_0 = arith.constant 0 : i32
    %c0_i32_1 = arith.constant 0 : i32
    return %c0_i32, %c0_i32_0 : i32, i32
  }
  func.func @transform_11(%arg0: i32) -> (i32, i32) {
    %c0_i32 = arith.constant 0 : i32
    %c0_i32_0 = arith.constant 0 : i32
    %c0_i32_1 = arith.constant 0 : i32
    return %c0_i32, %c0_i32_0 : i32, i32
  }
  func.func @transform_12(%arg0: i32) -> (i32, i32) {
    %c0_i32 = arith.constant 0 : i32
    %c0_i32_0 = arith.constant 0 : i32
    %c0_i32_1 = arith.constant 0 : i32
    return %c0_i32, %c0_i32_0 : i32, i32
  }
  func.func @transform_13(%arg0: i32) -> (i32, i32) {
    %c0_i32 = arith.constant 0 : i32
    %c0_i32_0 = arith.constant 0 : i32
    %c0_i32_1 = arith.constant 0 : i32
    return %c0_i32, %c0_i32_0 : i32, i32
  }
  func.func @transform_14(%arg0: i32) -> (i32, i32) {
    %c0_i32 = arith.constant 0 : i32
    %c0_i32_0 = arith.constant 0 : i32
    %c0_i32_1 = arith.constant 0 : i32
    return %c0_i32, %c0_i32_0 : i32, i32
  }
  func.func @transform_15(%arg0: i32) -> (i32, i32) {
    %c0_i32 = arith.constant 0 : i32
    %c0_i32_0 = arith.constant 0 : i32
    return %c0_i32, %arg0 : i32, i32
  }
  func.func @transform_16(%arg0: i32) -> (i32, i32) {
    %c0_i32 = arith.constant 0 : i32
    %c0_i32_0 = arith.constant 0 : i32
    return %c0_i32, %arg0 : i32, i32
  }
  func.func @transform_17(%arg0: i32) -> (i32, i32) {
    %c0_i32 = arith.constant 0 : i32
    %c0_i32_0 = arith.constant 0 : i32
    return %c0_i32, %arg0 : i32, i32
  }
}

</mosaic_0001>

<bundles_post_ra>
// kernel: tpu_custom_call.1
= control target key start
LH: loop header
LB: loop body
LE: loop exit
PB: predicated region body
PF: predicated region fallthrough
CT: control target
= control target key end

     0   :  { %s9391_s0 = inlined_call_operand.hbm [shape: f32[8,128], index: 0, kind: input, shape index: {}]   ;;  %s9392_s1 = inlined_call_operand.hbm [shape: bf16[128,128], index: 1, kind: input, shape index: {}]   ;;  %s9393_s2 = inlined_call_operand.hbm [shape: f32[1,128], index: 2, kind: input, shape index: {}]   ;;  %s9394_s3 = inlined_call_operand.hbm [shape: bf16[128,256], index: 3, kind: input, shape index: {}]   ;;  %s9395_s4 = inlined_call_operand.hbm [shape: f32[1,256], index: 4, kind: input, shape index: {}]   ;;  %s9396_s5 = inlined_call_operand.hbm [shape: f32[1,256], index: 5, kind: input, shape index: {}]   ;;  %s9397_s6 = inlined_call_operand.hbm [shape: f32[1,256], index: 6, kind: input, shape index: {}]   ;;  %s9398_s7 = inlined_call_operand.hbm [shape: bf16[256,512], index: 7, kind: input, shape index: {}]   ;;  %s9399_s8 = inlined_call_operand.hbm [shape: f32[1,512], index: 8, kind: input, shape index: {}]   ;;  %s9400_s9 = inlined_call_operand.hbm [shape: f32[1,512], index: 9, kind: input, shape index: {}]   ;;  %s9401_s10 = inlined_call_operand.hbm [shape: f32[1,512], index: 10, kind: input, shape index: {}]   ;;  %s9402_s11 = inlined_call_operand.hbm [shape: bf16[512,1024], index: 11, kind: input, shape index: {}]   ;;  %s9403_s12 = inlined_call_operand.hbm [shape: f32[1,1024], index: 12, kind: input, shape index: {}]   ;;  %s9404_s13 = inlined_call_operand.hbm [shape: f32[1,1024], index: 13, kind: input, shape index: {}]   ;;  %s9405_s14 = inlined_call_operand.hbm [shape: f32[1,1024], index: 14, kind: input, shape index: {}]   ;;  %s9406_s15 = inlined_call_operand.hbm [shape: bf16[1024,4608], index: 15, kind: input, shape index: {}]   ;;  %s9407_s16 = inlined_call_operand.hbm [shape: f32[1,4608], index: 16, kind: input, shape index: {}]   ;;  %s9408_s17 = inlined_call_operand.hbm [shape: f32[8,4608], index: 17, kind: output, shape index: {}]  }
   0x1   :  { %9424 = sst [smem:[#allocation42_spill]] %s9391_s0 }
   0x2   :  { %9425 = sst [smem:[#allocation43_spill]] %s9392_s1 }
   0x3   :  { %9426 = sst [smem:[#allocation44_spill]] %s9393_s2 }
   0x4   :  { %9427 = sst [smem:[#allocation45_spill]] %s9394_s3 }
   0x5   :  { %9428 = sst [smem:[#allocation46_spill]] %s9396_s5 }
   0x6   :  { %9429 = sst [smem:[#allocation47_spill]] %s9398_s7 }
   0x7   :  { %9430 = sst [smem:[#allocation48_spill]] %s9400_s9 }
   0x8   :  { %9431 = sst [smem:[#allocation49_spill]] %s9402_s11 }
   0x9   :  { %9432 = sst [smem:[#allocation50_spill]] %s9404_s13 }
   0xa   :  { %9433 = sst [smem:[#allocation51_spill]] %s9405_s14 }
   0xb   :  { %9434 = sst [smem:[#allocation52_spill]] %s9406_s15 }
   0xc   :  { %9435 = sst [smem:[#allocation53_spill]] %s9407_s16 }
   0xd   :  { %9436 = sst [smem:[#allocation54_spill]] %s9408_s17 }
   0xe   :  { %22 = vsyncpa [#allocation3], 0 }
   0xf   :  { %23 = vsyncpa [#allocation6], 0 }
  0x10   :  { %24 = vsyncpa [#allocation9], 0 }
  0x11   :  { %25 = vsyncpa [#allocation12], 0 }
  0x12   :  { %26 = vsyncpa [#allocation15], 0 }
  0x13   :  { %27 = vsyncpa [#allocation18], 0 }
  0x14   :  { %28 = vsyncpa [#allocation21], 0 }
  0x15   :  { %29 = vsyncpa [#allocation24], 0 }
  0x16   :  { %30 = vsyncpa [#allocation27], 0 }
  0x17   :  { %32 = vsyncpa [#allocation27 + $0x1], 0 }
  0x18   :  { %33 = vsyncpa [#allocation4], 0 }
  0x19   :  { %35 = vsyncpa [#allocation4 + $0x1], 0  ;;  %s8448_s24 = smov 0   ;;  %s8450_s25 = smov 0  }
  0x1a   :  { %s8452_s26 = smov 0   ;;  %s8454_s27 = smov 0  }
  0x1b LB: > { %s8327_s28 = smov [#allocation5]   ;;  %s8469_s0 = sadd.s32 4294967295, %s8325_s27   ;;  %s8325_s27 = sphi %s8454_s27, %s9492_s27   ;;  %s8321_s26 = sphi %s8452_s26, %s9491_s26   ;;  %s8317_s25 = sphi %s8450_s25, %s9490_s25   ;;  %s8313_s24 = sphi %s8448_s24, %s9489_s24  }
  0x1c   : > { %s462_s29 = sshll.u32 %s8327_s28, 4  ;;  %p6340_p0 = scmp.ge.s32.totalorder %s8325_s27, 1  ;;  %s463_s29 = int_to_ptr.vmem [resolvable:$true] %s462_s29 }
  0x1d   : > { %p9412_p1 = scmp.eq.s32.totalorder %s8469_s0, 0  ;;  %p439_p2 = scmp.lt.s32.totalorder %s8325_s27, 10 }
  0x1e   : > { %s8328_s18 = smov [#allocation8]   ;;  %s8329_s20 = smov [#allocation11]  }
  0x1f   : > { %p8474_p3 = pnand %p6340_p0, %p439_p2  ;;  %s486_s19 = sshll.u32 %s8328_s18, 4  ;;  %s8486_s19 = int_to_ptr.vmem [resolvable:$true] %s486_s19 }
  0x20   : > { %s8488_s21 = sshll.u32 %s8329_s20, 4  ;;  %s7794_s23 = scalar_lea.vmem %s463_s29, 1024  ;;  %s512_s21 = int_to_ptr.vmem [resolvable:$true] %s8488_s21 }
  0x21   : > { %s9437_s30 = scalar_select %p8474_p3, 1, 0 }
  0x22   : > { %p7086_p4 = pneg %p8474_p3  ;;  %p7795_p7 = scmp.ne.s32.totalorder %s463_s29, %s7794_s23 }
  0x23   : > { %9438 = sst [smem:[#allocation40_spill]] %s9437_s30  ;;  %p7802_p10 = scmp.lt.s32.totalorder %s463_s29, %s463_s29 }
  0x24   : > { %p8482_p5 = pnand %p7086_p4, %p9412_p1  ;;  %p7803_p11 = scmp.lt.s32.totalorder %s7794_s23, %s7794_s23 }
  0x26   : > { %s9439_s1 = scalar_select %p8482_p5, 1, 0 }
  0x27   : > { %p8492_p6 = pneg %p8482_p5  ;;  %p7804_p12 = por %p7803_p11, %p7802_p10 }
  0x29   : > { %p7797_p8 = pnand %p7795_p7, %p8492_p6 }
  0x2b   : > { %p7798_p9 = pneg %p7797_p8 }
  0x2d   : > { %p7805_p13 = pnand %p7804_p12, %p7798_p9 }
  0x2f   : > { %7808 = shalt.err (!%p7805_p13)
}
  0x30   : > { %s8330_s28 = smov 64   ;;  %s8331_s18 = smov 4  }
  0x31   : > { %s9441_s30 = sld [smem:[#allocation43_spill]]  ;;  %s7820_s16 = scalar_lea.vmem %s8486_s19, 2048 }
  0x32   : > { %p7821_p0 = scmp.ne.s32.totalorder %s8486_s19, %s7820_s16  ;;  %p7828_p7 = scmp.lt.s32.totalorder %s8486_s19, %s8486_s19 }
  0x33   : > { %p7829_p8 = scmp.lt.s32.totalorder %s7820_s16, %s7820_s16 }
  0x34   : > { %p7823_p2 = pnand %p7821_p0, %p8492_p6 }
  0x35   : > { %p7830_p9 = por %p7829_p8, %p7828_p7 }
  0x36   : > { %p7824_p4 = pneg %p7823_p2 }
  0x37   : > { %7092 = dma.hbm_to_vmem [thread:$0]  (!%p8482_p5), %s9441_s30, 1024, %s463_s29, [#allocation6], %s8330_s28, %s8330_s28, %s8331_s18  }
  0x38   : > { %p7831_p10 = pnand %p7830_p9, %p7824_p4 }
  0x3a   : > { %7834 = shalt.err (!%p7831_p10)
}
  0x3b   : > { %s8332_s23 = smov 128   ;;  %s8333_s14 = smov 8  }
  0x3c   : > { %s9442_s3 = sld [smem:[#allocation45_spill]]  ;;  %s7846_s30 = scalar_lea.vmem %s512_s21, 32 }
  0x3d   : > { %p7847_p11 = scmp.ne.s32.totalorder %s512_s21, %s7846_s30  ;;  %p7854_p0 = scmp.lt.s32.totalorder %s512_s21, %s512_s21 }
  0x3e   : > { %p7855_p2 = scmp.lt.s32.totalorder %s7846_s30, %s7846_s30 }
  0x3f   : > { %p7849_p12 = pnand %p7847_p11, %p8492_p6 }
  0x40   : > { %p7856_p4 = por %p7855_p2, %p7854_p0 }
  0x41   : > { %p7850_p13 = pneg %p7849_p12 }
  0x42   : > { %7098 = dma.hbm_to_vmem [thread:$0]  (!%p8482_p5), %s9442_s3, 2048, %s8486_s19, [#allocation9], %s8332_s23, %s8332_s23, %s8333_s14  }
  0x43   : > { %p7857_p7 = pnand %p7856_p4, %p7850_p13 }
  0x45   : > { %7860 = shalt.err (!%p7857_p7)
}
  0x46   : > { %s9443_s5 = sld [smem:[#allocation46_spill]]  ;;  %s8334_s18 = smov [#allocation14]  }
  0x47   : > { %s532_s14 = sshll.u32 %s8334_s18, 4  ;;  %s533_s14 = int_to_ptr.vmem [resolvable:$true] %s532_s14 }
  0x48   : > { %s7872_s19 = scalar_lea.vmem %s533_s14, 8192  ;;  %p7880_p11 = scmp.lt.s32.totalorder %s533_s14, %s533_s14 }
  0x49   : > { %p7873_p8 = scmp.ne.s32.totalorder %s533_s14, %s7872_s19  ;;  %p7881_p12 = scmp.lt.s32.totalorder %s7872_s19, %s7872_s19 }
  0x4b   : > { %p7875_p9 = pnand %p7873_p8, %p8492_p6  ;;  %p7882_p0 = por %p7881_p12, %p7880_p11 }
  0x4c   : > { %7104 = dma.hbm_to_vmem [thread:$0]  (!%p8482_p5), %s9443_s5, 32, %s512_s21, [#allocation12]  }
  0x4d   : > { %p7876_p10 = pneg %p7875_p9 }
  0x4f   : > { %p7883_p13 = pnand %p7882_p0, %p7876_p10 }
  0x51   : > { %7886 = shalt.err (!%p7883_p13)
}
  0x52   : > { %s9414_s20 = smov 256   ;;  %s9415_s23 = smov 16  }
  0x53   : > { %s9444_s7 = sld [smem:[#allocation47_spill]]  ;;  %s8337_s29 = smov [#allocation17]  }
  0x54   : > { %s557_s30 = sshll.u32 %s8337_s29, 4  ;;  %s8338_s16 = smov [#allocation20]   ;;  %s558_s30 = int_to_ptr.vmem [resolvable:$true] %s557_s30 }
  0x55   : > { %s578_s28 = sshll.u32 %s8338_s16, 4  ;;  %s7898_s18 = scalar_lea.vmem %s558_s30, 64  ;;  %s579_s28 = int_to_ptr.vmem [resolvable:$true] %s578_s28 }
  0x56   : > { %p7899_p2 = scmp.ne.s32.totalorder %s558_s30, %s7898_s18  ;;  %p7906_p8 = scmp.lt.s32.totalorder %s558_s30, %s558_s30 }
  0x57   : > { %p7907_p9 = scmp.lt.s32.totalorder %s7898_s18, %s7898_s18 }
  0x58   : > { %p7901_p4 = pnand %p7899_p2, %p8492_p6 }
  0x59   : > { %7110 = dma.hbm_to_vmem [thread:$0]  (!%p8482_p5), %s9444_s7, 8192, %s533_s14, [#allocation15], %s9414_s20, %s9414_s20, %s9415_s23  }
  0x5a   : > { %p7902_p7 = pneg %p7901_p4  ;;  %p7908_p10 = por %p7907_p9, %p7906_p8 }
  0x5c   : > { %p7909_p11 = pnand %p7908_p10, %p7902_p7 }
  0x5e   : > { %7912 = shalt.err (!%p7909_p11)
}
  0x5f   : > { %s9445_s9 = sld [smem:[#allocation48_spill]]  ;;  %s7924_s21 = scalar_lea.vmem %s579_s28, 32768 }
  0x60   : > { %p7925_p12 = scmp.ne.s32.totalorder %s579_s28, %s7924_s21  ;;  %p7932_p1 = scmp.lt.s32.totalorder %s579_s28, %s579_s28 }
  0x61   : > { %p7933_p2 = scmp.lt.s32.totalorder %s7924_s21, %s7924_s21 }
  0x62   : > { %p7927_p0 = pnand %p7925_p12, %p8492_p6 }
  0x63   : > { %p7934_p4 = por %p7933_p2, %p7932_p1 }
  0x64   : > { %p7928_p13 = pneg %p7927_p0 }
  0x65   : > { %7116 = dma.hbm_to_vmem [thread:$0]  (!%p8482_p5), %s9445_s9, 64, %s558_s30, [#allocation18]  }
  0x66   : > { %p7935_p3 = pnand %p7934_p4, %p7928_p13 }
  0x68   : > { %7938 = shalt.err (!%p7935_p3)
}
  0x69   : > { %s8339_s17 = smov 512   ;;  %s8340_s29 = smov 32  }
  0x6a   : > { %s9446_s11 = sld [smem:[#allocation49_spill]]  ;;  %s8341_s30 = smov [#allocation23]  }
  0x6b   : > { %s603_s19 = sshll.u32 %s8341_s30, 4  ;;  %s604_s19 = int_to_ptr.vmem [resolvable:$true] %s603_s19 }
  0x6c   : > { %s7950_s14 = scalar_lea.vmem %s604_s19, 128  ;;  %p7958_p1 = scmp.lt.s32.totalorder %s604_s19, %s604_s19 }
  0x6d   : > { %p7951_p7 = scmp.ne.s32.totalorder %s604_s19, %s7950_s14  ;;  %p7959_p10 = scmp.lt.s32.totalorder %s7950_s14, %s7950_s14 }
  0x6f   : > { %p7953_p8 = pnand %p7951_p7, %p8492_p6  ;;  %p7960_p3 = por %p7959_p10, %p7958_p1 }
  0x70   : > { %7122 = dma.hbm_to_vmem [thread:$0]  (!%p8482_p5), %s9446_s11, 32768, %s579_s28, [#allocation21], %s8339_s17, %s8339_s17, %s8340_s29  }
  0x71   : > { %p7954_p9 = pneg %p7953_p8 }
  0x73   : > { %p7961_p11 = pnand %p7960_p3, %p7954_p9 }
  0x75   : > { %7964 = shalt.err (!%p7961_p11)
}
  0x76   : > { %s9447_s13 = sld [smem:[#allocation50_spill]]  ;;  %s6339_s28 = sadd.s32 4294967294, %s8325_s27  }
  0x77   : > { %s8556_s17 = sadd.s32 1, %s8325_s27   ;;  %s363_s20 = sadd.s32 1, %s8321_s26 }
  0x78   : > { %s360_s29 = ssub.s32 %s8325_s27, %s8556_s17  ;;  %p370_p12 = scmp.ne.s32.totalorder %s8321_s26, %s8317_s25 }
  0x79   : > { %p361_p0 = scmp.eq.s32.totalorder %s360_s29, 0  ;;  %p371_p13 = scmp.eq.s32.totalorder %s8325_s27, 0 }
  0x7a   : > { %p376_p2 = scmp.ne.s32.totalorder %s8317_s25, %s8313_s24  ;;  %p426_p4 = scmp.eq.s32.totalorder %s8469_s0, 8 }
  0x7b   : > { %s8568_s16 = scalar_select %p361_p0, %s8321_s26, %s363_s20  }
  0x7c   : > { %7128 = dma.hbm_to_vmem [thread:$0]  (!%p8482_p5), %s9447_s13, 128, %s604_s19, [#allocation24]  }
  0x7d   : > { %9448 = sst [smem:[#allocation41_spill]] %s8568_s16  ;;  %p372_p7 = por %p371_p13, %p370_p12 }
  0x7e   : > { %p9449_p8 = scmp.eq.s32.totalorder %s8469_s0, 0  ;;  %p8576_p1 = por %p426_p4, %p370_p12 }
  0x7f   : > { %p432_p10 = scmp.eq.s32.totalorder %s6339_s28, 8  ;;  %p7158_p3 = scmp.lt.s32.totalorder %s8325_s27, 9 }
  0x80   : > { %p8572_p9 = por %p9449_p8, %p376_p2  ;;  %s625_s19 = sand.u32 1, %s8325_s27  }
  0x81   : > { %s9451_s30 = scalar_select %p8576_p1, 1, 0 }
  0x82   : > { %s9450_s18 = scalar_select %p8572_p9, 1, 0 }
  0x83   : > { %p8582_p11 = por %p432_p10, %p376_p2  ;;  %s9416_s21 = sand.u32 1, %s8321_s26  }
  0x84   : > { %s6988_s20 = sshll.u32 %s8325_s27, 8  ;;  %s6357_s29 = sshll.u32 %s9416_s21, 11 }
  0x85   : > { %s9452_s14 = scalar_select %p8582_p11, 1, 0 }
  0x86   : > { %s9453_s15 = sld [smem:[#allocation52_spill]]  ;;  %p8595_p12 = pnand %p7158_p3, %p372_p7 }
  0x87   : > { %s629_s7 = scalar_lea.vmem [#allocation26], %s6357_s29  ;;  %s8601_s11 = scalar_lea.sflag [#allocation27], %s625_s19 }
  0x88   : > { %s9454_s28 = scalar_select %p8595_p12, 1, 0 }
  0x89   : > { %s636_s9 = sshll.u32 %s629_s7, 4  ;;  %p9421_p13 = pneg %p8595_p12  ;;  %s8599_s9 = int_to_ptr.vmem [resolvable:$true] %s636_s9 }
  0x8c   : > { %s8593_s5 = scalar_lea.hbm %s9453_s15, %s6988_s20  ;;  %s7970_s20 = scalar_lea.hbm %s9453_s15, 294912 }
  0x8d   : > { %s7965_s21 = scalar_lea.hbm %s8593_s5, 32768  ;;  %p7971_p7 = scmp.lt.s32.totalorder %s8593_s5, %s9453_s15 }
  0x8e   : > { %p7966_p0 = scmp.ne.s32.totalorder %s8593_s5, %s7965_s21  ;;  %p7972_p8 = scmp.lt.s32.totalorder %s7970_s20, %s7965_s21 }
  0x90   : > { %p7968_p2 = pnand %p9421_p13, %p7966_p0  ;;  %p7973_p10 = por %p7972_p8, %p7971_p7 }
  0x92   : > { %p7969_p4 = pneg %p7968_p2 }
  0x94   : > { %p7974_p3 = pnand %p7973_p10, %p7969_p4 }
  0x96   : > { %7977 = shalt.err (!%p7974_p3)
}
  0x97   : > { %s7978_s7 = scalar_lea.vmem %s8599_s9, 32768  ;;  %s8342_s19 = smov [#allocation26]  }
  0x98   : > { %p7979_p11 = scmp.ne.s32.totalorder %s8599_s9, %s7978_s7  ;;  %s7983_s29 = sshll.u32 %s8342_s19, 4  ;;  %s7984_s29 = int_to_ptr.vmem [resolvable:$false] %s7983_s29 }
  0x99   : > { %s7985_s3 = scalar_lea.vmem %s7984_s29, 65536  ;;  %p7986_p1 = scmp.lt.s32.totalorder %s8599_s9, %s7984_s29 }
  0x9a   : > { %p7981_p0 = pnand %p7979_p11, %p9421_p13  ;;  %p7987_p9 = scmp.lt.s32.totalorder %s7985_s3, %s7978_s7 }
  0x9c   : > { %p7982_p2 = pneg %p7981_p0  ;;  %p7988_p5 = por %p7987_p9, %p7986_p1 }
  0x9e   : > { %p7989_p7 = pnand %p7988_p5, %p7982_p2 }
  0xa0   : > { %7992 = shalt.err (!%p7989_p7)
}
  0xa1   : > { %s8343_s13 = smov 2304   ;;  %s9455_s16 = smov 16  }
  0xa2   : > { %s9456_s21 = smov 256   ;;  %s8344_s23 = smov [#allocation2]  }
  0xa3   : > { %7135 = dma.hbm_to_vmem [thread:$0]  (!%p8595_p12), %s8593_s5, 32768, %s8599_s9, %s8601_s11, %s8343_s13, %s9456_s21, %s9455_s16  }
  0xa4   : > { %s452_s20 = sshll.u32 %s8344_s23, 4  ;;  %s8345_s19 = smov [#allocation7]   ;;  %s453_s20 = int_to_ptr.vmem [resolvable:$true] %s452_s20 }
  0xa5   : > { %s476_s15 = sshll.u32 %s8345_s19, 4  ;;  %s8004_s7 = scalar_lea.vmem %s453_s20, 128  ;;  %s477_s15 = int_to_ptr.vmem [resolvable:$true] %s476_s15 }
  0xa6   : > { %p8005_p9 = scmp.ne.s32.totalorder %s453_s20, %s8004_s7  ;;  %p8012_p11 = scmp.lt.s32.totalorder %s453_s20, %s453_s20 }
  0xa7   : > { %p8013_p4 = scmp.lt.s32.totalorder %s8004_s7, %s8004_s7 }
  0xa8   : > { %p8007_p5 = pnand %p8005_p9, %p8492_p6 }
  0xa9   : > { %p8014_p8 = por %p8013_p4, %p8012_p11 }
  0xaa   : > { %p8008_p1 = pneg %p8007_p5 }
  0xac   : > { %p8015_p10 = pnand %p8014_p8, %p8008_p1 }
  0xae   : > { %8018 = shalt.err (!%p8015_p10)
}
  0xaf   : > { %p9457_p3 = scmp.ne.s32.totalorder %s9439_s1, 0  ;;  %s9458_s9 = sld [smem:[#allocation42_spill]] }
  0xb0   : > { %s8030_s3 = scalar_lea.vmem %s477_s15, 16  ;;  %s8037_s13 = scalar_lea.vmem %s477_s15, 32 }
  0xb1   : > { %p8031_p0 = scmp.ne.s32.totalorder %s477_s15, %s8030_s3  ;;  %p8038_p9 = scmp.lt.s32.totalorder %s477_s15, %s477_s15 }
  0xb2   : > { %p8039_p5 = scmp.lt.s32.totalorder %s8037_s13, %s8030_s3 }
  0xb3   : > { %p8033_p2 = pnand %p8031_p0, %p8492_p6 }
  0xb4   : > { %p8040_p13 = por %p8039_p5, %p8038_p9 }
  0xb5   : > { %7089 = dma.hbm_to_vmem [thread:$0]  (!%p9457_p3), %s9458_s9, 128, %s453_s20, [#allocation3]  }
  0xb6   : > { %p8034_p7 = pneg %p8033_p2 }
  0xb8   : > { %p8041_p12 = pnand %p8040_p13, %p8034_p7 }
  0xba   : > { %8044 = shalt.err (!%p8041_p12)
}
  0xbb   : > { %s9459_s2 = sld [smem:[#allocation44_spill]]  ;;  %s8346_s23 = smov [#allocation10]  }
  0xbc   : > { %s500_s20 = sshll.u32 %s8346_s23, 4  ;;  %s8347_s19 = smov [#allocation13]   ;;  %s501_s20 = int_to_ptr.vmem [resolvable:$true] %s500_s20 }
  0xbd   : > { %s522_s7 = sshll.u32 %s8347_s19, 4  ;;  %s8056_s29 = scalar_lea.vmem %s501_s20, 32  ;;  %s523_s7 = int_to_ptr.vmem [resolvable:$true] %s522_s7 }
  0xbe   : > { %p8057_p1 = scmp.ne.s32.totalorder %s501_s20, %s8056_s29  ;;  %p8064_p13 = scmp.lt.s32.totalorder %s501_s20, %s501_s20 }
  0xbf   : > { %p8065_p12 = scmp.lt.s32.totalorder %s8056_s29, %s8056_s29 }
  0xc0   : > { %p8059_p11 = pnand %p8057_p1, %p8492_p6 }
  0xc1   : > { %7095 = dma.hbm_to_vmem [thread:$0]  (!%p9457_p3), %s9459_s2, 16, %s477_s15, [#allocation6]  }
  0xc2   : > { %p8060_p4 = pneg %p8059_p11  ;;  %p8066_p8 = por %p8065_p12, %p8064_p13 }
  0xc4   : > { %p8067_p10 = pnand %p8066_p8, %p8060_p4 }
  0xc6   : > { %8070 = shalt.err (!%p8067_p10)
}
  0xc7   : > { %7101 = dma.hbm_to_vmem [thread:$0]  (!%p9457_p3), %s9395_s4, 32, %s501_s20, [#allocation9]  }
  0xc8   : > { %s8082_s9 = scalar_lea.vmem %s523_s7, 32  ;;  %p8090_p9 = scmp.lt.s32.totalorder %s523_s7, %s523_s7 }
  0xc9   : > { %p8083_p0 = scmp.ne.s32.totalorder %s523_s7, %s8082_s9  ;;  %p8091_p5 = scmp.lt.s32.totalorder %s8082_s9, %s8082_s9 }
  0xcb   : > { %p8085_p2 = pnand %p8083_p0, %p8492_p6  ;;  %p8092_p1 = por %p8091_p5, %p8090_p9 }
  0xcd   : > { %p8086_p7 = pneg %p8085_p2 }
  0xcf   : > { %p8093_p11 = pnand %p8092_p1, %p8086_p7 }
  0xd1   : > { %8096 = shalt.err (!%p8093_p11)
}
  0xd2   : > { %7107 = dma.hbm_to_vmem [thread:$0]  (!%p9457_p3), %s9397_s6, 32, %s523_s7, [#allocation12]  }
  0xd3   : > { %s8348_s16 = smov [#allocation16]   ;;  %s8349_s23 = smov [#allocation19]  }
  0xd4   : > { %s546_s21 = sshll.u32 %s8348_s16, 4  ;;  %s568_s20 = sshll.u32 %s8349_s23, 4  ;;  %s547_s21 = int_to_ptr.vmem [resolvable:$true] %s546_s21  ;;  %s569_s20 = int_to_ptr.vmem [resolvable:$true] %s568_s20 }
  0xd5   : > { %s8108_s19 = scalar_lea.vmem %s547_s21, 64  ;;  %p8116_p8 = scmp.lt.s32.totalorder %s547_s21, %s547_s21 }
  0xd6   : > { %p8109_p4 = scmp.ne.s32.totalorder %s547_s21, %s8108_s19  ;;  %p8117_p10 = scmp.lt.s32.totalorder %s8108_s19, %s8108_s19 }
  0xd8   : > { %p8111_p13 = pnand %p8109_p4, %p8492_p6  ;;  %p8118_p0 = por %p8117_p10, %p8116_p8 }
  0xda   : > { %p8112_p12 = pneg %p8111_p13 }
  0xdc   : > { %p8119_p2 = pnand %p8118_p0, %p8112_p12 }
  0xde   : > { %8122 = shalt.err (!%p8119_p2)
}
  0xdf   : > { %7113 = dma.hbm_to_vmem [thread:$0]  (!%p9457_p3), %s9399_s8, 64, %s547_s21, [#allocation15]  }
  0xe0   : > { %s8134_s5 = scalar_lea.vmem %s569_s20, 64  ;;  %p8142_p1 = scmp.lt.s32.totalorder %s569_s20, %s569_s20 }
  0xe1   : > { %p8135_p7 = scmp.ne.s32.totalorder %s569_s20, %s8134_s5  ;;  %p8143_p11 = scmp.lt.s32.totalorder %s8134_s5, %s8134_s5 }
  0xe3   : > { %p8137_p9 = pnand %p8135_p7, %p8492_p6  ;;  %p8144_p4 = por %p8143_p11, %p8142_p1 }
  0xe5   : > { %p8138_p5 = pneg %p8137_p9 }
  0xe7   : > { %p8145_p13 = pnand %p8144_p4, %p8138_p5 }
  0xe9   : > { %8148 = shalt.err (!%p8145_p13)
}
  0xea   : > { %7119 = dma.hbm_to_vmem [thread:$0]  (!%p9457_p3), %s9401_s10, 64, %s569_s20, [#allocation18]  }
  0xeb   : > { %s8350_s3 = smov [#allocation22]   ;;  %s8351_s16 = smov [#allocation25]  }
  0xec   : > { %s592_s13 = sshll.u32 %s8350_s3, 4  ;;  %s614_s21 = sshll.u32 %s8351_s16, 4  ;;  %s593_s13 = int_to_ptr.vmem [resolvable:$true] %s592_s13  ;;  %s615_s21 = int_to_ptr.vmem [resolvable:$true] %s614_s21 }
  0xed   : > { %s8160_s23 = scalar_lea.vmem %s593_s13, 128  ;;  %p8168_p0 = scmp.lt.s32.totalorder %s593_s13, %s593_s13 }
  0xee   : > { %p8161_p12 = scmp.ne.s32.totalorder %s593_s13, %s8160_s23  ;;  %p8169_p2 = scmp.lt.s32.totalorder %s8160_s23, %s8160_s23 }
  0xf0   : > { %p8163_p8 = pnand %p8161_p12, %p8492_p6  ;;  %p8170_p7 = por %p8169_p2, %p8168_p0 }
  0xf2   : > { %p8164_p10 = pneg %p8163_p8 }
  0xf4   : > { %p8171_p9 = pnand %p8170_p7, %p8164_p10 }
  0xf6   : > { %8174 = shalt.err (!%p8171_p9)
}
  0xf7   : > { %7125 = dma.hbm_to_vmem [thread:$0]  (!%p9457_p3), %s9403_s12, 128, %s593_s13, [#allocation21]  }
  0xf8   : > { %s8186_s29 = scalar_lea.vmem %s615_s21, 128  ;;  %p8194_p4 = scmp.lt.s32.totalorder %s615_s21, %s615_s21 }
  0xf9   : > { %p8187_p5 = scmp.ne.s32.totalorder %s615_s21, %s8186_s29  ;;  %p8195_p13 = scmp.lt.s32.totalorder %s8186_s29, %s8186_s29 }
  0xfb   : > { %p8189_p1 = pnand %p8187_p5, %p8492_p6  ;;  %p8196_p12 = por %p8195_p13, %p8194_p4 }
  0xfd   : > { %p8190_p11 = pneg %p8189_p1 }
  0xff   : > { %p8197_p8 = pnand %p8196_p12, %p8190_p11 }
 0x101   : > { %8200 = shalt.err (!%p8197_p8)
}
 0x102   : > { %s9460_s15 = sld [smem:[#allocation51_spill]]  ;;  %s9461_s9 = sand.u32 1, %s8321_s26  }
 0x103   : > { %s6360_s3 = sshll.u32 %s9461_s9, 2  ;;  %s6989_s13 = sshll.u32 %s8325_s27, 6 }
 0x104   : > { %s9462_s23 = sld [smem:[#allocation53_spill]]  ;;  %s650_s20 = scalar_lea.vmem [#allocation28], %s6360_s3 }
 0x105   : > { %s658_s29 = sshll.u32 %s650_s20, 4  ;;  %p9463_p10 = scmp.ne.s32.totalorder %s9454_s28, 0  ;;  %s659_s29 = int_to_ptr.vmem [resolvable:$true] %s658_s29 }
 0x107   : > { %p9464_p0 = pneg %p9463_p10 }
 0x108   : > { %7131 = dma.hbm_to_vmem [thread:$0]  (!%p9457_p3), %s9460_s15, 128, %s615_s21, [#allocation24]  }
 0x10a   : > { %s656_s19 = scalar_lea.hbm %s9462_s23, %s6989_s13  ;;  %s8206_s21 = scalar_lea.hbm %s9462_s23, 576 }
 0x10b   : > { %s8201_s2 = scalar_lea.hbm %s656_s19, 64  ;;  %p8207_p3 = scmp.lt.s32.totalorder %s656_s19, %s9462_s23 }
 0x10c   : > { %p8202_p6 = scmp.ne.s32.totalorder %s656_s19, %s8201_s2  ;;  %p8208_p9 = scmp.lt.s32.totalorder %s8206_s21, %s8201_s2 }
 0x10e   : > { %p8204_p2 = pnand %p8202_p6, %p9464_p0  ;;  %p8209_p5 = por %p8208_p9, %p8207_p3 }
 0x110   : > { %p8205_p7 = pneg %p8204_p2 }
 0x112   : > { %p8210_p1 = pnand %p8209_p5, %p8205_p7 }
 0x114   : > { %8213 = shalt.err (!%p8210_p1)
}
 0x115   : > { %s8214_s9 = scalar_lea.vmem %s659_s29, 64  ;;  %p9465_p4 = pmov %p9464_p0 }
 0x116   : > { %p8215_p11 = scmp.ne.s32.totalorder %s659_s29, %s8214_s9  ;;  %s8352_s3 = smov [#allocation28]  }
 0x117   : > { %s8219_s13 = sshll.u32 %s8352_s3, 4  ;;  %s8220_s13 = int_to_ptr.vmem [resolvable:$false] %s8219_s13 }
 0x118   : > { %p8217_p13 = pnand %p8215_p11, %p9465_p4  ;;  %s8221_s22 = scalar_lea.vmem %s8220_s13, 128 }
 0x119   : > { %p8222_p8 = scmp.lt.s32.totalorder %s659_s29, %s8220_s13  ;;  %p8223_p6 = scmp.lt.s32.totalorder %s8221_s22, %s8214_s9 }
 0x11a   : > { %p8218_p12 = pneg %p8217_p13 }
 0x11b   : > { %p8224_p0 = por %p8223_p6, %p8222_p8 }
 0x11d   : > { %p8225_p2 = pnand %p8224_p0, %p8218_p12 }
 0x11f   : > { %8228 = shalt.err (!%p8225_p2)
}
 0x120   : > { %7138 = dma.hbm_to_vmem [thread:$0]  (!%p9463_p10), %s656_s19, 64, %s659_s29, %s8601_s11  }
 0x121   : > { %s9466_s2 = sld [smem:[#allocation40_spill]] }
 0x127   : > { %p9467_p7 = scmp.ne.s32.totalorder %s9466_s2, 0 }
 0x128   : > { %p9468_p3 = scmp.eq.s32.totalorder (!%p9467_p7), %s8469_s0, 0 }
 0x129   : > { %667 = sbr.rel (%p9467_p7) target bundleno = 1974 (0x7b6), region = 88 }
 0x12e   : > { %8272 = dma.done.wait (%p9468_p3), [#allocation3], 128   ;;  %p9469_p9 = pmov %p9468_p3 }
 0x12f   : > { %p9470_p5 = pmov %p9468_p3 }
 0x130   : > { %8274 = vsyncadd (%p9469_p9), [#allocation3], 4294967168 }
 0x131   : > { %8276 = dma.done.wait (%p9470_p5), [#allocation6], 1040   ;;  %p9471_p1 = pmov %p9468_p3 }
 0x133   : > { %8278 = vsyncadd (%p9471_p1), [#allocation6], 4294966256  ;;  %p9472_p11 = pmov %p9471_p1 }
 0x134   : > { %p9473_p10 = pmov %p9471_p1 }
 0x135   : > { %8280 = dma.done.wait (%p9472_p11), [#allocation9], 2080  }
 0x136   : > { %8282 = vsyncadd (%p9473_p10), [#allocation9], 4294965216  ;;  %p9474_p4 = pmov %p9471_p1 }
 0x137   : > { %p9475_p13 = pmov %p9471_p1 }
 0x138   : > { %8284 = dma.done.wait (%p9474_p4), [#allocation12], 64  }
 0x139   : > { %8286 = vsyncadd (%p9475_p13), [#allocation12], 4294967232  ;;  %p9476_p12 = pmov %p9471_p1 }
 0x13a   : > { %p9477_p8 = pmov %p9471_p1 }
 0x13b   : > { %8288 = dma.done.wait (%p9476_p12), [#allocation15], 8256  }
 0x13c   : > { %8290 = vsyncadd (%p9477_p8), [#allocation15], 4294959040  ;;  %p9478_p6 = pmov %p9471_p1 }
 0x13d   : > { %p9479_p0 = pmov %p9471_p1 }
 0x13e   : > { %8292 = dma.done.wait (%p9478_p6), [#allocation18], 128  }
 0x13f   : > { %8294 = vsyncadd (%p9479_p0), [#allocation18], 4294967168  ;;  %p9480_p2 = pmov %p9479_p0 }
 0x140   : > { %p9481_p7 = pmov %p9479_p0 }
 0x141   : > { %8296 = dma.done.wait (%p9480_p2), [#allocation21], 32896  }
 0x142   : > { %8298 = vsyncadd (%p9481_p7), [#allocation21], 4294934400  ;;  %p9482_p3 = pmov %p9479_p0 }
 0x143   : > { %p9483_p9 = pmov %p9479_p0 }
 0x144   : > { %8300 = dma.done.wait (%p9482_p3), [#allocation24], 256  }
 0x145   : > { %8302 = vsyncadd (%p9483_p9), [#allocation24], 4294967040  ;;  %s729_s11 = sand.u32 1, %s8469_s0   ;;  %s8743_s28 = sand.u32 1, %s8317_s25  }
 0x146   : > { %s6379_s16 = sshll.u32 %s8743_s28, 11  ;;  %s730_s19 = scalar_lea.sflag [#allocation27], %s729_s11 }
 0x147   : > { %s8746_s20 = scalar_lea.vmem [#allocation26], %s6379_s16  ;;  %p9484_p5 = scmp.ne.s32.totalorder %s9450_s18, 0 }
 0x149   : > { %8304 = dma.done.wait (%p9484_p5), %s730_s19, 32832  }
 0x14a   : > { %8306 = vsyncadd (%p9484_p5), %s730_s19, 4294934464  ;;  %v8353_v0 = vmov 0.0   ;;  %vm8354_vm0 = vmmov 0   ;;  %v7235_v1 = vld [vmem:[#allocation5 + $0x38] sm:$0xff]   ;;  %v7236_v2 = vld [vmem:[#allocation5 + $0x30] sm:$0xff]   ;;  %v8355_v27 = vmov 0  }
 0x14b   : > { %7000 = vmatprep.subr.bf16.mxu0 %v8353_v0  ;;  %7016 = vmatprep.mubr.msk.bf16.mxu0 %vm8354_vm0, %v8353_v0  ;;  %v7237_v3 = vld [vmem:[#allocation5 + $0x28] sm:$0xff]   ;;  %v7243_v4 = vld [vmem:[#allocation8 + $0x74] ss:$8 sps:$4 sm:$0xff]   ;;  %v7245_v5 = vld [vmem:[#allocation8 + $0x70] ss:$8 sps:$4 sm:$0xff]   ;;  %s6380_s18 = sshll.u32 %s8743_s28, 2 }
 0x14c   : > { %7001 = vmatpush3.bf16.msra.mxu0 %v7235_v1  ;;  %v7238_v6 = vld [vmem:[#allocation5 + $0x20] sm:$0xff]   ;;  %1027 = vmatprep.subr.bf16.mxu1 %v7243_v4  ;;  %v7239_v10 = vld [vmem:[#allocation5 + $0x18] sm:$0xff]   ;;  %v7240_v11 = vld [vmem:[#allocation5 + $0x10] sm:$0xff]   ;;  %s742_s29 = scalar_lea.vmem [#allocation28], %s6380_s18  ;;  %s6381_s1 = sshll.u32 %s8743_s28, 5 }
 0x14d   : > { %7002 = vmatprep.subr.bf16.mxu0 %v8353_v0  ;;  %v7246_v7 = vld [vmem:[#allocation8 + $0x64] ss:$8 sps:$4 sm:$0xff]   ;;  %1028 = vmatpush1.bf16.msra.mxu1 %v7245_v5  ;;  %v7248_v8 = vld [vmem:[#allocation8 + $0x60] ss:$8 sps:$4 sm:$0xff]   ;;  %v7249_v9 = vld [vmem:[#allocation8 + $0x54] ss:$8 sps:$4 sm:$0xff]  }
 0x14e   : > { %1029 = vmatprep.subr.bf16.mxu1 %v7246_v7  ;;  %v7251_v12 = vld [vmem:[#allocation8 + $0x50] ss:$8 sps:$4 sm:$0xff]   ;;  %v7252_v13 = vld [vmem:[#allocation8 + $0x44] ss:$8 sps:$4 sm:$0xff]   ;;  %v7254_v14 = vld [vmem:[#allocation8 + $0x40] ss:$8 sps:$4 sm:$0xff]   ;;  %1059 = vmatprep.mubr.bf16.mxu1 %v8355_v27 }
 0x14f   : > { %v7255_v15 = vld [vmem:[#allocation8 + $0x34] ss:$8 sps:$4 sm:$0xff]   ;;  %v7241_v16 = vld [vmem:[#allocation5 + $0x8] sm:$0xff]   ;;  %v7257_v17 = vld [vmem:[#allocation8 + $0x30] ss:$8 sps:$4 sm:$0xff]   ;;  %s9342_s7 = scalar_lea.vmem [#allocation29], %s6381_s1 }
 0x150   : > { %7003 = vmatpush3.bf16.msra.mxu0 %v7236_v2  ;;  %v7258_v18 = vld [vmem:[#allocation8 + $0x24] ss:$8 sps:$4 sm:$0xff]   ;;  %v802_v20 = vld [vmem:[#allocation2] sm:$0xff]  ;;  %v7260_v21 = vld [vmem:[#allocation8 + $0x20] ss:$8 sps:$4 sm:$0xff]   ;;  %s6990_s21 = sshll.u32 %s8469_s0, 9 }
 0x151   : > { %7004 = vmatprep.subr.bf16.mxu0 %v8353_v0  ;;  %1030 = vmatpush1.bf16.msra.mxu1 %v7248_v8  ;;  %v7242_v19 = vld [vmem:[#allocation5] sm:$0xff]   ;;  %v803_v22 = vpack.c.bf16 %v802_v20, %v802_v20  ;;  %v7263_v24 = vld [vmem:[#allocation8 + $0x10] ss:$8 sps:$4 sm:$0xff]   ;;  %s6104_s5 = sshll.u32 %s9342_s7, 4  ;;  %s9485_s3 = sld [smem:[#allocation54_spill]]  ;;  %s6105_s5 = int_to_ptr.vmem [resolvable:$true] %s6104_s5 }
 0x152   : > { %1031 = vmatprep.subr.bf16.mxu1 %v7249_v9  ;;  %v7261_v23 = vld [vmem:[#allocation8 + $0x14] ss:$8 sps:$4 sm:$0xff]   ;;  %v7264_v25 = vld [vmem:[#allocation8 + $0x4] ss:$8 sps:$4 sm:$0xff]   ;;  %v7266_v26 = vld [vmem:[#allocation8] ss:$8 sps:$4 sm:$0xff]  }
 0x153   : > { %v6382_v28 = vld [vmem:[#allocation7] ss:$0 sm:$0xff]  ;;  %v7269_v37 = vld [vmem:[#allocation14 + $0xe4] ss:$16 sps:$4 sm:$0xff]   ;;  %v7272_v38 = vld [vmem:[#allocation14 + $0xec] ss:$16 sps:$4 sm:$0xff]  }
 0x154   : > { %7005 = vmatpush3.bf16.msra.mxu0 %v7237_v3  ;;  %v7267_v39 = vld [vmem:[#allocation14 + $0xe0] ss:$16 sps:$4 sm:$0xff]   ;;  %v7270_v40 = vld [vmem:[#allocation14 + $0xe8] ss:$16 sps:$4 sm:$0xff]   ;;  %v7275_v41 = vld [vmem:[#allocation14 + $0xc4] ss:$16 sps:$4 sm:$0xff]  }
 0x155   : > { %7006 = vmatprep.subr.bf16.mxu0 %v8353_v0  ;;  %1032 = vmatpush1.bf16.msra.mxu1 %v7251_v12  ;;  %v7278_v42 = vld [vmem:[#allocation14 + $0xcc] ss:$16 sps:$4 sm:$0xff]   ;;  %v7273_v43 = vld [vmem:[#allocation14 + $0xc0] ss:$16 sps:$4 sm:$0xff]   ;;  %v7276_v44 = vld [vmem:[#allocation14 + $0xc8] ss:$16 sps:$4 sm:$0xff]  }
 0x156   : > { %1033 = vmatprep.subr.bf16.mxu1 %v7252_v13  ;;  %v7281_v45 = vld [vmem:[#allocation14 + $0xa4] ss:$16 sps:$4 sm:$0xff]   ;;  %v7284_v46 = vld [vmem:[#allocation14 + $0xac] ss:$16 sps:$4 sm:$0xff]   ;;  %v7279_v47 = vld [vmem:[#allocation14 + $0xa0] ss:$16 sps:$4 sm:$0xff]  }
 0x157   : > { %v7282_v48 = vld [vmem:[#allocation14 + $0xa8] ss:$16 sps:$4 sm:$0xff]   ;;  %v7287_v49 = vld [vmem:[#allocation14 + $0x84] ss:$16 sps:$4 sm:$0xff]   ;;  %v7290_v50 = vld [vmem:[#allocation14 + $0x8c] ss:$16 sps:$4 sm:$0xff]   ;;  %s9354_s13 = scalar_lea.hbm %s9485_s3, %s6990_s21 }
 0x158   : > { %7007 = vmatpush3.bf16.msra.mxu0 %v7238_v6  ;;  %v7285_v51 = vld [vmem:[#allocation14 + $0x80] ss:$16 sps:$4 sm:$0xff]   ;;  %v7288_v52 = vld [vmem:[#allocation14 + $0x88] ss:$16 sps:$4 sm:$0xff]   ;;  %v7293_v53 = vld [vmem:[#allocation14 + $0x64] ss:$16 sps:$4 sm:$0xff]  }
 0x159   : > { %7008 = vmatprep.subr.bf16.mxu0 %v8353_v0  ;;  %1034 = vmatpush1.bf16.msra.mxu1 %v7254_v14  ;;  %v7296_v54 = vld [vmem:[#allocation14 + $0x6c] ss:$16 sps:$4 sm:$0xff]   ;;  %v7291_v55 = vld [vmem:[#allocation14 + $0x60] ss:$16 sps:$4 sm:$0xff]   ;;  %v7294_v56 = vld [vmem:[#allocation14 + $0x68] ss:$16 sps:$4 sm:$0xff]  }
 0x15a   : > { %1035 = vmatprep.subr.bf16.mxu1 %v7255_v15  ;;  %v7299_v57 = vld [vmem:[#allocation14 + $0x44] ss:$16 sps:$4 sm:$0xff]   ;;  %v7297_v58 = vld [vmem:[#allocation14 + $0x40] ss:$16 sps:$4 sm:$0xff]   ;;  %v7300_v59 = vld [vmem:[#allocation14 + $0x48] ss:$16 sps:$4 sm:$0xff]  }
 0x15b   : > { %v7302_v60 = vld [vmem:[#allocation14 + $0x4c] ss:$16 sps:$4 sm:$0xff]   ;;  %v7305_v61 = vld [vmem:[#allocation14 + $0x24] ss:$16 sps:$4 sm:$0xff]   ;;  %v7303_v63 = vld [vmem:[#allocation14 + $0x20] ss:$16 sps:$4 sm:$0xff]  }
 0x15c   : > { %7009 = vmatpush3.bf16.msra.mxu0 %v7239_v10  ;;  %v7308_v62 = vld [vmem:[#allocation14 + $0x2c] ss:$16 sps:$4 sm:$0xff]   ;;  %v7311_v1 = vld [vmem:[#allocation14 + $0x4] ss:$16 sps:$4 sm:$0xff]   ;;  %v7309_v3 = vld [vmem:[#allocation14] ss:$16 sps:$4 sm:$0xff]  }
 0x15d   : > { %7010 = vmatprep.subr.bf16.mxu0 %v8353_v0  ;;  %1036 = vmatpush1.bf16.msra.mxu1 %v7257_v17  ;;  %v7314_v2 = vld [vmem:[#allocation14 + $0xc] ss:$16 sps:$4 sm:$0xff]   ;;  %v7312_v4 = vld [vmem:[#allocation14 + $0x8] ss:$16 sps:$4 sm:$0xff]   ;;  %v7317_v5 = vld [vmem:[#allocation14 + $0x1e4] ss:$16 sps:$4 sm:$0xff]  }
 0x15e   : > { %1037 = vmatprep.subr.bf16.mxu1 %v7258_v18  ;;  %v7320_v6 = vld [vmem:[#allocation14 + $0x1ec] ss:$16 sps:$4 sm:$0xff]   ;;  %v7315_v7 = vld [vmem:[#allocation14 + $0x1e0] ss:$16 sps:$4 sm:$0xff]   ;;  %v7318_v8 = vld [vmem:[#allocation14 + $0x1e8] ss:$16 sps:$4 sm:$0xff]  }
 0x15f   : > { %v7323_v9 = vld [vmem:[#allocation14 + $0x1c4] ss:$16 sps:$4 sm:$0xff]   ;;  %v7326_v10 = vld [vmem:[#allocation14 + $0x1cc] ss:$16 sps:$4 sm:$0xff]   ;;  %v7324_v12 = vld [vmem:[#allocation14 + $0x1c8] ss:$16 sps:$4 sm:$0xff]  }
 0x160   : > { %7011 = vmatpush3.bf16.msra.mxu0 %v7240_v11  ;;  %v7321_v11 = vld [vmem:[#allocation14 + $0x1c0] ss:$16 sps:$4 sm:$0xff]   ;;  %v7329_v13 = vld [vmem:[#allocation14 + $0x1a4] ss:$16 sps:$4 sm:$0xff]   ;;  %v7332_v14 = vld [vmem:[#allocation14 + $0x1ac] ss:$16 sps:$4 sm:$0xff]  }
 0x161   : > { %7012 = vmatprep.subr.bf16.mxu0 %v8353_v0  ;;  %1038 = vmatpush1.bf16.msra.mxu1 %v7260_v21  ;;  %v7327_v15 = vld [vmem:[#allocation14 + $0x1a0] ss:$16 sps:$4 sm:$0xff]   ;;  %v7335_v17 = vld [vmem:[#allocation14 + $0x184] ss:$16 sps:$4 sm:$0xff]   ;;  %v7338_v18 = vld [vmem:[#allocation14 + $0x18c] ss:$16 sps:$4 sm:$0xff]  }
 0x162   : > { %1039 = vmatprep.subr.bf16.mxu1 %v7261_v23  ;;  %v7336_v20 = vld [vmem:[#allocation14 + $0x188] ss:$16 sps:$4 sm:$0xff]   ;;  %v7341_v21 = vld [vmem:[#allocation14 + $0x164] ss:$16 sps:$4 sm:$0xff]   ;;  %v7339_v23 = vld [vmem:[#allocation14 + $0x160] ss:$16 sps:$4 sm:$0xff]  }
 0x163   : > { %v7350_v27 = vld [vmem:[#allocation14 + $0x14c] ss:$16 sps:$4 sm:$0xff]   ;;  %s6090_s22 = scalar_lea.sflag [#allocation4], %s8743_s28  ;;  %s8229_s2 = scalar_lea.vmem %s6105_s5, 512 }
 0x164   : > { %7013 = vmatpush3.bf16.msra.mxu0 %v7241_v16  ;;  %v7330_v16 = vld [vmem:[#allocation14 + $0x1a8] ss:$16 sps:$4 sm:$0xff]   ;;  %p8230_p1 = scmp.ne.s32.totalorder %s6105_s5, %s8229_s2  ;;  %p9486_p11 = scmp.ne.s32.totalorder %s9451_s30, 0 }
 0x165   : > { %7014 = vmatprep.subr.bf16.mxu0 %v8353_v0  ;;  %1040 = vmatpush1.bf16.msra.mxu1 %v7263_v24  ;;  %v7306_v0 = vld [vmem:[#allocation14 + $0x28] ss:$16 sps:$4 sm:$0xff]   ;;  %s8357_s11 = smov [#allocation29]  }
 0x166   : > { %1041 = vmatprep.subr.bf16.mxu1 %v7264_v25  ;;  %v7342_v24 = vld [vmem:[#allocation14 + $0x168] ss:$16 sps:$4 sm:$0xff]   ;;  %v7347_v25 = vld [vmem:[#allocation14 + $0x144] ss:$16 sps:$4 sm:$0xff]   ;;  %p8231_p10 = pnand %p8230_p1, %p9486_p11  ;;  %s8233_s16 = sshll.u32 %s8357_s11, 4  ;;  %s8234_s16 = int_to_ptr.vmem [resolvable:$false] %s8233_s16 }
 0x167   : > { %s8235_s0 = scalar_lea.vmem %s8234_s16, 1024  ;;  %p8236_p13 = scmp.lt.s32.totalorder %s6105_s5, %s8234_s16 }
 0x168   : > { %7015 = vmatpush3.bf16.msra.mxu0 %v7242_v19  ;;  %v7333_v19 = vld [vmem:[#allocation14 + $0x180] ss:$16 sps:$4 sm:$0xff]   ;;  %p8232_p4 = pneg %p8231_p10  ;;  %p8237_p12 = scmp.lt.s32.totalorder %s8235_s0, %s8229_s2 }
 0x169   : > { %1042 = vmatpush1.bf16.msra.mxu1 %v7266_v26  ;;  %1589 = vmatprep.subr.bf16.mxu0 %v7269_v37  ;;  %v7345_v26 = vld [vmem:[#allocation14 + $0x140] ss:$16 sps:$4 sm:$0xff]   ;;  %v937_v37 = vlaneseq }
 0x16a   : > { %1630 = vmatprep.subr.bf16.mxu1 %v7272_v38  ;;  %p8238_p8 = por %p8237_p12, %p8236_p13 }
 0x16b   : > { %7017 = vmatmul.mubr.bf16.vlgmr.msra.gmra.mxu0 %v803_v22  ;;  %v7344_v22 = vld [vmem:[#allocation14 + $0x16c] ss:$16 sps:$4 sm:$0xff]   ;;  %v8752_v38 = vshrl.u32 %v937_v37, 7 }
 0x16c   : > { %1590 = vmatpush1.bf16.msra.mxu0 %v7267_v39  ;;  %p8239_p6 = pnand %p8238_p8, %p8232_p4 }
 0x16d   : > { %1591 = vmatprep.subr.bf16.mxu0 %v7275_v41  ;;  %v8755_v39 = vsub.s32 0, %v8752_v38  ;;  %v8758_v41 = vsub.s32 1, %v8752_v38 }
 0x170   : > { %1592 = vmatpush1.bf16.msra.mxu0 %v7273_v43 }
 0x171   : > { %1593 = vmatprep.subr.bf16.mxu0 %v7281_v45 }
 0x174   : > { %1594 = vmatpush1.bf16.msra.mxu0 %v7279_v47 }
 0x175   : > { %1595 = vmatprep.subr.bf16.mxu0 %v7287_v49 }
 0x178   : > { %1596 = vmatpush1.bf16.msra.mxu0 %v7285_v51 }
 0x179   : > { %1597 = vmatprep.subr.bf16.mxu0 %v7293_v53 }
 0x17c   : > { %1598 = vmatpush1.bf16.msra.mxu0 %v7291_v55 }
 0x17d   : > { %1599 = vmatprep.subr.bf16.mxu0 %v7299_v57 }
 0x180   : > { %1600 = vmatpush1.bf16.msra.mxu0 %v7297_v58 }
 0x181   : > { %1601 = vmatprep.subr.bf16.mxu0 %v7305_v61 }
 0x184   : > { %1602 = vmatpush1.bf16.msra.mxu0 %v7303_v63 }
 0x185   : > { %1603 = vmatprep.subr.bf16.mxu0 %v7311_v1 }
 0x188   : > { %1604 = vmatpush1.bf16.msra.mxu0 %v7309_v3 }
 0x189   : > { %1605 = vmatprep.subr.bf16.mxu0 %v7317_v5 }
 0x18c   : > { %1606 = vmatpush2.bf16.msra.mxu0 %v7315_v7 }
 0x18d   : > { %1607 = vmatprep.subr.bf16.mxu0 %v7323_v9 }
 0x190   : > { %1608 = vmatpush2.bf16.msra.mxu0 %v7321_v11 }
 0x191   : > { %1609 = vmatprep.subr.bf16.mxu0 %v7329_v13 }
 0x194   : > { %1610 = vmatpush2.bf16.msra.mxu0 %v7327_v15 }
 0x195   : > { %1611 = vmatprep.subr.bf16.mxu0 %v7335_v17 }
 0x198   : > { %1612 = vmatpush2.bf16.msra.mxu0 %v7333_v19 }
 0x199   : > { %1613 = vmatprep.subr.bf16.mxu0 %v7341_v21 }
 0x19c   : > { %1614 = vmatpush2.bf16.msra.mxu0 %v7339_v23 }
 0x19d   : > { %1615 = vmatprep.subr.bf16.mxu0 %v7347_v25 }
 0x1a0   : > { %1616 = vmatpush2.bf16.msra.mxu0 %v7345_v26 }
 0x22b   : > { %v909_v29 = vpop.f32.mrf.mxu0 }
 0x22c   : > { %v910_v30 = vadd.f32 %v6382_v28, %v909_v29  ;;  %v7348_v28 = vld [vmem:[#allocation14 + $0x148] ss:$16 sps:$4 sm:$0xff]   ;;  %v7353_v29 = vld [vmem:[#allocation14 + $0x124] ss:$16 sps:$4 sm:$0xff]  }
 0x22d   : > { %v7018_v31 = vpop.f32.mrf.mxu0  ;;  %1617 = vmatprep.subr.bf16.mxu0 %v7353_v29 }
 0x22e   : > { %vm915_vm1 = vcmp.gt.f32.partialorder %v910_v30, 0.0  ;;  %v916_v32 = vmul.f32 0.2, %v910_v30  ;;  %v7351_v31 = vld [vmem:[#allocation14 + $0x120] ss:$16 sps:$4 sm:$0xff]  }
 0x22f   : > { %v912_v33 = vpop.f32.mrf.mxu0  ;;  %1618 = vmatpush2.bf16.msra.mxu0 %v7351_v31 }
 0x230   : > { %v917_v34 = vsel %vm915_vm1, %v910_v30, %v916_v32  ;;  %v7356_v30 = vld [vmem:[#allocation14 + $0x12c] ss:$16 sps:$4 sm:$0xff]   ;;  %v7354_v32 = vld [vmem:[#allocation14 + $0x128] ss:$16 sps:$4 sm:$0xff]   ;;  %v7359_v33 = vld [vmem:[#allocation14 + $0x104] ss:$16 sps:$4 sm:$0xff]  }
 0x231   : > { %v7019_v35 = vpop.f32.mrf.mxu0  ;;  %v918_v36 = vpack.c.bf16 %v917_v34, %v917_v34  ;;  %v7362_v34 = vld [vmem:[#allocation14 + $0x10c] ss:$16 sps:$4 sm:$0xff]   ;;  %1619 = vmatprep.subr.bf16.mxu0 %v7359_v33 }
 0x232   : > { %v7357_v35 = vld [vmem:[#allocation14 + $0x100] ss:$16 sps:$4 sm:$0xff]  }
 0x233   : > { %1060 = vmatmul.mubr.bf16.vlgmr.msra.gmra.mxu1 %v918_v36  ;;  %v7360_v36 = vld [vmem:[#allocation14 + $0x108] ss:$16 sps:$4 sm:$0xff]   ;;  %1620 = vmatpush2.bf16.msra.mxu0 %v7357_v35 }
 0x234   : > { %1631 = vmatpush1.bf16.msra.mxu1 %v7270_v40  ;;  %v935_v40 = vld [vmem:[#allocation10] sm:$0x3] }
 0x235   : > { %1632 = vmatprep.subr.bf16.mxu1 %v7278_v42  ;;  %v940_v42 = vrot.slane %v935_v40, %v8755_v39  ;;  %v944_v43 = vrot.slane %v935_v40, %v8758_v41 }
 0x238   : > { %1633 = vmatpush1.bf16.msra.mxu1 %v7276_v44 }
 0x239   : > { %1634 = vmatprep.subr.bf16.mxu1 %v7284_v46 }
 0x23c   : > { %1635 = vmatpush1.bf16.msra.mxu1 %v7282_v48 }
 0x23d   : > { %1636 = vmatprep.subr.bf16.mxu1 %v7290_v50 }
 0x240   : > { %1637 = vmatpush1.bf16.msra.mxu1 %v7288_v52 }
 0x241   : > { %1638 = vmatprep.subr.bf16.mxu1 %v7296_v54 }
 0x244   : > { %1639 = vmatpush1.bf16.msra.mxu1 %v7294_v56 }
 0x245   : > { %1640 = vmatprep.subr.bf16.mxu1 %v7302_v60 }
 0x248   : > { %1641 = vmatpush1.bf16.msra.mxu1 %v7300_v59 }
 0x249   : > { %1642 = vmatprep.subr.bf16.mxu1 %v7308_v62 }
 0x24c   : > { %1643 = vmatpush1.bf16.msra.mxu1 %v7306_v0 }
 0x24d   : > { %1644 = vmatprep.subr.bf16.mxu1 %v7314_v2 }
 0x250   : > { %1645 = vmatpush1.bf16.msra.mxu1 %v7312_v4 }
 0x251   : > { %1646 = vmatprep.subr.bf16.mxu1 %v7320_v6 }
 0x254   : > { %1647 = vmatpush2.bf16.msra.mxu1 %v7318_v8 }
 0x255   : > { %1648 = vmatprep.subr.bf16.mxu1 %v7326_v10 }
 0x258   : > { %1649 = vmatpush2.bf16.msra.mxu1 %v7324_v12 }
 0x259   : > { %1650 = vmatprep.subr.bf16.mxu1 %v7332_v14 }
 0x25c   : > { %1651 = vmatpush2.bf16.msra.mxu1 %v7330_v16 }
 0x25d   : > { %1652 = vmatprep.subr.bf16.mxu1 %v7338_v18 }
 0x260   : > { %1653 = vmatpush2.bf16.msra.mxu1 %v7336_v20 }
 0x261   : > { %1654 = vmatprep.subr.bf16.mxu1 %v7344_v22  ;;  %v8356_v22 = vmov 1966171168  }
 0x262   : > { %v1113_v23 = vunpack.c.l.s4 %v8356_v22 }
 0x264   : > { %1655 = vmatpush2.bf16.msra.mxu1 %v7342_v24  ;;  %v1114_v24 = vunpack.c.0.s8 %v1113_v23 }
 0x265   : > { %1656 = vmatprep.subr.bf16.mxu1 %v7350_v27 }
 0x266   : > { %v8769_v26 = vsub.s32 %v1114_v24, %v8752_v38 }
 0x268   : > { %1657 = vmatpush2.bf16.msra.mxu1 %v7348_v28 }
 0x269   : > { %1658 = vmatprep.subr.bf16.mxu1 %v7356_v30  ;;  %v1068_v30 = vld [vmem:[#allocation11] sm:$0x3] }
 0x26c   : > { %1659 = vmatpush2.bf16.msra.mxu1 %v7354_v32 }
 0x26d   : > { %1660 = vmatprep.subr.bf16.mxu1 %v7362_v34 }
 0x270   : > { %1661 = vmatpush2.bf16.msra.mxu1 %v7360_v36 }
 0x2f3   : > { %v1061_v44 = vpop.f32.mrf.mxu1 }
 0x2f4   : > { %v8762_v45 = vadd.f32 %v1061_v44, %v940_v42  ;;  %v1069_v42 = vld [vmem:[#allocation13] sm:$0x3] }
 0x2f5   : > { %v1063_v46 = vpop.f32.mrf.mxu1 }
 0x2f6   : > { %v1070_v47 = vrot.slane %v8762_v45, 4  ;;  %v1085_v48 = vmul.f32 %v8762_v45, %v8762_v45  ;;  %v1064_v49 = vadd.f32 %v1063_v46, %v944_v43 }
 0x2f7   : > { %v1065_v50 = vpop.f32.mrf.mxu1 }
 0x2f8   : > { %v1071_v51 = vadd.f32 %v1070_v47, %v8762_v45  ;;  %v1087_v52 = vrot.slane %v1085_v48, 4  ;;  %v1076_v53 = vrot.slane %v1064_v49, 4  ;;  %v1086_v54 = vmul.f32 %v1064_v49, %v1064_v49 }
 0x2f9   : > { %v1066_v55 = vpop.f32.mrf.mxu1 }
 0x2fa   : > { %v1072_v56 = vrot.slane %v1071_v51, 2  ;;  %v1088_v57 = vadd.f32 %v1087_v52, %v1085_v48  ;;  %v1077_v58 = vadd.f32 %v1076_v53, %v1064_v49  ;;  %v1093_v59 = vrot.slane %v1086_v54, 4 }
 0x2fc   : > { %v1073_v60 = vadd.f32 %v1072_v56, %v1071_v51  ;;  %v1089_v61 = vrot.slane %v1088_v57, 2  ;;  %v1078_v62 = vrot.slane %v1077_v58, 2  ;;  %v1094_v63 = vadd.f32 %v1093_v59, %v1086_v54  ;;  %v1939_v59 = vld [vmem:[#allocation20 + $0x1e0] sm:$0xff] }
 0x2fe   : > { %v1074_v0 = vrot.slane %v1073_v60, 1  ;;  %v1090_v1 = vadd.f32 %v1089_v61, %v1088_v57  ;;  %v1079_v2 = vadd.f32 %v1078_v62, %v1077_v58  ;;  %v1095_v3 = vrot.slane %v1094_v63, 2  ;;  %v2067_v61 = vld [vmem:[#allocation20 + $0x5e0] sm:$0xff] }
 0x300   : > { %v1075_v4 = vadd.f32 %v1074_v0, %v1073_v60  ;;  %v1091_v5 = vrot.slane %v1090_v1, 1  ;;  %v1080_v6 = vrot.slane %v1079_v2, 1  ;;  %v1096_v7 = vadd.f32 %v1095_v3, %v1094_v63  ;;  %v2063_v60 = vld [vmem:[#allocation20 + $0x5c0] sm:$0xff] }
 0x301   : > { %v6655_v63 = vcombine.low %v2063_v60, %v2067_v61  ;;  %v6656_v0 = vcombine.high %v2063_v60, %v2067_v61  ;;  %v2055_v3 = vld [vmem:[#allocation20 + $0x580] sm:$0xff] }
 0x302   : > { %v1083_v8 = vmul.f32 0.125, %v1075_v4  ;;  %v1092_v9 = vadd.f32 %v1091_v5, %v1090_v1  ;;  %v1081_v10 = vadd.f32 %v1080_v6, %v1079_v2  ;;  %v1097_v11 = vrot.slane %v1096_v7, 1  ;;  %v1927_v1 = vld [vmem:[#allocation20 + $0x180] sm:$0xff] }
 0x303   : > { %3498 = vmatprep.subr.bf16.mxu1 %v6656_v0  ;;  %v1931_v2 = vld [vmem:[#allocation20 + $0x1a0] sm:$0xff] }
 0x304   : > { %v1099_v12 = vmul.f32 0.125, %v1092_v9  ;;  %v1101_v13 = vmul.f32 %v1083_v8, %v1083_v8  ;;  %v1084_v14 = vmul.f32 0.125, %v1081_v10  ;;  %v1098_v15 = vadd.f32 %v1097_v11, %v1096_v7  ;;  %v2059_v5 = vld [vmem:[#allocation20 + $0x5a0] sm:$0xff] }
 0x305   : > { %v6520_v4 = vcombine.high %v1927_v1, %v1931_v2  ;;  %v6519_v6 = vcombine.low %v1927_v1, %v1931_v2  ;;  %v6647_v7 = vcombine.low %v2055_v3, %v2059_v5  ;;  %v1919_v9 = vld [vmem:[#allocation20 + $0x140] sm:$0xff] }
 0x306   : > { %v1103_v16 = vsub.f32 %v1099_v12, %v1101_v13  ;;  %v1100_v17 = vmul.f32 0.125, %v1098_v15  ;;  %v1102_v18 = vmul.f32 %v1084_v14, %v1084_v14  ;;  %v1923_v10 = vld [vmem:[#allocation20 + $0x160] sm:$0xff] }
 0x307   : > { %v2047_v11 = vld [vmem:[#allocation20 + $0x540] sm:$0xff]  ;;  %v6512_v12 = vcombine.high %v1919_v9, %v1923_v10 }
 0x308   : > { %v1105_v19 = vadd.f32 0.8, %v1103_v16  ;;  %v1104_v20 = vsub.f32 %v1100_v17, %v1102_v18  ;;  %v2051_v13 = vld [vmem:[#allocation20 + $0x560] sm:$0xff] }
 0x309   : > { %v6639_v15 = vcombine.low %v2047_v11, %v2051_v13  ;;  %v6640_v16 = vcombine.high %v2047_v11, %v2051_v13  ;;  %v1911_v17 = vld [vmem:[#allocation20 + $0x100] sm:$0xff] }
 0x30a   : > { %v1106_v21 = vadd.f32 0.8, %v1104_v20  ;;  %7747 = vrsqrt.f32 %v1105_v19  ;;  %v1915_v18 = vld [vmem:[#allocation20 + $0x120] sm:$0xff] }
 0x30b   : > { %v2039_v19 = vld [vmem:[#allocation20 + $0x500] sm:$0xff]  ;;  %v6504_v20 = vcombine.high %v1911_v17, %v1915_v18  ;;  %v6503_v22 = vcombine.low %v1911_v17, %v1915_v18 }
 0x30c   : > { %7749 = vrsqrt.f32 %v1106_v21  ;;  %v2043_v21 = vld [vmem:[#allocation20 + $0x520] sm:$0xff] }
 0x30d   : > { %v6631_v23 = vcombine.low %v2039_v19, %v2043_v21  ;;  %v6632_v24 = vcombine.high %v2039_v19, %v2043_v21  ;;  %v1999_v61 = vld [vmem:[#allocation20 + $0x3c0] sm:$0xff] }
 0x30e   : > { %v2131_v1 = vld [vmem:[#allocation20 + $0x7e0] sm:$0xff] }
 0x30f   : > { %v1983_v13 = vld [vmem:[#allocation20 + $0x340] sm:$0xff] }
 0x310   : > { %v2115_v17 = vld [vmem:[#allocation20 + $0x760] sm:$0xff] }
 0x311   : > { %v1975_v21 = vld [vmem:[#allocation20 + $0x300] sm:$0xff] }
 0x317   : > { %v7748_v25 = vpop.eup %7747 }
 0x319   : > { %v7750_v27 = vpop.eup %7749 }
 0x31a   : > { %v1111_v28 = vcombine.low %v7748_v25, %v7750_v27  ;;  %v1903_v25 = vld [vmem:[#allocation20 + $0xc0] sm:$0xff] }
 0x31b   : > { %v1907_v27 = vld [vmem:[#allocation20 + $0xe0] sm:$0xff] }
 0x31c   : > { %v1118_v29 = vrot.slane %v1111_v28, %v8769_v26  ;;  %v2031_v28 = vld [vmem:[#allocation20 + $0x4c0] sm:$0xff] }
 0x31e   : > { %v1125_v31 = vrot.slane %v1118_v29, %v8769_v26  ;;  %v6496_v29 = vcombine.high %v1903_v25, %v1907_v27 }
 0x320   : > { %v1127_v32 = vmul.f32 %v1125_v31, %v1068_v30  ;;  %v2035_v30 = vld [vmem:[#allocation20 + $0x4e0] sm:$0xff]  ;;  %v6495_v31 = vcombine.low %v1903_v25, %v1907_v27 }
 0x321   : > { %v2107_v25 = vld [vmem:[#allocation20 + $0x720] sm:$0xff] }
 0x322   : > { %v1132_v33 = vrot.slane %v1127_v32, %v8755_v39  ;;  %v1136_v34 = vrot.slane %v1127_v32, %v8758_v41  ;;  %v6623_v32 = vcombine.low %v2031_v28, %v2035_v30 }
 0x324   : > { %v1139_v35 = vmul.f32 %v1132_v33, %v1083_v8  ;;  %v1140_v36 = vmul.f32 %v1136_v34, %v1084_v14  ;;  %v1161_v46 = vmul.f32 %v1136_v34, %v1064_v49  ;;  %v1160_v48 = vmul.f32 %v1132_v33, %v8762_v45  ;;  %v1935_v49 = vld [vmem:[#allocation20 + $0x1c0] sm:$0xff] }
 0x325   : > { %v6528_v45 = vcombine.high %v1935_v49, %v1939_v59  ;;  %v6527_v62 = vcombine.low %v1935_v49, %v1939_v59  ;;  %v6648_v8 = vcombine.high %v2055_v3, %v2059_v5  ;;  %v6511_v14 = vcombine.low %v1919_v9, %v1923_v10  ;;  %v1895_v34 = vld [vmem:[#allocation20 + $0x80] sm:$0xff] }
 0x326   : > { %v1143_v37 = vcombine.low %v1139_v35, %v1140_v36  ;;  %v6624_v33 = vcombine.high %v2031_v28, %v2035_v30  ;;  %v1899_v35 = vld [vmem:[#allocation20 + $0xa0] sm:$0xff] }
 0x327   : > { %3457 = vmatprep.subr.bf16.mxu0 %v6528_v45  ;;  %v2023_v36 = vld [vmem:[#allocation20 + $0x480] sm:$0xff] }
 0x328   : > { %v1150_v40 = vrot.slane %v1143_v37, %v8769_v26  ;;  %v6488_v37 = vcombine.high %v1895_v34, %v1899_v35  ;;  %v2011_v49 = vld [vmem:[#allocation20 + $0x420] sm:$0xff] }
 0x329   : > { %v1991_v5 = vld [vmem:[#allocation20 + $0x380] sm:$0xff] }
 0x32a   : > { %v1157_v43 = vrot.slane %v1150_v40, %v8769_v26  ;;  %v2027_v40 = vld [vmem:[#allocation20 + $0x4a0] sm:$0xff] }
 0x32b   : > { %v2123_v9 = vld [vmem:[#allocation20 + $0x7a0] sm:$0xff] }
 0x32c   : > { %v1159_v44 = vsub.f32 %v1069_v42, %v1157_v43  ;;  %v6487_v42 = vcombine.low %v1895_v34, %v1899_v35  ;;  %v6615_v43 = vcombine.low %v2023_v36, %v2027_v40  ;;  %v1967_v30 = vld [vmem:[#allocation20 + $0x2c0] sm:$0xff] }
 0x32d   : > { %v2099_v34 = vld [vmem:[#allocation20 + $0x6e0] sm:$0xff] }
 0x32e   : > { %v1170_v47 = vrot.slane %v1159_v44, %v8758_v41  ;;  %v1166_v50 = vrot.slane %v1159_v44, %v8755_v39  ;;  %v6616_v44 = vcombine.high %v2023_v36, %v2027_v40  ;;  %v1959_v40 = vld [vmem:[#allocation20 + $0x280] sm:$0xff] }
 0x330   : > { %v1174_v51 = vadd.f32 %v1170_v47, %v1161_v46  ;;  %v1173_v52 = vadd.f32 %v1166_v50, %v1160_v48  ;;  %v1887_v46 = vld [vmem:[#allocation20 + $0x40] sm:$0xff] }
 0x331   : > { %v1891_v47 = vld [vmem:[#allocation20 + $0x60] sm:$0xff] }
 0x332   : > { %vm1176_vm2 = vcmp.gt.f32.partialorder %v1174_v51, 0.0  ;;  %v1178_v53 = vmul.f32 0.2, %v1174_v51  ;;  %vm1175_vm3 = vcmp.gt.f32.partialorder %v1173_v52, 0.0  ;;  %v1177_v54 = vmul.f32 0.2, %v1173_v52 }
 0x333   : > { %v2015_v48 = vld [vmem:[#allocation20 + $0x440] sm:$0xff]  ;;  %v6480_v50 = vcombine.high %v1887_v46, %v1891_v47 }
 0x334   : > { %v1180_v55 = vsel %vm1176_vm2, %v1174_v51, %v1178_v53  ;;  %v1179_v56 = vsel %vm1175_vm3, %v1173_v52, %v1177_v54  ;;  %v2019_v51 = vld [vmem:[#allocation20 + $0x460] sm:$0xff]  ;;  %v6479_v52 = vcombine.low %v1887_v46, %v1891_v47 }
 0x335   : > { %v1182_v57 = vpack.c.bf16 %v1180_v55, %v1180_v55  ;;  %v1181_v58 = vpack.c.bf16 %v1179_v56, %v1179_v56  ;;  %v6607_v53 = vcombine.low %v2015_v48, %v2019_v51  ;;  %v6608_v54 = vcombine.high %v2015_v48, %v2019_v51  ;;  %v1879_v55 = vld [vmem:[#allocation20] sm:$0xff] }
 0x336   : > { %v1883_v56 = vld [vmem:[#allocation20 + $0x20] sm:$0xff] }
 0x337   : > { %1621 = vmatprep.mubr.bf16.mxu0 %v1182_v57  ;;  %1662 = vmatprep.mubr.bf16.mxu1 %v1182_v57  ;;  %v2007_v57 = vld [vmem:[#allocation20 + $0x400] sm:$0xff]  ;;  %v6471_v59 = vcombine.low %v1879_v55, %v1883_v56 }
 0x338   : > { %1622 = vmatmul.mubr.bf16.vlgmr.msra.gmra.mxu0 %v1181_v58  ;;  %1663 = vmatmul.mubr.bf16.vlgmr.msra.gmra.mxu1 %v1181_v58  ;;  %v6472_v58 = vcombine.high %v1879_v55, %v1883_v56  ;;  %v6599_v60 = vcombine.low %v2007_v57, %v2011_v49  ;;  %v6600_v45 = vcombine.high %v2007_v57, %v2011_v49  ;;  %v2091_v46 = vld [vmem:[#allocation20 + $0x6a0] sm:$0xff] }
 0x339   : > { %3458 = vmatpush1.bf16.msra.mxu0 %v6527_v62  ;;  %3499 = vmatpush1.bf16.msra.mxu1 %v6655_v63  ;;  %v2003_v62 = vld [vmem:[#allocation20 + $0x3e0] sm:$0xff] }
 0x33a   : > { %3459 = vmatprep.subr.bf16.mxu0 %v6520_v4  ;;  %3500 = vmatprep.subr.bf16.mxu1 %v6648_v8  ;;  %v2127_v63 = vld [vmem:[#allocation20 + $0x7c0] sm:$0xff]  ;;  %v6592_v0 = vcombine.high %v1999_v61, %v2003_v62  ;;  %v6591_v2 = vcombine.low %v1999_v61, %v2003_v62 }
 0x33b   : > { %v6719_v3 = vcombine.low %v2127_v63, %v2131_v1  ;;  %v6720_v4 = vcombine.high %v2127_v63, %v2131_v1  ;;  %v1951_v51 = vld [vmem:[#allocation20 + $0x240] sm:$0xff]  ;;  %v8780_v1 = vld [vmem:[#allocation20 + $0x1c8] sm:$0xff] }
 0x33c   : > { %v2083_v55 = vld [vmem:[#allocation20 + $0x660] sm:$0xff] }
 0x33d   : > { %3460 = vmatpush1.bf16.msra.mxu0 %v6519_v6  ;;  %3501 = vmatpush1.bf16.msra.mxu1 %v6647_v7  ;;  %v1995_v6 = vld [vmem:[#allocation20 + $0x3a0] sm:$0xff] }
 0x33e   : > { %3461 = vmatprep.subr.bf16.mxu0 %v6512_v12  ;;  %3502 = vmatprep.subr.bf16.mxu1 %v6640_v16  ;;  %v2119_v7 = vld [vmem:[#allocation20 + $0x780] sm:$0xff]  ;;  %v6584_v8 = vcombine.high %v1991_v5, %v1995_v6  ;;  %v6583_v10 = vcombine.low %v1991_v5, %v1995_v6  ;;  %v8788_v5 = vld [vmem:[#allocation20 + $0x5e8] sm:$0xff] }
 0x33f   : > { %v6711_v11 = vcombine.low %v2119_v7, %v2123_v9  ;;  %v6712_v12 = vcombine.high %v2119_v7, %v2123_v9  ;;  %v1943_v49 = vld [vmem:[#allocation20 + $0x200] sm:$0xff]  ;;  %v8797_v9 = vsub.s32 2, %v8752_v38 }
 0x340   : > { %v2075_v62 = vld [vmem:[#allocation20 + $0x620] sm:$0xff] }
 0x341   : > { %3462 = vmatpush1.bf16.msra.mxu0 %v6511_v14  ;;  %3503 = vmatpush1.bf16.msra.mxu1 %v6639_v15  ;;  %v1987_v14 = vld [vmem:[#allocation20 + $0x360] sm:$0xff] }
 0x342   : > { %3463 = vmatprep.subr.bf16.mxu0 %v6504_v20  ;;  %3504 = vmatprep.subr.bf16.mxu1 %v6632_v24  ;;  %v2111_v15 = vld [vmem:[#allocation20 + $0x740] sm:$0xff]  ;;  %v6576_v16 = vcombine.high %v1983_v13, %v1987_v14  ;;  %v6575_v18 = vcombine.low %v1983_v13, %v1987_v14 }
 0x343   : > { %v6703_v19 = vcombine.low %v2111_v15, %v2115_v17  ;;  %v6704_v20 = vcombine.high %v2111_v15, %v2115_v17 }
 0x345   : > { %3464 = vmatpush1.bf16.msra.mxu0 %v6503_v22  ;;  %3505 = vmatpush1.bf16.msra.mxu1 %v6631_v23  ;;  %v1979_v22 = vld [vmem:[#allocation20 + $0x320] sm:$0xff] }
 0x346   : > { %3465 = vmatprep.subr.bf16.mxu0 %v6496_v29  ;;  %3506 = vmatprep.subr.bf16.mxu1 %v6624_v33  ;;  %v2103_v23 = vld [vmem:[#allocation20 + $0x700] sm:$0xff]  ;;  %v6568_v24 = vcombine.high %v1975_v21, %v1979_v22  ;;  %v6567_v27 = vcombine.low %v1975_v21, %v1979_v22 }
 0x347   : > { %v6695_v28 = vcombine.low %v2103_v23, %v2107_v25  ;;  %v6696_v29 = vcombine.high %v2103_v23, %v2107_v25 }
 0x349   : > { %3466 = vmatpush1.bf16.msra.mxu0 %v6495_v31  ;;  %3507 = vmatpush1.bf16.msra.mxu1 %v6623_v32  ;;  %v1971_v31 = vld [vmem:[#allocation20 + $0x2e0] sm:$0xff] }
 0x34a   : > { %3467 = vmatprep.subr.bf16.mxu0 %v6488_v37  ;;  %3508 = vmatprep.subr.bf16.mxu1 %v6616_v44  ;;  %v2095_v32 = vld [vmem:[#allocation20 + $0x6c0] sm:$0xff]  ;;  %v6560_v33 = vcombine.high %v1967_v30, %v1971_v31  ;;  %v6559_v35 = vcombine.low %v1967_v30, %v1971_v31 }
 0x34b   : > { %v6687_v36 = vcombine.low %v2095_v32, %v2099_v34  ;;  %v6688_v37 = vcombine.high %v2095_v32, %v2099_v34 }
 0x34d   : > { %3468 = vmatpush1.bf16.msra.mxu0 %v6487_v42  ;;  %3509 = vmatpush1.bf16.msra.mxu1 %v6615_v43  ;;  %v1963_v42 = vld [vmem:[#allocation20 + $0x2a0] sm:$0xff] }
 0x34e   : > { %3469 = vmatprep.subr.bf16.mxu0 %v6480_v50  ;;  %3510 = vmatprep.subr.bf16.mxu1 %v6608_v54  ;;  %v2087_v43 = vld [vmem:[#allocation20 + $0x680] sm:$0xff]  ;;  %v6552_v44 = vcombine.high %v1959_v40, %v1963_v42  ;;  %v6551_v47 = vcombine.low %v1959_v40, %v1963_v42 }
 0x34f   : > { %v6679_v48 = vcombine.low %v2087_v43, %v2091_v46  ;;  %v6680_v50 = vcombine.high %v2087_v43, %v2091_v46 }
 0x351   : > { %3470 = vmatpush1.bf16.msra.mxu0 %v6479_v52  ;;  %3511 = vmatpush1.bf16.msra.mxu1 %v6607_v53  ;;  %v1955_v52 = vld [vmem:[#allocation20 + $0x260] sm:$0xff] }
 0x352   : > { %3471 = vmatprep.subr.bf16.mxu0 %v6472_v58  ;;  %3512 = vmatprep.subr.bf16.mxu1 %v6600_v45  ;;  %v2079_v53 = vld [vmem:[#allocation20 + $0x640] sm:$0xff]  ;;  %v6544_v54 = vcombine.high %v1951_v51, %v1955_v52  ;;  %v6543_v56 = vcombine.low %v1951_v51, %v1955_v52 }
 0x353   : > { %v6671_v57 = vcombine.low %v2079_v53, %v2083_v55  ;;  %v6672_v58 = vcombine.high %v2079_v53, %v2083_v55 }
 0x355   : > { %3472 = vmatpush1.bf16.msra.mxu0 %v6471_v59  ;;  %3513 = vmatpush1.bf16.msra.mxu1 %v6599_v60  ;;  %v1947_v59 = vld [vmem:[#allocation20 + $0x220] sm:$0xff] }
 0x356   : > { %3473 = vmatprep.subr.bf16.mxu0 %v6592_v0  ;;  %3514 = vmatprep.subr.bf16.mxu1 %v6720_v4  ;;  %v2071_v60 = vld [vmem:[#allocation20 + $0x600] sm:$0xff]  ;;  %v6535_v45 = vcombine.low %v1943_v49, %v1947_v59  ;;  %v6536_v61 = vcombine.high %v1943_v49, %v1947_v59 }
 0x357   : > { %v6663_v63 = vcombine.low %v2071_v60, %v2075_v62  ;;  %v6664_v0 = vcombine.high %v2071_v60, %v2075_v62 }
 0x359   : > { %3474 = vmatpush2.bf16.msra.mxu0 %v6591_v2  ;;  %3515 = vmatpush2.bf16.msra.mxu1 %v6719_v3  ;;  %v8782_v2 = vld [vmem:[#allocation20 + $0x1e8] sm:$0xff] }
 0x35a   : > { %3475 = vmatprep.subr.bf16.mxu0 %v6584_v8  ;;  %3516 = vmatprep.subr.bf16.mxu1 %v6712_v12  ;;  %v8784_v3 = vld [vmem:[#allocation20 + $0x5c8] sm:$0xff]  ;;  %v6530_v4 = vcombine.high %v8780_v1, %v8782_v2  ;;  %v6529_v6 = vcombine.low %v8780_v1, %v8782_v2 }
 0x35b   : > { %v6657_v7 = vcombine.low %v8784_v3, %v8788_v5  ;;  %v6658_v8 = vcombine.high %v8784_v3, %v8788_v5 }
 0x35d   : > { %3476 = vmatpush2.bf16.msra.mxu0 %v6583_v10  ;;  %3517 = vmatpush2.bf16.msra.mxu1 %v6711_v11  ;;  %v1247_v10 = vld [vmem:[#allocation16] sm:$0xf]  ;;  %v8800_v11 = vsub.s32 3, %v8752_v38 }
 0x35e   : > { %3477 = vmatprep.subr.bf16.mxu0 %v6576_v16  ;;  %3518 = vmatprep.subr.bf16.mxu1 %v6704_v20  ;;  %v1252_v12 = vrot.slane %v1247_v10, %v8755_v39  ;;  %v1260_v13 = vrot.slane %v1247_v10, %v8797_v9  ;;  %v1256_v16 = vrot.slane %v1247_v10, %v8758_v41 }
 0x35f   : > { %v1264_v17 = vrot.slane %v1247_v10, %v8800_v11 }
 0x361   : > { %3478 = vmatpush2.bf16.msra.mxu0 %v6575_v18  ;;  %3519 = vmatpush2.bf16.msra.mxu1 %v6703_v19 }
 0x362   : > { %3479 = vmatprep.subr.bf16.mxu0 %v6568_v24  ;;  %3520 = vmatprep.subr.bf16.mxu1 %v6696_v29 }
 0x365   : > { %3480 = vmatpush2.bf16.msra.mxu0 %v6567_v27  ;;  %3521 = vmatpush2.bf16.msra.mxu1 %v6695_v28 }
 0x366   : > { %3481 = vmatprep.subr.bf16.mxu0 %v6560_v33  ;;  %3522 = vmatprep.subr.bf16.mxu1 %v6688_v37 }
 0x369   : > { %3482 = vmatpush2.bf16.msra.mxu0 %v6559_v35  ;;  %3523 = vmatpush2.bf16.msra.mxu1 %v6687_v36 }
 0x36a   : > { %3483 = vmatprep.subr.bf16.mxu0 %v6552_v44  ;;  %3524 = vmatprep.subr.bf16.mxu1 %v6680_v50 }
 0x36d   : > { %3484 = vmatpush2.bf16.msra.mxu0 %v6551_v47  ;;  %3525 = vmatpush2.bf16.msra.mxu1 %v6679_v48 }
 0x36e   : > { %3485 = vmatprep.subr.bf16.mxu0 %v6544_v54  ;;  %3526 = vmatprep.subr.bf16.mxu1 %v6672_v58 }
 0x371   : > { %3486 = vmatpush2.bf16.msra.mxu0 %v6543_v56  ;;  %3527 = vmatpush2.bf16.msra.mxu1 %v6671_v57 }
 0x372   : > { %3487 = vmatprep.subr.bf16.mxu0 %v6536_v61  ;;  %3528 = vmatprep.subr.bf16.mxu1 %v6664_v0 }
 0x375   : > { %3488 = vmatpush2.bf16.msra.mxu0 %v6535_v45  ;;  %3529 = vmatpush2.bf16.msra.mxu1 %v6663_v63 }
 0x376   : > { %3539 = vmatprep.subr.bf16.mxu0 %v6530_v4  ;;  %3580 = vmatprep.subr.bf16.mxu1 %v6658_v8 }
 0x3f8   : > { %v1623_v14 = vpop.f32.mrf.mxu0  ;;  %v1664_v15 = vpop.f32.mrf.mxu1 }
 0x3f9   : > { %v8806_v18 = vadd.f32 %v1623_v14, %v1252_v12  ;;  %v8808_v19 = vadd.f32 %v1664_v15, %v1260_v13 }
 0x3fa   : > { %v1625_v20 = vpop.f32.mrf.mxu0  ;;  %v1666_v21 = vpop.f32.mrf.mxu1 }
 0x3fb   : > { %v1673_v22 = vrot.slane %v8806_v18, 4  ;;  %v1701_v23 = vmul.f32 %v8806_v18, %v8806_v18  ;;  %v1685_v24 = vrot.slane %v8808_v19, 4  ;;  %v1703_v25 = vmul.f32 %v8808_v19, %v8808_v19 }
 0x3fc   : > { %v8816_v27 = vadd.f32 %v1625_v20, %v1256_v16  ;;  %v8818_v28 = vadd.f32 %v1666_v21, %v1264_v17  ;;  %v1627_v29 = vpop.f32.mrf.mxu0  ;;  %v1668_v30 = vpop.f32.mrf.mxu1 }
 0x3fd   : > { %v1674_v31 = vadd.f32 %v1673_v22, %v8806_v18  ;;  %v1705_v32 = vrot.slane %v1701_v23, 4  ;;  %v1686_v33 = vadd.f32 %v1685_v24, %v8808_v19  ;;  %v1717_v34 = vrot.slane %v1703_v25, 4 }
 0x3fe   : > { %v1679_v35 = vrot.slane %v8816_v27, 4  ;;  %v1702_v36 = vmul.f32 %v8816_v27, %v8816_v27  ;;  %v1691_v37 = vrot.slane %v8818_v28, 4  ;;  %v1704_v40 = vmul.f32 %v8818_v28, %v8818_v28  ;;  %v1628_v42 = vpop.f32.mrf.mxu0  ;;  %v1669_v43 = vpop.f32.mrf.mxu1 }
 0x3ff   : > { %v1675_v44 = vrot.slane %v1674_v31, 2  ;;  %v1706_v46 = vadd.f32 %v1705_v32, %v1701_v23  ;;  %v1687_v47 = vrot.slane %v1686_v33, 2  ;;  %v1718_v48 = vadd.f32 %v1717_v34, %v1703_v25 }
 0x400   : > { %v1680_v50 = vadd.f32 %v1679_v35, %v8816_v27  ;;  %v1711_v51 = vrot.slane %v1702_v36, 4  ;;  %v1692_v52 = vadd.f32 %v1691_v37, %v8818_v28  ;;  %v1723_v53 = vrot.slane %v1704_v40, 4 }
 0x401   : > { %v1676_v54 = vadd.f32 %v1675_v44, %v1674_v31  ;;  %v1707_v55 = vrot.slane %v1706_v46, 2  ;;  %v1688_v56 = vadd.f32 %v1687_v47, %v1686_v33  ;;  %v1719_v57 = vrot.slane %v1718_v48, 2 }
 0x402   : > { %v1681_v58 = vrot.slane %v1680_v50, 2  ;;  %v1712_v49 = vadd.f32 %v1711_v51, %v1702_v36  ;;  %v1693_v59 = vrot.slane %v1692_v52, 2  ;;  %v1724_v60 = vadd.f32 %v1723_v53, %v1704_v40 }
 0x403   : > { %v1677_v45 = vrot.slane %v1676_v54, 1  ;;  %v1708_v61 = vadd.f32 %v1707_v55, %v1706_v46  ;;  %v1689_v62 = vrot.slane %v1688_v56, 1  ;;  %v1720_v63 = vadd.f32 %v1719_v57, %v1718_v48 }
 0x404   : > { %v1682_v0 = vadd.f32 %v1681_v58, %v1680_v50  ;;  %v1713_v4 = vrot.slane %v1712_v49, 2  ;;  %v1694_v8 = vadd.f32 %v1693_v59, %v1692_v52  ;;  %v1725_v10 = vrot.slane %v1724_v60, 2 }
 0x405   : > { %v1678_v12 = vadd.f32 %v1677_v45, %v1676_v54  ;;  %v1709_v13 = vrot.slane %v1708_v61, 1  ;;  %v1690_v14 = vadd.f32 %v1689_v62, %v1688_v56  ;;  %v1721_v15 = vrot.slane %v1720_v63, 1 }
 0x406   : > { %v1683_v16 = vrot.slane %v1682_v0, 1  ;;  %v1714_v17 = vadd.f32 %v1713_v4, %v1712_v49  ;;  %v1695_v20 = vrot.slane %v1694_v8, 1  ;;  %v1726_v21 = vadd.f32 %v1725_v10, %v1724_v60  ;;  %v1671_v4 = vld [vmem:[#allocation17] sm:$0xf] }
 0x407   : > { %v1697_v22 = vmul.f32 0.125, %v1678_v12  ;;  %v1710_v23 = vadd.f32 %v1709_v13, %v1708_v61  ;;  %v1699_v24 = vmul.f32 0.125, %v1690_v14  ;;  %v1722_v25 = vadd.f32 %v1721_v15, %v1720_v63 }
 0x408   : > { %v1684_v29 = vadd.f32 %v1683_v16, %v1682_v0  ;;  %v1715_v30 = vrot.slane %v1714_v17, 1  ;;  %v1696_v31 = vadd.f32 %v1695_v20, %v1694_v8  ;;  %v1727_v32 = vrot.slane %v1726_v21, 1 }
 0x409   : > { %v1729_v33 = vmul.f32 0.125, %v1710_v23  ;;  %v1733_v34 = vmul.f32 %v1697_v22, %v1697_v22  ;;  %v1731_v35 = vmul.f32 0.125, %v1722_v25  ;;  %v1735_v36 = vmul.f32 %v1699_v24, %v1699_v24 }
 0x40a   : > { %v1698_v37 = vmul.f32 0.125, %v1684_v29  ;;  %v1716_v40 = vadd.f32 %v1715_v30, %v1714_v17  ;;  %v1700_v42 = vmul.f32 0.125, %v1696_v31  ;;  %v1728_v43 = vadd.f32 %v1727_v32, %v1726_v21  ;;  %v1672_v32 = vld [vmem:[#allocation19] sm:$0xf] }
 0x40b   : > { %v1737_v44 = vsub.f32 %v1729_v33, %v1733_v34  ;;  %v1739_v46 = vsub.f32 %v1731_v35, %v1735_v36 }
 0x40c   : > { %v1730_v47 = vmul.f32 0.125, %v1716_v40  ;;  %v1734_v48 = vmul.f32 %v1698_v37, %v1698_v37  ;;  %v1732_v50 = vmul.f32 0.125, %v1728_v43  ;;  %v1736_v51 = vmul.f32 %v1700_v42, %v1700_v42 }
 0x40d   : > { %v1741_v52 = vadd.f32 0.8, %v1737_v44  ;;  %v1743_v53 = vadd.f32 0.8, %v1739_v46 }
 0x40e   : > { %v1738_v54 = vsub.f32 %v1730_v47, %v1734_v48  ;;  %v1740_v55 = vsub.f32 %v1732_v50, %v1736_v51  ;;  %v1928_v50 = vld [vmem:[#allocation20 + $0x188] sm:$0xff] }
 0x40f   : > { %7751 = vrsqrt.f32 %v1741_v52 }
 0x410   : > { %v1742_v56 = vadd.f32 0.8, %v1738_v54  ;;  %v1744_v57 = vadd.f32 0.8, %v1740_v55  ;;  %7753 = vrsqrt.f32 %v1743_v53  ;;  %v1932_v53 = vld [vmem:[#allocation20 + $0x1a8] sm:$0xff] }
 0x411   : > { %v2056_v54 = vld [vmem:[#allocation20 + $0x588] sm:$0xff] }
 0x412   : > { %7755 = vrsqrt.f32 %v1742_v56  ;;  %v2060_v55 = vld [vmem:[#allocation20 + $0x5a8] sm:$0xff] }
 0x413   : > { %7757 = vrsqrt.f32 %v1744_v57 }
 0x41c   : > { %v7752_v58 = vpop.eup %7751 }
 0x41d   : > { %v7754_v49 = vpop.eup %7753 }
 0x41f   : > { %v7756_v59 = vpop.eup %7755 }
 0x420   : > { %v7758_v60 = vpop.eup %7757  ;;  %v1753_v45 = vcombine.low %v7752_v58, %v7756_v59 }
 0x421   : > { %v1754_v61 = vcombine.low %v7754_v49, %v7758_v60 }
 0x422   : > { %v1761_v62 = vrot.slane %v1753_v45, %v8769_v26  ;;  %v1920_v45 = vld [vmem:[#allocation20 + $0x148] sm:$0xff] }
 0x423   : > { %v1768_v63 = vrot.slane %v1754_v61, %v8769_v26  ;;  %v6522_v61 = vcombine.high %v1928_v50, %v1932_v53 }
 0x425   : > { %v1769_v0 = vcombine.low %v1761_v62, %v1768_v63  ;;  %v6650_v62 = vcombine.high %v2056_v54, %v2060_v55  ;;  %v1924_v63 = vld [vmem:[#allocation20 + $0x168] sm:$0xff] }
 0x426   : > { %v6513_v1 = vcombine.low %v1920_v45, %v1924_v63 }
 0x427   : > { %v1776_v8 = vrot.slane %v1769_v0, %v8769_v26  ;;  %v2048_v0 = vld [vmem:[#allocation20 + $0x548] sm:$0xff] }
 0x429   : > { %v1778_v10 = vmul.f32 %v1776_v8, %v1671_v4  ;;  %v2052_v4 = vld [vmem:[#allocation20 + $0x568] sm:$0xff]  ;;  %v6521_v8 = vcombine.low %v1928_v50, %v1932_v53 }
 0x42a   : > { %v6641_v2 = vcombine.low %v2048_v0, %v2052_v4  ;;  %v2008_v50 = vld [vmem:[#allocation20 + $0x408] sm:$0xff] }
 0x42b   : > { %v1783_v12 = vrot.slane %v1778_v10, %v8755_v39  ;;  %v1787_v13 = vrot.slane %v1778_v10, %v8758_v41  ;;  %v1791_v14 = vrot.slane %v1778_v10, %v8797_v9  ;;  %v1795_v15 = vrot.slane %v1778_v10, %v8800_v11 }
 0x42c   : > { %v6649_v10 = vcombine.low %v2056_v54, %v2060_v55  ;;  %v2000_v54 = vld [vmem:[#allocation20 + $0x3c8] sm:$0xff] }
 0x42d   : > { %v1800_v16 = vmul.f32 %v1783_v12, %v1697_v22  ;;  %v1801_v17 = vmul.f32 %v1787_v13, %v1698_v37  ;;  %v1802_v20 = vmul.f32 %v1791_v14, %v1699_v24  ;;  %v1803_v21 = vmul.f32 %v1795_v15, %v1700_v42  ;;  %v2004_v55 = vld [vmem:[#allocation20 + $0x3e8] sm:$0xff] }
 0x42e   : > { %v1837_v35 = vmul.f32 %v1795_v15, %v8818_v28  ;;  %v1835_v36 = vmul.f32 %v1787_v13, %v8816_v27  ;;  %v1834_v22 = vmul.f32 %v1783_v12, %v8806_v18  ;;  %v1836_v24 = vmul.f32 %v1791_v14, %v8808_v19  ;;  %v1912_v14 = vld [vmem:[#allocation20 + $0x108] sm:$0xff] }
 0x42f   : > { %v1808_v23 = vcombine.low %v1800_v16, %v1801_v17  ;;  %v1809_v25 = vcombine.low %v1802_v20, %v1803_v21  ;;  %v6514_v12 = vcombine.high %v1920_v45, %v1924_v63  ;;  %v6642_v13 = vcombine.high %v2048_v0, %v2052_v4  ;;  %v1916_v15 = vld [vmem:[#allocation20 + $0x128] sm:$0xff] }
 0x430   : > { %v2040_v16 = vld [vmem:[#allocation20 + $0x508] sm:$0xff]  ;;  %v6506_v3 = vcombine.high %v1912_v14, %v1916_v15 }
 0x431   : > { %v1816_v29 = vrot.slane %v1808_v23, %v8769_v26  ;;  %v1823_v30 = vrot.slane %v1809_v25, %v8769_v26  ;;  %v2044_v17 = vld [vmem:[#allocation20 + $0x528] sm:$0xff]  ;;  %v6505_v23 = vcombine.low %v1912_v14, %v1916_v15 }
 0x432   : > { %v6634_v5 = vcombine.high %v2040_v16, %v2044_v17  ;;  %v2032_v20 = vld [vmem:[#allocation20 + $0x4c8] sm:$0xff]  ;;  %v6633_v25 = vcombine.low %v2040_v16, %v2044_v17 }
 0x433   : > { %v1824_v31 = vcombine.low %v1816_v29, %v1823_v30  ;;  %v2036_v21 = vld [vmem:[#allocation20 + $0x4e8] sm:$0xff] }
 0x434   : > { %v6626_v30 = vcombine.high %v2032_v20, %v2036_v21  ;;  %v1992_v0 = vld [vmem:[#allocation20 + $0x388] sm:$0xff] }
 0x435   : > { %v1831_v33 = vrot.slane %v1824_v31, %v8769_v26  ;;  %v1896_v31 = vld [vmem:[#allocation20 + $0x88] sm:$0xff] }
 0x436   : > { %v1996_v4 = vld [vmem:[#allocation20 + $0x3a8] sm:$0xff] }
 0x437   : > { %v1833_v34 = vsub.f32 %v1672_v32, %v1831_v33  ;;  %v1900_v32 = vld [vmem:[#allocation20 + $0xa8] sm:$0xff]  ;;  %v6586_v14 = vcombine.high %v1992_v0, %v1996_v4 }
 0x438   : > { %v2024_v33 = vld [vmem:[#allocation20 + $0x488] sm:$0xff] }
 0x439   : > { %v1854_v37 = vrot.slane %v1833_v34, %v8800_v11  ;;  %v1846_v40 = vrot.slane %v1833_v34, %v8758_v41  ;;  %v1842_v42 = vrot.slane %v1833_v34, %v8755_v39  ;;  %v1850_v43 = vrot.slane %v1833_v34, %v8797_v9  ;;  %v2028_v34 = vld [vmem:[#allocation20 + $0x4a8] sm:$0xff] }
 0x43a   : > { %v1984_v16 = vld [vmem:[#allocation20 + $0x348] sm:$0xff] }
 0x43b   : > { %v1862_v44 = vadd.f32 %v1854_v37, %v1837_v35  ;;  %v1860_v46 = vadd.f32 %v1846_v40, %v1835_v36  ;;  %v1859_v47 = vadd.f32 %v1842_v42, %v1834_v22  ;;  %v1861_v48 = vadd.f32 %v1850_v43, %v1836_v24  ;;  %v1888_v37 = vld [vmem:[#allocation20 + $0x48] sm:$0xff] }
 0x43c   : > { %v6625_v36 = vcombine.low %v2032_v20, %v2036_v21  ;;  %v6490_v22 = vcombine.high %v1896_v31, %v1900_v32  ;;  %v6618_v24 = vcombine.high %v2024_v33, %v2028_v34  ;;  %v1892_v40 = vld [vmem:[#allocation20 + $0x68] sm:$0xff] }
 0x43d   : > { %vm1864_vm4 = vcmp.gt.f32.partialorder %v1860_v46, 0.0  ;;  %v1868_v28 = vmul.f32 0.2, %v1860_v46  ;;  %vm1866_vm5 = vcmp.gt.f32.partialorder %v1862_v44, 0.0  ;;  %v1870_v27 = vmul.f32 0.2, %v1862_v44 }
 0x43e   : > { %vm1863_vm6 = vcmp.gt.f32.partialorder %v1859_v47, 0.0  ;;  %v1867_v18 = vmul.f32 0.2, %v1859_v47  ;;  %vm1865_vm7 = vcmp.gt.f32.partialorder %v1861_v48, 0.0  ;;  %v1869_v19 = vmul.f32 0.2, %v1861_v48 }
 0x43f   : > { %v1872_v51 = vsel %vm1864_vm4, %v1860_v46, %v1868_v28  ;;  %v1874_v52 = vsel %vm1866_vm5, %v1862_v44, %v1870_v27  ;;  %v2016_v42 = vld [vmem:[#allocation20 + $0x448] sm:$0xff]  ;;  %v6489_v44 = vcombine.low %v1896_v31, %v1900_v32  ;;  %v6617_v46 = vcombine.low %v2024_v33, %v2028_v34 }
 0x440   : > { %v8848_v56 = vpack.c.bf16 %v1872_v51, %v1872_v51  ;;  %v8850_v57 = vpack.c.bf16 %v1874_v52, %v1874_v52  ;;  %v1871_v58 = vsel %vm1863_vm6, %v1859_v47, %v1867_v18  ;;  %v1873_v49 = vsel %vm1865_vm7, %v1861_v48, %v1869_v19  ;;  %v2020_v43 = vld [vmem:[#allocation20 + $0x468] sm:$0xff] }
 0x441   : > { %v8852_v59 = vpack.c.bf16 %v1871_v58, %v1871_v58  ;;  %v8854_v60 = vpack.c.bf16 %v1873_v49, %v1873_v49  ;;  %v6482_v47 = vcombine.high %v1888_v37, %v1892_v40  ;;  %v6610_v48 = vcombine.high %v2016_v42, %v2020_v43  ;;  %v1880_v28 = vld [vmem:[#allocation20 + $0x8] sm:$0xff] }
 0x442   : > { %3489 = vmatprep.mubr.bf16.mxu0 %v8848_v56  ;;  %3530 = vmatprep.mubr.bf16.mxu1 %v8850_v57  ;;  %v1884_v27 = vld [vmem:[#allocation20 + $0x28] sm:$0xff]  ;;  %v6481_v19 = vcombine.low %v1888_v37, %v1892_v40  ;;  %v6609_v51 = vcombine.low %v2016_v42, %v2020_v43 }
 0x443   : > { %3490 = vmatmul.mubr.bf16.vlgmr.msra.gmra.mxu0 %v8852_v59  ;;  %3531 = vmatmul.mubr.bf16.vlgmr.msra.gmra.mxu1 %v8854_v60  ;;  %v2012_v18 = vld [vmem:[#allocation20 + $0x428] sm:$0xff]  ;;  %v6474_v52 = vcombine.high %v1880_v28, %v1884_v27  ;;  %v6473_v45 = vcombine.low %v1880_v28, %v1884_v27 }
 0x444   : > { %3540 = vmatpush1.bf16.msra.mxu0 %v6529_v6  ;;  %3581 = vmatpush1.bf16.msra.mxu1 %v6657_v7  ;;  %v1904_v6 = vld [vmem:[#allocation20 + $0xc8] sm:$0xff]  ;;  %v6602_v53 = vcombine.high %v2008_v50, %v2012_v18 }
 0x445   : > { %3571 = vmatprep.mubr.bf16.mxu0 %v8848_v56  ;;  %3612 = vmatprep.mubr.bf16.mxu1 %v8850_v57  ;;  %v1908_v7 = vld [vmem:[#allocation20 + $0xe8] sm:$0xff] }
 0x446   : > { %3541 = vmatprep.subr.bf16.mxu0 %v6522_v61  ;;  %3582 = vmatprep.subr.bf16.mxu1 %v6650_v62  ;;  %v6498_v29 = vcombine.high %v1904_v6, %v1908_v7  ;;  %v6497_v35 = vcombine.low %v1904_v6, %v1908_v7  ;;  %v2128_v58 = vld [vmem:[#allocation20 + $0x7c8] sm:$0xff]  ;;  %v6601_v61 = vcombine.low %v2008_v50, %v2012_v18 }
 0x447   : > { %v2132_v49 = vld [vmem:[#allocation20 + $0x7e8] sm:$0xff]  ;;  %v6594_v62 = vcombine.high %v2000_v54, %v2004_v55 }
 0x448   : > { %3542 = vmatpush1.bf16.msra.mxu0 %v6521_v8  ;;  %3583 = vmatpush1.bf16.msra.mxu1 %v6649_v10  ;;  %v6722_v63 = vcombine.high %v2128_v58, %v2132_v49  ;;  %v2120_v8 = vld [vmem:[#allocation20 + $0x788] sm:$0xff] }
 0x449   : > { %3543 = vmatprep.subr.bf16.mxu0 %v6514_v12  ;;  %3584 = vmatprep.subr.bf16.mxu1 %v6642_v13  ;;  %v2124_v10 = vld [vmem:[#allocation20 + $0x7a8] sm:$0xff]  ;;  %v6593_v12 = vcombine.low %v2000_v54, %v2004_v55  ;;  %v6721_v13 = vcombine.low %v2128_v58, %v2132_v49 }
 0x44a   : > { %v6714_v15 = vcombine.high %v2120_v8, %v2124_v10  ;;  %v1988_v17 = vld [vmem:[#allocation20 + $0x368] sm:$0xff] }
 0x44b   : > { %v6578_v6 = vcombine.high %v1984_v16, %v1988_v17  ;;  %v1976_v20 = vld [vmem:[#allocation20 + $0x308] sm:$0xff] }
 0x44c   : > { %3544 = vmatpush1.bf16.msra.mxu0 %v6513_v1  ;;  %3585 = vmatpush1.bf16.msra.mxu1 %v6641_v2  ;;  %v2112_v1 = vld [vmem:[#allocation20 + $0x748] sm:$0xff] }
 0x44d   : > { %3545 = vmatprep.subr.bf16.mxu0 %v6506_v3  ;;  %3586 = vmatprep.subr.bf16.mxu1 %v6634_v5  ;;  %v2116_v2 = vld [vmem:[#allocation20 + $0x768] sm:$0xff]  ;;  %v6585_v3 = vcombine.low %v1992_v0, %v1996_v4  ;;  %v6713_v5 = vcombine.low %v2120_v8, %v2124_v10  ;;  %v1937_v8 = vld [vmem:[#allocation20 + $0x1d0] sm:$0xff] }
 0x44e   : > { %v6706_v7 = vcombine.high %v2112_v1, %v2116_v2  ;;  %v1980_v21 = vld [vmem:[#allocation20 + $0x328] sm:$0xff]  ;;  %v1941_v10 = vld [vmem:[#allocation20 + $0x1f0] sm:$0xff] }
 0x44f   : > { %v6570_v31 = vcombine.high %v1976_v20, %v1980_v21  ;;  %v1968_v33 = vld [vmem:[#allocation20 + $0x2c8] sm:$0xff] }
 0x450   : > { %3546 = vmatpush1.bf16.msra.mxu0 %v6505_v23  ;;  %3587 = vmatpush1.bf16.msra.mxu1 %v6633_v25  ;;  %v2104_v23 = vld [vmem:[#allocation20 + $0x708] sm:$0xff] }
 0x451   : > { %3547 = vmatprep.subr.bf16.mxu0 %v6498_v29  ;;  %3588 = vmatprep.subr.bf16.mxu1 %v6626_v30  ;;  %v2108_v25 = vld [vmem:[#allocation20 + $0x728] sm:$0xff]  ;;  %v6577_v29 = vcombine.low %v1984_v16, %v1988_v17  ;;  %v6705_v30 = vcombine.low %v2112_v1, %v2116_v2  ;;  %v6532_v16 = vcombine.high %v1937_v8, %v1941_v10  ;;  %v1929_v1 = vld [vmem:[#allocation20 + $0x190] sm:$0xff] }
 0x452   : > { %v6698_v32 = vcombine.high %v2104_v23, %v2108_v25  ;;  %v1972_v34 = vld [vmem:[#allocation20 + $0x2e8] sm:$0xff]  ;;  %v1933_v2 = vld [vmem:[#allocation20 + $0x1b0] sm:$0xff] }
 0x453   : > { %v6562_v37 = vcombine.high %v1968_v33, %v1972_v34  ;;  %v1960_v42 = vld [vmem:[#allocation20 + $0x288] sm:$0xff] }
 0x454   : > { %3548 = vmatpush1.bf16.msra.mxu0 %v6497_v35  ;;  %3589 = vmatpush1.bf16.msra.mxu1 %v6625_v36  ;;  %v2096_v35 = vld [vmem:[#allocation20 + $0x6c8] sm:$0xff] }
 0x455   : > { %3549 = vmatprep.subr.bf16.mxu0 %v6490_v22  ;;  %3590 = vmatprep.subr.bf16.mxu1 %v6618_v24  ;;  %v2100_v36 = vld [vmem:[#allocation20 + $0x6e8] sm:$0xff]  ;;  %v6569_v22 = vcombine.low %v1976_v20, %v1980_v21  ;;  %v6697_v24 = vcombine.low %v2104_v23, %v2108_v25  ;;  %v6524_v20 = vcombine.high %v1929_v1, %v1933_v2  ;;  %v1921_v23 = vld [vmem:[#allocation20 + $0x150] sm:$0xff] }
 0x456   : > { %v6690_v40 = vcombine.high %v2096_v35, %v2100_v36  ;;  %v1964_v43 = vld [vmem:[#allocation20 + $0x2a8] sm:$0xff]  ;;  %v1925_v25 = vld [vmem:[#allocation20 + $0x170] sm:$0xff] }
 0x457   : > { %v6554_v28 = vcombine.high %v1960_v42, %v1964_v43  ;;  %v1952_v50 = vld [vmem:[#allocation20 + $0x248] sm:$0xff] }
 0x458   : > { %3550 = vmatpush1.bf16.msra.mxu0 %v6489_v44  ;;  %3591 = vmatpush1.bf16.msra.mxu1 %v6617_v46  ;;  %v2088_v44 = vld [vmem:[#allocation20 + $0x688] sm:$0xff] }
 0x459   : > { %3551 = vmatprep.subr.bf16.mxu0 %v6482_v47  ;;  %3592 = vmatprep.subr.bf16.mxu1 %v6610_v48  ;;  %v2092_v46 = vld [vmem:[#allocation20 + $0x6a8] sm:$0xff]  ;;  %v6561_v47 = vcombine.low %v1968_v33, %v1972_v34  ;;  %v6689_v48 = vcombine.low %v2096_v35, %v2100_v36  ;;  %v6516_v33 = vcombine.high %v1921_v23, %v1925_v25  ;;  %v1913_v35 = vld [vmem:[#allocation20 + $0x110] sm:$0xff] }
 0x45a   : > { %v6682_v27 = vcombine.high %v2088_v44, %v2092_v46  ;;  %v1956_v18 = vld [vmem:[#allocation20 + $0x268] sm:$0xff]  ;;  %v1917_v36 = vld [vmem:[#allocation20 + $0x130] sm:$0xff] }
 0x45b   : > { %v6546_v54 = vcombine.high %v1952_v50, %v1956_v18  ;;  %v1944_v58 = vld [vmem:[#allocation20 + $0x208] sm:$0xff] }
 0x45c   : > { %3552 = vmatpush1.bf16.msra.mxu0 %v6481_v19  ;;  %3593 = vmatpush1.bf16.msra.mxu1 %v6609_v51  ;;  %v2080_v19 = vld [vmem:[#allocation20 + $0x648] sm:$0xff] }
 0x45d   : > { %3553 = vmatprep.subr.bf16.mxu0 %v6474_v52  ;;  %3594 = vmatprep.subr.bf16.mxu1 %v6602_v53  ;;  %v2084_v51 = vld [vmem:[#allocation20 + $0x668] sm:$0xff]  ;;  %v6553_v52 = vcombine.low %v1960_v42, %v1964_v43  ;;  %v6681_v53 = vcombine.low %v2088_v44, %v2092_v46  ;;  %v6508_v42 = vcombine.high %v1913_v35, %v1917_v36  ;;  %v1905_v44 = vld [vmem:[#allocation20 + $0xd0] sm:$0xff] }
 0x45e   : > { %v6674_v55 = vcombine.high %v2080_v19, %v2084_v51  ;;  %v1948_v49 = vld [vmem:[#allocation20 + $0x228] sm:$0xff]  ;;  %v1909_v46 = vld [vmem:[#allocation20 + $0xf0] sm:$0xff] }
 0x45f   : > { %v6538_v0 = vcombine.high %v1944_v58, %v1948_v49 }
 0x460   : > { %3554 = vmatpush1.bf16.msra.mxu0 %v6473_v45  ;;  %3595 = vmatpush1.bf16.msra.mxu1 %v6601_v61  ;;  %v2072_v45 = vld [vmem:[#allocation20 + $0x608] sm:$0xff] }
 0x461   : > { %3555 = vmatprep.subr.bf16.mxu0 %v6594_v62  ;;  %3596 = vmatprep.subr.bf16.mxu1 %v6722_v63  ;;  %v2076_v61 = vld [vmem:[#allocation20 + $0x628] sm:$0xff]  ;;  %v6545_v62 = vcombine.low %v1952_v50, %v1956_v18  ;;  %v6673_v63 = vcombine.low %v2080_v19, %v2084_v51  ;;  %v6500_v50 = vcombine.high %v1905_v44, %v1909_v46  ;;  %v1897_v19 = vld [vmem:[#allocation20 + $0x90] sm:$0xff] }
 0x462   : > { %v6666_v4 = vcombine.high %v2072_v45, %v2076_v61  ;;  %v1901_v51 = vld [vmem:[#allocation20 + $0xb0] sm:$0xff] }
 0x464   : > { %3556 = vmatpush2.bf16.msra.mxu0 %v6593_v12  ;;  %3597 = vmatpush2.bf16.msra.mxu1 %v6721_v13  ;;  %v2065_v12 = vld [vmem:[#allocation20 + $0x5d0] sm:$0xff] }
 0x465   : > { %3557 = vmatprep.subr.bf16.mxu0 %v6586_v14  ;;  %3598 = vmatprep.subr.bf16.mxu1 %v6714_v15  ;;  %v2069_v13 = vld [vmem:[#allocation20 + $0x5f0] sm:$0xff]  ;;  %v6537_v14 = vcombine.low %v1944_v58, %v1948_v49  ;;  %v6665_v15 = vcombine.low %v2072_v45, %v2076_v61  ;;  %v6492_v58 = vcombine.high %v1897_v19, %v1901_v51 }
 0x466   : > { %v6660_v17 = vcombine.high %v2065_v12, %v2069_v13  ;;  %v1889_v45 = vld [vmem:[#allocation20 + $0x50] sm:$0xff] }
 0x467   : > { %v1893_v61 = vld [vmem:[#allocation20 + $0x70] sm:$0xff] }
 0x468   : > { %3558 = vmatpush2.bf16.msra.mxu0 %v6585_v3  ;;  %3599 = vmatpush2.bf16.msra.mxu1 %v6713_v5  ;;  %v2057_v3 = vld [vmem:[#allocation20 + $0x590] sm:$0xff] }
 0x469   : > { %3559 = vmatprep.subr.bf16.mxu0 %v6578_v6  ;;  %3600 = vmatprep.subr.bf16.mxu1 %v6706_v7  ;;  %v2061_v5 = vld [vmem:[#allocation20 + $0x5b0] sm:$0xff]  ;;  %v6531_v6 = vcombine.low %v1937_v8, %v1941_v10  ;;  %v6659_v7 = vcombine.low %v2065_v12, %v2069_v13  ;;  %v6484_v8 = vcombine.high %v1889_v45, %v1893_v61 }
 0x46a   : > { %v6652_v21 = vcombine.high %v2057_v3, %v2061_v5  ;;  %v1881_v12 = vld [vmem:[#allocation20 + $0x10] sm:$0xff] }
 0x46b   : > { %v1885_v13 = vld [vmem:[#allocation20 + $0x30] sm:$0xff] }
 0x46c   : > { %3560 = vmatpush2.bf16.msra.mxu0 %v6577_v29  ;;  %3601 = vmatpush2.bf16.msra.mxu1 %v6705_v30  ;;  %v2049_v29 = vld [vmem:[#allocation20 + $0x550] sm:$0xff] }
 0x46d   : > { %3561 = vmatprep.subr.bf16.mxu0 %v6570_v31  ;;  %3602 = vmatprep.subr.bf16.mxu1 %v6698_v32  ;;  %v2053_v30 = vld [vmem:[#allocation20 + $0x570] sm:$0xff]  ;;  %v6523_v31 = vcombine.low %v1929_v1, %v1933_v2  ;;  %v6651_v32 = vcombine.low %v2057_v3, %v2061_v5  ;;  %v6476_v1 = vcombine.high %v1881_v12, %v1885_v13 }
 0x46e   : > { %v6644_v34 = vcombine.high %v2049_v29, %v2053_v30  ;;  %v2001_v3 = vld [vmem:[#allocation20 + $0x3d0] sm:$0xff] }
 0x46f   : > { %v2005_v5 = vld [vmem:[#allocation20 + $0x3f0] sm:$0xff] }
 0x470   : > { %3562 = vmatpush2.bf16.msra.mxu0 %v6569_v22  ;;  %3603 = vmatpush2.bf16.msra.mxu1 %v6697_v24  ;;  %v2041_v22 = vld [vmem:[#allocation20 + $0x510] sm:$0xff] }
 0x471   : > { %3563 = vmatprep.subr.bf16.mxu0 %v6562_v37  ;;  %3604 = vmatprep.subr.bf16.mxu1 %v6690_v40  ;;  %v2045_v24 = vld [vmem:[#allocation20 + $0x530] sm:$0xff]  ;;  %v6515_v37 = vcombine.low %v1921_v23, %v1925_v25  ;;  %v6643_v40 = vcombine.low %v2049_v29, %v2053_v30  ;;  %v6596_v23 = vcombine.high %v2001_v3, %v2005_v5 }
 0x472   : > { %v6636_v43 = vcombine.high %v2041_v22, %v2045_v24  ;;  %v1993_v29 = vld [vmem:[#allocation20 + $0x390] sm:$0xff] }
 0x473   : > { %v1997_v30 = vld [vmem:[#allocation20 + $0x3b0] sm:$0xff] }
 0x474   : > { %3564 = vmatpush2.bf16.msra.mxu0 %v6561_v47  ;;  %3605 = vmatpush2.bf16.msra.mxu1 %v6689_v48  ;;  %v2033_v47 = vld [vmem:[#allocation20 + $0x4d0] sm:$0xff] }
 0x475   : > { %3565 = vmatprep.subr.bf16.mxu0 %v6554_v28  ;;  %3606 = vmatprep.subr.bf16.mxu1 %v6682_v27  ;;  %v2037_v48 = vld [vmem:[#allocation20 + $0x4f0] sm:$0xff]  ;;  %v6507_v28 = vcombine.low %v1913_v35, %v1917_v36  ;;  %v6635_v27 = vcombine.low %v2041_v22, %v2045_v24  ;;  %v6588_v35 = vcombine.high %v1993_v29, %v1997_v30 }
 0x476   : > { %v6628_v18 = vcombine.high %v2033_v47, %v2037_v48  ;;  %v1985_v22 = vld [vmem:[#allocation20 + $0x350] sm:$0xff] }
 0x477   : > { %v1989_v24 = vld [vmem:[#allocation20 + $0x370] sm:$0xff] }
 0x478   : > { %3566 = vmatpush2.bf16.msra.mxu0 %v6553_v52  ;;  %3607 = vmatpush2.bf16.msra.mxu1 %v6681_v53  ;;  %v2025_v52 = vld [vmem:[#allocation20 + $0x490] sm:$0xff] }
 0x479   : > { %3567 = vmatprep.subr.bf16.mxu0 %v6546_v54  ;;  %3608 = vmatprep.subr.bf16.mxu1 %v6674_v55  ;;  %v2029_v53 = vld [vmem:[#allocation20 + $0x4b0] sm:$0xff]  ;;  %v6499_v54 = vcombine.low %v1905_v44, %v1909_v46  ;;  %v6627_v55 = vcombine.low %v2033_v47, %v2037_v48  ;;  %v6580_v44 = vcombine.high %v1985_v22, %v1989_v24 }
 0x47a   : > { %v6620_v49 = vcombine.high %v2025_v52, %v2029_v53  ;;  %v1977_v47 = vld [vmem:[#allocation20 + $0x310] sm:$0xff] }
 0x47b   : > { %v1981_v48 = vld [vmem:[#allocation20 + $0x330] sm:$0xff] }
 0x47c   : > { %3568 = vmatpush2.bf16.msra.mxu0 %v6545_v62  ;;  %3609 = vmatpush2.bf16.msra.mxu1 %v6673_v63  ;;  %v2017_v62 = vld [vmem:[#allocation20 + $0x450] sm:$0xff] }
 0x47d   : > { %3569 = vmatprep.subr.bf16.mxu0 %v6538_v0  ;;  %3610 = vmatprep.subr.bf16.mxu1 %v6666_v4  ;;  %v2021_v63 = vld [vmem:[#allocation20 + $0x470] sm:$0xff]  ;;  %v6491_v0 = vcombine.low %v1897_v19, %v1901_v51  ;;  %v6619_v4 = vcombine.low %v2025_v52, %v2029_v53  ;;  %v6572_v19 = vcombine.high %v1977_v47, %v1981_v48 }
 0x47e   : > { %v6612_v10 = vcombine.high %v2017_v62, %v2021_v63  ;;  %v1969_v52 = vld [vmem:[#allocation20 + $0x2d0] sm:$0xff] }
 0x47f   : > { %v1973_v53 = vld [vmem:[#allocation20 + $0x2f0] sm:$0xff] }
 0x480   : > { %3570 = vmatpush2.bf16.msra.mxu0 %v6537_v14  ;;  %3611 = vmatpush2.bf16.msra.mxu1 %v6665_v15  ;;  %v2009_v14 = vld [vmem:[#allocation20 + $0x410] sm:$0xff] }
 0x481   : > { %3621 = vmatprep.subr.bf16.mxu0 %v6532_v16  ;;  %3662 = vmatprep.subr.bf16.mxu1 %v6660_v17  ;;  %v2013_v15 = vld [vmem:[#allocation20 + $0x430] sm:$0xff]  ;;  %v6483_v16 = vcombine.low %v1889_v45, %v1893_v61  ;;  %v6611_v17 = vcombine.low %v2017_v62, %v2021_v63  ;;  %v6564_v45 = vcombine.high %v1969_v52, %v1973_v53 }
 0x482   : > { %v6604_v2 = vcombine.high %v2009_v14, %v2013_v15  ;;  %v1961_v62 = vld [vmem:[#allocation20 + $0x290] sm:$0xff] }
 0x483   : > { %3572 = vmatmul.mubr.bf16.vlgmr.msra.gmra.mxu0 %v8852_v59  ;;  %3613 = vmatmul.mubr.bf16.vlgmr.msra.gmra.mxu1 %v8854_v60  ;;  %v1965_v63 = vld [vmem:[#allocation20 + $0x2b0] sm:$0xff] }
 0x484   : > { %3622 = vmatpush1.bf16.msra.mxu0 %v6531_v6  ;;  %3653 = vmatprep.mubr.bf16.mxu0 %v8848_v56  ;;  %v2129_v6 = vld [vmem:[#allocation20 + $0x7d0] sm:$0xff] }
 0x485   : > { %3663 = vmatpush1.bf16.msra.mxu1 %v6659_v7  ;;  %3694 = vmatprep.mubr.bf16.mxu1 %v8850_v57  ;;  %v2133_v7 = vld [vmem:[#allocation20 + $0x7f0] sm:$0xff] }
 0x486   : > { %3623 = vmatprep.subr.bf16.mxu0 %v6524_v20  ;;  %3664 = vmatprep.subr.bf16.mxu1 %v6652_v21  ;;  %v6475_v20 = vcombine.low %v1881_v12, %v1885_v13  ;;  %v6603_v21 = vcombine.low %v2009_v14, %v2013_v15  ;;  %v6724_v25 = vcombine.high %v2129_v6, %v2133_v7  ;;  %v1953_v14 = vld [vmem:[#allocation20 + $0x250] sm:$0xff] }
 0x487   : > { %v6556_v12 = vcombine.high %v1961_v62, %v1965_v63  ;;  %v1957_v15 = vld [vmem:[#allocation20 + $0x270] sm:$0xff] }
 0x488   : > { %3624 = vmatpush1.bf16.msra.mxu0 %v6523_v31  ;;  %v2121_v31 = vld [vmem:[#allocation20 + $0x790] sm:$0xff] }
 0x489   : > { %3665 = vmatpush1.bf16.msra.mxu1 %v6651_v32  ;;  %3625 = vmatprep.subr.bf16.mxu0 %v6516_v33  ;;  %v2125_v32 = vld [vmem:[#allocation20 + $0x7b0] sm:$0xff]  ;;  %v6595_v33 = vcombine.low %v2001_v3, %v2005_v5  ;;  %v6548_v3 = vcombine.high %v1953_v14, %v1957_v15 }
 0x48a   : > { %3666 = vmatprep.subr.bf16.mxu1 %v6644_v34  ;;  %v6723_v34 = vcombine.low %v2129_v6, %v2133_v7  ;;  %v6716_v36 = vcombine.high %v2121_v31, %v2125_v32  ;;  %v1945_v6 = vld [vmem:[#allocation20 + $0x210] sm:$0xff] }
 0x48b   : > { %v1949_v7 = vld [vmem:[#allocation20 + $0x230] sm:$0xff] }
 0x48c   : > { %3626 = vmatpush1.bf16.msra.mxu0 %v6515_v37  ;;  %v2113_v37 = vld [vmem:[#allocation20 + $0x750] sm:$0xff] }
 0x48d   : > { %3667 = vmatpush1.bf16.msra.mxu1 %v6643_v40  ;;  %3627 = vmatprep.subr.bf16.mxu0 %v6508_v42  ;;  %v2117_v40 = vld [vmem:[#allocation20 + $0x770] sm:$0xff]  ;;  %v6587_v42 = vcombine.low %v1993_v29, %v1997_v30  ;;  %v6540_v29 = vcombine.high %v1945_v6, %v1949_v7 }
 0x48e   : > { %3668 = vmatprep.subr.bf16.mxu1 %v6636_v43  ;;  %v6715_v43 = vcombine.low %v2121_v31, %v2125_v32  ;;  %v6708_v46 = vcombine.high %v2113_v37, %v2117_v40  ;;  %v1938_v31 = vld [vmem:[#allocation20 + $0x1d8] sm:$0xff] }
 0x48f   : > { %v1942_v32 = vld [vmem:[#allocation20 + $0x1f8] sm:$0xff] }
 0x490   : > { %3628 = vmatpush1.bf16.msra.mxu0 %v6507_v28  ;;  %v2105_v28 = vld [vmem:[#allocation20 + $0x710] sm:$0xff] }
 0x491   : > { %3669 = vmatpush1.bf16.msra.mxu1 %v6635_v27  ;;  %3629 = vmatprep.subr.bf16.mxu0 %v6500_v50  ;;  %v2109_v27 = vld [vmem:[#allocation20 + $0x730] sm:$0xff]  ;;  %v6579_v50 = vcombine.low %v1985_v22, %v1989_v24  ;;  %v6534_v22 = vcombine.high %v1938_v31, %v1942_v32 }
 0x492   : > { %3670 = vmatprep.subr.bf16.mxu1 %v6628_v18  ;;  %v6707_v18 = vcombine.low %v2113_v37, %v2117_v40  ;;  %v6700_v51 = vcombine.high %v2105_v28, %v2109_v27  ;;  %v1930_v37 = vld [vmem:[#allocation20 + $0x198] sm:$0xff] }
 0x493   : > { %v1934_v40 = vld [vmem:[#allocation20 + $0x1b8] sm:$0xff] }
 0x494   : > { %3630 = vmatpush1.bf16.msra.mxu0 %v6499_v54  ;;  %v2097_v54 = vld [vmem:[#allocation20 + $0x6d0] sm:$0xff] }
 0x495   : > { %3671 = vmatpush1.bf16.msra.mxu1 %v6627_v55  ;;  %3631 = vmatprep.subr.bf16.mxu0 %v6492_v58  ;;  %v2101_v55 = vld [vmem:[#allocation20 + $0x6f0] sm:$0xff]  ;;  %v6571_v58 = vcombine.low %v1977_v47, %v1981_v48  ;;  %v6526_v47 = vcombine.high %v1930_v37, %v1934_v40  ;;  %v1922_v48 = vld [vmem:[#allocation20 + $0x158] sm:$0xff] }
 0x496   : > { %3672 = vmatprep.subr.bf16.mxu1 %v6620_v49  ;;  %v6699_v49 = vcombine.low %v2105_v28, %v2109_v27  ;;  %v6692_v61 = vcombine.high %v2097_v54, %v2101_v55  ;;  %v1926_v28 = vld [vmem:[#allocation20 + $0x178] sm:$0xff] }
 0x498   : > { %3632 = vmatpush1.bf16.msra.mxu0 %v6491_v0  ;;  %v2089_v0 = vld [vmem:[#allocation20 + $0x690] sm:$0xff] }
 0x499   : > { %3673 = vmatpush1.bf16.msra.mxu1 %v6619_v4  ;;  %3633 = vmatprep.subr.bf16.mxu0 %v6484_v8  ;;  %v2093_v4 = vld [vmem:[#allocation20 + $0x6b0] sm:$0xff]  ;;  %v6563_v8 = vcombine.low %v1969_v52, %v1973_v53  ;;  %v6518_v52 = vcombine.high %v1922_v48, %v1926_v28 }
 0x49a   : > { %3674 = vmatprep.subr.bf16.mxu1 %v6612_v10  ;;  %v6691_v10 = vcombine.low %v2097_v54, %v2101_v55  ;;  %v6684_v13 = vcombine.high %v2089_v0, %v2093_v4  ;;  %v1914_v54 = vld [vmem:[#allocation20 + $0x118] sm:$0xff] }
 0x49b   : > { %v1918_v55 = vld [vmem:[#allocation20 + $0x138] sm:$0xff] }
 0x49c   : > { %3634 = vmatpush1.bf16.msra.mxu0 %v6483_v16  ;;  %v2081_v16 = vld [vmem:[#allocation20 + $0x650] sm:$0xff] }
 0x49d   : > { %3675 = vmatpush1.bf16.msra.mxu1 %v6611_v17  ;;  %3635 = vmatprep.subr.bf16.mxu0 %v6476_v1  ;;  %v2085_v17 = vld [vmem:[#allocation20 + $0x670] sm:$0xff]  ;;  %v6555_v1 = vcombine.low %v1961_v62, %v1965_v63  ;;  %v6510_v62 = vcombine.high %v1914_v54, %v1918_v55  ;;  %v1906_v63 = vld [vmem:[#allocation20 + $0xd8] sm:$0xff] }
 0x49e   : > { %3676 = vmatprep.subr.bf16.mxu1 %v6604_v2  ;;  %v6683_v2 = vcombine.low %v2089_v0, %v2093_v4  ;;  %v6676_v5 = vcombine.high %v2081_v16, %v2085_v17  ;;  %v1910_v0 = vld [vmem:[#allocation20 + $0xf8] sm:$0xff] }
 0x49f   : > { %v2034_v4 = vld [vmem:[#allocation20 + $0x4d8] sm:$0xff] }
 0x4a0   : > { %3636 = vmatpush1.bf16.msra.mxu0 %v6475_v20  ;;  %v2073_v20 = vld [vmem:[#allocation20 + $0x610] sm:$0xff] }
 0x4a1   : > { %3677 = vmatpush1.bf16.msra.mxu1 %v6603_v21  ;;  %3637 = vmatprep.subr.bf16.mxu0 %v6596_v23  ;;  %v2077_v21 = vld [vmem:[#allocation20 + $0x630] sm:$0xff]  ;;  %v6547_v23 = vcombine.low %v1953_v14, %v1957_v15  ;;  %v1898_v14 = vld [vmem:[#allocation20 + $0x98] sm:$0xff] }
 0x4a2   : > { %3678 = vmatprep.subr.bf16.mxu1 %v6724_v25  ;;  %v6675_v25 = vcombine.low %v2081_v16, %v2085_v17  ;;  %v6668_v30 = vcombine.high %v2073_v20, %v2077_v21  ;;  %v1902_v15 = vld [vmem:[#allocation20 + $0xb8] sm:$0xff] }
 0x4a3   : > { %v2026_v16 = vld [vmem:[#allocation20 + $0x498] sm:$0xff] }
 0x4a4   : > { %3638 = vmatpush2.bf16.msra.mxu0 %v6595_v33  ;;  %v2066_v33 = vld [vmem:[#allocation20 + $0x5d8] sm:$0xff] }
 0x4a5   : > { %3679 = vmatpush2.bf16.msra.mxu1 %v6723_v34  ;;  %3639 = vmatprep.subr.bf16.mxu0 %v6588_v35  ;;  %v2070_v34 = vld [vmem:[#allocation20 + $0x5f8] sm:$0xff]  ;;  %v6539_v35 = vcombine.low %v1945_v6, %v1949_v7 }
 0x4a6   : > { %3680 = vmatprep.subr.bf16.mxu1 %v6716_v36  ;;  %v6667_v36 = vcombine.low %v2073_v20, %v2077_v21  ;;  %v6662_v24 = vcombine.high %v2066_v33, %v2070_v34  ;;  %v2030_v17 = vld [vmem:[#allocation20 + $0x4b8] sm:$0xff] }
 0x4a7   : > { %v1890_v6 = vld [vmem:[#allocation20 + $0x58] sm:$0xff] }
 0x4a8   : > { %3640 = vmatpush2.bf16.msra.mxu0 %v6587_v42  ;;  %v6533_v42 = vcombine.low %v1938_v31, %v1942_v32  ;;  %v1894_v7 = vld [vmem:[#allocation20 + $0x78] sm:$0xff] }
 0x4a9   : > { %3681 = vmatpush2.bf16.msra.mxu1 %v6715_v43  ;;  %3641 = vmatprep.subr.bf16.mxu0 %v6580_v44  ;;  %v2058_v43 = vld [vmem:[#allocation20 + $0x598] sm:$0xff] }
 0x4aa   : > { %3682 = vmatprep.subr.bf16.mxu1 %v6708_v46  ;;  %v2062_v44 = vld [vmem:[#allocation20 + $0x5b8] sm:$0xff]  ;;  %v6661_v46 = vcombine.low %v2066_v33, %v2070_v34 }
 0x4ab   : > { %v6654_v27 = vcombine.high %v2058_v43, %v2062_v44  ;;  %v2018_v20 = vld [vmem:[#allocation20 + $0x458] sm:$0xff] }
 0x4ac   : > { %3642 = vmatpush2.bf16.msra.mxu0 %v6579_v50  ;;  %v2050_v50 = vld [vmem:[#allocation20 + $0x558] sm:$0xff] }
 0x4ad   : > { %3683 = vmatpush2.bf16.msra.mxu1 %v6707_v18  ;;  %3643 = vmatprep.subr.bf16.mxu0 %v6572_v19  ;;  %v2054_v18 = vld [vmem:[#allocation20 + $0x578] sm:$0xff]  ;;  %v6525_v19 = vcombine.low %v1930_v37, %v1934_v40 }
 0x4ae   : > { %3684 = vmatprep.subr.bf16.mxu1 %v6700_v51  ;;  %v6653_v51 = vcombine.low %v2058_v43, %v2062_v44  ;;  %v6646_v53 = vcombine.high %v2050_v50, %v2054_v18  ;;  %v2022_v21 = vld [vmem:[#allocation20 + $0x478] sm:$0xff] }
 0x4af   : > { %v1882_v31 = vld [vmem:[#allocation20 + $0x18] sm:$0xff] }
 0x4b0   : > { %3644 = vmatpush2.bf16.msra.mxu0 %v6571_v58  ;;  %v2042_v58 = vld [vmem:[#allocation20 + $0x518] sm:$0xff] }
 0x4b1   : > { %3685 = vmatpush2.bf16.msra.mxu1 %v6699_v49  ;;  %3645 = vmatprep.subr.bf16.mxu0 %v6564_v45  ;;  %v2046_v49 = vld [vmem:[#allocation20 + $0x538] sm:$0xff]  ;;  %v6517_v45 = vcombine.low %v1922_v48, %v1926_v28 }
 0x4b2   : > { %3686 = vmatprep.subr.bf16.mxu1 %v6692_v61  ;;  %v6645_v61 = vcombine.low %v2050_v50, %v2054_v18  ;;  %v1886_v32 = vld [vmem:[#allocation20 + $0x38] sm:$0xff] }
 0x4b3   : > { %v2010_v33 = vld [vmem:[#allocation20 + $0x418] sm:$0xff]  ;;  %v6477_v44 = vcombine.low %v1882_v31, %v1886_v32 }
 0x4b4   : > { %3646 = vmatpush2.bf16.msra.mxu0 %v6563_v8  ;;  %v2038_v8 = vld [vmem:[#allocation20 + $0x4f8] sm:$0xff] }
 0x4b5   : > { %3687 = vmatpush2.bf16.msra.mxu1 %v6691_v10  ;;  %3647 = vmatprep.subr.bf16.mxu0 %v6556_v12  ;;  %v6637_v10 = vcombine.low %v2042_v58, %v2046_v49  ;;  %v6502_v12 = vcombine.high %v1906_v63, %v1910_v0  ;;  %v2014_v34 = vld [vmem:[#allocation20 + $0x438] sm:$0xff] }
 0x4b6   : > { %3688 = vmatprep.subr.bf16.mxu1 %v6684_v13  ;;  %v6630_v13 = vcombine.high %v2034_v4, %v2038_v8  ;;  %v2002_v37 = vld [vmem:[#allocation20 + $0x3d8] sm:$0xff] }
 0x4b7   : > { %v2006_v40 = vld [vmem:[#allocation20 + $0x3f8] sm:$0xff] }
 0x4b8   : > { %3648 = vmatpush2.bf16.msra.mxu0 %v6555_v1  ;;  %v6501_v1 = vcombine.low %v1906_v63, %v1910_v0  ;;  %v2134_v43 = vld [vmem:[#allocation20 + $0x7f8] sm:$0xff] }
 0x4b9   : > { %3689 = vmatpush2.bf16.msra.mxu1 %v6683_v2  ;;  %3649 = vmatprep.subr.bf16.mxu0 %v6548_v3  ;;  %v6629_v2 = vcombine.low %v2034_v4, %v2038_v8  ;;  %v6494_v3 = vcombine.high %v1898_v14, %v1902_v15  ;;  %v1994_v28 = vld [vmem:[#allocation20 + $0x398] sm:$0xff] }
 0x4ba   : > { %3690 = vmatprep.subr.bf16.mxu1 %v6676_v5  ;;  %v6622_v5 = vcombine.high %v2026_v16, %v2030_v17  ;;  %v2122_v50 = vld [vmem:[#allocation20 + $0x798] sm:$0xff] }
 0x4bb   : > { %v2126_v18 = vld [vmem:[#allocation20 + $0x7b8] sm:$0xff] }
 0x4bc   : > { %3650 = vmatpush2.bf16.msra.mxu0 %v6547_v23  ;;  %v6493_v23 = vcombine.low %v1898_v14, %v1902_v15  ;;  %v1978_v63 = vld [vmem:[#allocation20 + $0x318] sm:$0xff] }
 0x4bd   : > { %3691 = vmatpush2.bf16.msra.mxu1 %v6675_v25  ;;  %3651 = vmatprep.subr.bf16.mxu0 %v6540_v29  ;;  %v6621_v25 = vcombine.low %v2026_v16, %v2030_v17  ;;  %v6486_v29 = vcombine.high %v1890_v6, %v1894_v7  ;;  %v1982_v0 = vld [vmem:[#allocation20 + $0x338] sm:$0xff] }
 0x4be   : > { %3692 = vmatprep.subr.bf16.mxu1 %v6668_v30  ;;  %v6614_v30 = vcombine.high %v2018_v20, %v2022_v21  ;;  %v2106_v4 = vld [vmem:[#allocation20 + $0x718] sm:$0xff] }
 0x4bf   : > { %v2110_v8 = vld [vmem:[#allocation20 + $0x738] sm:$0xff] }
 0x4c0   : > { %3652 = vmatpush2.bf16.msra.mxu0 %v6539_v35  ;;  %v6485_v35 = vcombine.low %v1890_v6, %v1894_v7  ;;  %v1970_v14 = vld [vmem:[#allocation20 + $0x2d8] sm:$0xff] }
 0x4c1   : > { %3693 = vmatpush2.bf16.msra.mxu1 %v6667_v36  ;;  %3703 = vmatprep.subr.bf16.mxu0 %v6534_v22  ;;  %v6613_v36 = vcombine.low %v2018_v20, %v2022_v21  ;;  %v6478_v22 = vcombine.high %v1882_v31, %v1886_v32  ;;  %v1974_v15 = vld [vmem:[#allocation20 + $0x2f8] sm:$0xff] }
 0x4c2   : > { %3744 = vmatprep.subr.bf16.mxu1 %v6662_v24  ;;  %v6606_v24 = vcombine.high %v2010_v33, %v2014_v34  ;;  %v2098_v16 = vld [vmem:[#allocation20 + $0x6d8] sm:$0xff] }
 0x4c3   : > { %3654 = vmatmul.mubr.bf16.vlgmr.msra.gmra.mxu0 %v8852_v59  ;;  %v2102_v17 = vld [vmem:[#allocation20 + $0x6f8] sm:$0xff] }
 0x4c4   : > { %3695 = vmatmul.mubr.bf16.vlgmr.msra.gmra.mxu1 %v8854_v60  ;;  %3704 = vmatpush1.bf16.msra.mxu0 %v6533_v42  ;;  %v2130_v42 = vld [vmem:[#allocation20 + $0x7d8] sm:$0xff] }
 0x4c5   : > { %3735 = vmatprep.mubr.bf16.mxu0 %v8848_v56  ;;  %3745 = vmatpush1.bf16.msra.mxu1 %v6661_v46  ;;  %v6638_v56 = vcombine.high %v2042_v58, %v2046_v49  ;;  %v6605_v46 = vcombine.low %v2010_v33, %v2014_v34  ;;  %v6726_v48 = vcombine.high %v2130_v42, %v2134_v43  ;;  %v2114_v58 = vld [vmem:[#allocation20 + $0x758] sm:$0xff] }
 0x4c6   : > { %3776 = vmatprep.mubr.bf16.mxu1 %v8850_v57  ;;  %3705 = vmatprep.subr.bf16.mxu0 %v6526_v47  ;;  %v6509_v57 = vcombine.low %v1914_v54, %v1918_v55  ;;  %v6598_v47 = vcombine.high %v2002_v37, %v2006_v40  ;;  %v1986_v54 = vld [vmem:[#allocation20 + $0x358] sm:$0xff] }
 0x4c7   : > { %3746 = vmatprep.subr.bf16.mxu1 %v6654_v27  ;;  %v1998_v27 = vld [vmem:[#allocation20 + $0x3b8] sm:$0xff] }
 0x4c8   : > { %3706 = vmatpush1.bf16.msra.mxu0 %v6525_v19  ;;  %v6597_v19 = vcombine.low %v2002_v37, %v2006_v40  ;;  %v1990_v55 = vld [vmem:[#allocation20 + $0x378] sm:$0xff] }
 0x4c9   : > { %3747 = vmatpush1.bf16.msra.mxu1 %v6653_v51  ;;  %3707 = vmatprep.subr.bf16.mxu0 %v6518_v52  ;;  %v6725_v51 = vcombine.low %v2130_v42, %v2134_v43  ;;  %v6590_v52 = vcombine.high %v1994_v28, %v1998_v27  ;;  %v2118_v49 = vld [vmem:[#allocation20 + $0x778] sm:$0xff] }
 0x4ca   : > { %3748 = vmatprep.subr.bf16.mxu1 %v6646_v53  ;;  %v6718_v53 = vcombine.high %v2122_v50, %v2126_v18  ;;  %v1962_v6 = vld [vmem:[#allocation20 + $0x298] sm:$0xff] }
 0x4cb   : > { %v1966_v7 = vld [vmem:[#allocation20 + $0x2b8] sm:$0xff] }
 0x4cc   : > { %3708 = vmatpush1.bf16.msra.mxu0 %v6517_v45  ;;  %v6589_v45 = vcombine.low %v1994_v28, %v1998_v27  ;;  %v2090_v20 = vld [vmem:[#allocation20 + $0x698] sm:$0xff] }
 0x4cd   : > { %3749 = vmatpush1.bf16.msra.mxu1 %v6645_v61  ;;  %3709 = vmatprep.subr.bf16.mxu0 %v6510_v62  ;;  %v6717_v61 = vcombine.low %v2122_v50, %v2126_v18  ;;  %v6582_v62 = vcombine.high %v1986_v54, %v1990_v55  ;;  %v2094_v21 = vld [vmem:[#allocation20 + $0x6b8] sm:$0xff]  ;;  %v8876_v50 = vld [vmem:[#allocation22] sm:$0xff] }
 0x4ce   : > { %3750 = vmatprep.subr.bf16.mxu1 %v6638_v56  ;;  %v6710_v56 = vcombine.high %v2114_v58, %v2118_v49  ;;  %v1954_v31 = vld [vmem:[#allocation20 + $0x258] sm:$0xff]  ;;  %v2140_v18 = vrot.slane %v8876_v50, %v8755_v39 }
 0x4cf   : > { %v1958_v32 = vld [vmem:[#allocation20 + $0x278] sm:$0xff] }
 0x4d0   : > { %3710 = vmatpush1.bf16.msra.mxu0 %v6509_v57  ;;  %v6581_v57 = vcombine.low %v1986_v54, %v1990_v55  ;;  %v2082_v33 = vld [vmem:[#allocation20 + $0x658] sm:$0xff] }
 0x4d1   : > { %3751 = vmatpush1.bf16.msra.mxu1 %v6637_v10  ;;  %3711 = vmatprep.subr.bf16.mxu0 %v6502_v12  ;;  %v6709_v10 = vcombine.low %v2114_v58, %v2118_v49  ;;  %v6574_v12 = vcombine.high %v1978_v63, %v1982_v0  ;;  %v2086_v34 = vld [vmem:[#allocation20 + $0x678] sm:$0xff] }
 0x4d2   : > { %3752 = vmatprep.subr.bf16.mxu1 %v6630_v13  ;;  %v6702_v13 = vcombine.high %v2106_v4, %v2110_v8  ;;  %v1946_v37 = vld [vmem:[#allocation20 + $0x218] sm:$0xff] }
 0x4d3   : > { %v1950_v40 = vld [vmem:[#allocation20 + $0x238] sm:$0xff] }
 0x4d4   : > { %3712 = vmatpush1.bf16.msra.mxu0 %v6501_v1  ;;  %v6573_v1 = vcombine.low %v1978_v63, %v1982_v0  ;;  %v2074_v42 = vld [vmem:[#allocation20 + $0x618] sm:$0xff]  ;;  %v6541_v28 = vcombine.low %v1946_v37, %v1950_v40 }
 0x4d5   : > { %3753 = vmatpush1.bf16.msra.mxu1 %v6629_v2  ;;  %3713 = vmatprep.subr.bf16.mxu0 %v6494_v3  ;;  %v6701_v2 = vcombine.low %v2106_v4, %v2110_v8  ;;  %v6566_v3 = vcombine.high %v1970_v14, %v1974_v15  ;;  %v2078_v43 = vld [vmem:[#allocation20 + $0x638] sm:$0xff] }
 0x4d6   : > { %3754 = vmatprep.subr.bf16.mxu1 %v6622_v5  ;;  %v6694_v5 = vcombine.high %v2098_v16, %v2102_v17  ;;  %v6669_v27 = vcombine.low %v2074_v42, %v2078_v43 }
 0x4d8   : > { %3714 = vmatpush1.bf16.msra.mxu0 %v6493_v23  ;;  %v6565_v23 = vcombine.low %v1970_v14, %v1974_v15 }
 0x4d9   : > { %3755 = vmatpush1.bf16.msra.mxu1 %v6621_v25  ;;  %3715 = vmatprep.subr.bf16.mxu0 %v6486_v29  ;;  %v6693_v25 = vcombine.low %v2098_v16, %v2102_v17  ;;  %v6558_v29 = vcombine.high %v1962_v6, %v1966_v7 }
 0x4da   : > { %3756 = vmatprep.subr.bf16.mxu1 %v6614_v30  ;;  %v6686_v30 = vcombine.high %v2090_v20, %v2094_v21 }
 0x4dc   : > { %3716 = vmatpush1.bf16.msra.mxu0 %v6485_v35  ;;  %v6557_v35 = vcombine.low %v1962_v6, %v1966_v7 }
 0x4dd   : > { %3757 = vmatpush1.bf16.msra.mxu1 %v6613_v36  ;;  %3717 = vmatprep.subr.bf16.mxu0 %v6478_v22  ;;  %v6685_v36 = vcombine.low %v2090_v20, %v2094_v21  ;;  %v6550_v22 = vcombine.high %v1954_v31, %v1958_v32 }
 0x4de   : > { %3758 = vmatprep.subr.bf16.mxu1 %v6606_v24  ;;  %v6678_v24 = vcombine.high %v2082_v33, %v2086_v34 }
 0x4e0   : > { %3718 = vmatpush1.bf16.msra.mxu0 %v6477_v44  ;;  %v6549_v44 = vcombine.low %v1954_v31, %v1958_v32 }
 0x4e1   : > { %3759 = vmatpush1.bf16.msra.mxu1 %v6605_v46  ;;  %3719 = vmatprep.subr.bf16.mxu0 %v6598_v47  ;;  %v6677_v46 = vcombine.low %v2082_v33, %v2086_v34  ;;  %v6542_v47 = vcombine.high %v1946_v37, %v1950_v40 }
 0x4e2   : > { %3760 = vmatprep.subr.bf16.mxu1 %v6726_v48  ;;  %v6670_v48 = vcombine.high %v2074_v42, %v2078_v43 }
 0x4e4   : > { %3720 = vmatpush2.bf16.msra.mxu0 %v6597_v19  ;;  %v2144_v19 = vrot.slane %v8876_v50, %v8758_v41 }
 0x4e5   : > { %3761 = vmatpush2.bf16.msra.mxu1 %v6725_v51  ;;  %3721 = vmatprep.subr.bf16.mxu0 %v6590_v52 }
 0x4e6   : > { %3762 = vmatprep.subr.bf16.mxu1 %v6718_v53 }
 0x4e8   : > { %3722 = vmatpush2.bf16.msra.mxu0 %v6589_v45 }
 0x4e9   : > { %3763 = vmatpush2.bf16.msra.mxu1 %v6717_v61  ;;  %3723 = vmatprep.subr.bf16.mxu0 %v6582_v62 }
 0x4ea   : > { %3764 = vmatprep.subr.bf16.mxu1 %v6710_v56 }
 0x4ec   : > { %3724 = vmatpush2.bf16.msra.mxu0 %v6581_v57 }
 0x4ed   : > { %3765 = vmatpush2.bf16.msra.mxu1 %v6709_v10  ;;  %3725 = vmatprep.subr.bf16.mxu0 %v6574_v12 }
 0x4ee   : > { %3766 = vmatprep.subr.bf16.mxu1 %v6702_v13 }
 0x4f0   : > { %3726 = vmatpush2.bf16.msra.mxu0 %v6573_v1 }
 0x4f1   : > { %3767 = vmatpush2.bf16.msra.mxu1 %v6701_v2  ;;  %3727 = vmatprep.subr.bf16.mxu0 %v6566_v3 }
 0x4f2   : > { %3768 = vmatprep.subr.bf16.mxu1 %v6694_v5 }
 0x4f4   : > { %3728 = vmatpush2.bf16.msra.mxu0 %v6565_v23 }
 0x4f5   : > { %3769 = vmatpush2.bf16.msra.mxu1 %v6693_v25  ;;  %3729 = vmatprep.subr.bf16.mxu0 %v6558_v29 }
 0x4f6   : > { %3770 = vmatprep.subr.bf16.mxu1 %v6686_v30 }
 0x4f8   : > { %3730 = vmatpush2.bf16.msra.mxu0 %v6557_v35 }
 0x4f9   : > { %3771 = vmatpush2.bf16.msra.mxu1 %v6685_v36  ;;  %3731 = vmatprep.subr.bf16.mxu0 %v6550_v22 }
 0x4fa   : > { %3772 = vmatprep.subr.bf16.mxu1 %v6678_v24 }
 0x4fc   : > { %3732 = vmatpush2.bf16.msra.mxu0 %v6549_v44 }
 0x4fd   : > { %3773 = vmatpush2.bf16.msra.mxu1 %v6677_v46  ;;  %3733 = vmatprep.subr.bf16.mxu0 %v6542_v47  ;;  %v2148_v47 = vrot.slane %v8876_v50, %v8797_v9 }
 0x4fe   : > { %3774 = vmatprep.subr.bf16.mxu1 %v6670_v48  ;;  %v2152_v48 = vrot.slane %v8876_v50, %v8800_v11 }
 0x500   : > { %3734 = vmatpush2.bf16.msra.mxu0 %v6541_v28 }
 0x501   : > { %3775 = vmatpush2.bf16.msra.mxu1 %v6669_v27 }
 0x503   : > { %3736 = vmatmul.mubr.bf16.vlgmr.msra.gmra.mxu0 %v8852_v59  ;;  %v3491_v51 = vpop.f32.mrf.mxu0  ;;  %v3532_v52 = vpop.f32.mrf.mxu1 }
 0x504   : > { %3777 = vmatmul.mubr.bf16.vlgmr.msra.gmra.mxu1 %v8854_v60  ;;  %v3492_v53 = vadd.f32 %v3491_v51, %v2140_v18 }
 0x505   : > { %v3493_v54 = vpop.f32.mrf.mxu0  ;;  %v3534_v55 = vpop.f32.mrf.mxu1 }
 0x506   : > { %v8884_v58 = vadd.f32 %v3532_v52, %v3492_v53  ;;  %v3494_v49 = vadd.f32 %v3493_v54, %v2144_v19 }
 0x507   : > { %v3495_v45 = vpop.f32.mrf.mxu0  ;;  %v3536_v61 = vpop.f32.mrf.mxu1 }
 0x508   : > { %v3787_v62 = vrot.slane %v8884_v58, 4  ;;  %v3843_v56 = vmul.f32 %v8884_v58, %v8884_v58  ;;  %v8889_v63 = vadd.f32 %v3534_v55, %v3494_v49 }
 0x509   : > { %v3496_v59 = vpop.f32.mrf.mxu0  ;;  %v3537_v0 = vpop.f32.mrf.mxu1 }
 0x50a   : > { %v3788_v4 = vadd.f32 %v3787_v62, %v8884_v58  ;;  %v3851_v60 = vrot.slane %v3843_v56, 4  ;;  %v3793_v8 = vrot.slane %v8889_v63, 4  ;;  %v3844_v57 = vmul.f32 %v8889_v63, %v8889_v63 }
 0x50c   : > { %v3789_v10 = vrot.slane %v3788_v4, 2  ;;  %v3852_v12 = vadd.f32 %v3851_v60, %v3843_v56  ;;  %v3794_v13 = vadd.f32 %v3793_v8, %v8889_v63  ;;  %v3857_v14 = vrot.slane %v3844_v57, 4 }
 0x50e   : > { %v3790_v15 = vadd.f32 %v3789_v10, %v3788_v4  ;;  %v3853_v16 = vrot.slane %v3852_v12, 2  ;;  %v3795_v17 = vrot.slane %v3794_v13, 2  ;;  %v3858_v1 = vadd.f32 %v3857_v14, %v3844_v57 }
 0x510   : > { %v3791_v2 = vrot.slane %v3790_v15, 1  ;;  %v3854_v3 = vadd.f32 %v3853_v16, %v3852_v12  ;;  %v3796_v5 = vadd.f32 %v3795_v17, %v3794_v13  ;;  %v3859_v6 = vrot.slane %v3858_v1, 2 }
 0x512   : > { %v3792_v7 = vadd.f32 %v3791_v2, %v3790_v15  ;;  %v3855_v20 = vrot.slane %v3854_v3, 1  ;;  %v3797_v21 = vrot.slane %v3796_v5, 1  ;;  %v3860_v23 = vadd.f32 %v3859_v6, %v3858_v1  ;;  %v7368_v6 = vld [vmem:[%s8746_s20 + $0x2e4] ss:$16 sps:$4 sm:$0xff]  }
 0x513   : > { %5794 = vmatprep.subr.bf16.mxu1 %v7368_v6  ;;  %v7407_v6 = vld [vmem:[%s8746_s20 + $0x4] ss:$16 sps:$4 sm:$0xff]  }
 0x514   : > { %v8896_v25 = vmul.f32 0.125, %v3792_v7  ;;  %v3856_v29 = vadd.f32 %v3855_v20, %v3854_v3  ;;  %v3798_v30 = vadd.f32 %v3797_v21, %v3796_v5  ;;  %v3861_v31 = vrot.slane %v3860_v23, 1  ;;  %v7365_v5 = vld [vmem:[%s8746_s20 + $0xe4] ss:$16 sps:$4 sm:$0xff]  }
 0x515   : > { %5753 = vmatprep.subr.bf16.mxu0 %v7365_v5 }
 0x516   : > { %v3899_v32 = vmul.f32 0.125, %v3856_v29  ;;  %v3907_v33 = vmul.f32 %v8896_v25, %v8896_v25  ;;  %v8900_v34 = vmul.f32 0.125, %v3798_v30  ;;  %v3862_v35 = vadd.f32 %v3861_v31, %v3860_v23  ;;  %v7363_v29 = vld [vmem:[%s8746_s20 + $0xe0] ss:$16 sps:$4 sm:$0xff]  }
 0x517   : > { %v7366_v30 = vld [vmem:[%s8746_s20 + $0x2e0] ss:$16 sps:$4 sm:$0xff]   ;;  %5754 = vmatpush1.bf16.msra.mxu0 %v7363_v29 }
 0x518   : > { %v3915_v36 = vsub.f32 %v3899_v32, %v3907_v33  ;;  %v3900_v22 = vmul.f32 0.125, %v3862_v35  ;;  %v3908_v24 = vmul.f32 %v8900_v34, %v8900_v34  ;;  %5795 = vmatpush1.bf16.msra.mxu1 %v7366_v30  ;;  %v7408_v29 = vld [vmem:[%s8746_s20 + $0x200] ss:$16 sps:$4 sm:$0xff]  }
 0x51a   : > { %v3923_v37 = vadd.f32 0.8, %v3915_v36  ;;  %v3916_v40 = vsub.f32 %v3900_v22, %v3908_v24  ;;  %v7371_v36 = vld [vmem:[%s8746_s20 + $0xc4] ss:$16 sps:$4 sm:$0xff]  }
 0x51b   : > { %v7374_v22 = vld [vmem:[%s8746_s20 + $0x2c4] ss:$16 sps:$4 sm:$0xff]   ;;  %5755 = vmatprep.subr.bf16.mxu0 %v7371_v36  ;;  %v7417_v36 = vld [vmem:[%s8746_s20 + $0x1c0] ss:$16 sps:$4 sm:$0xff]  }
 0x51c   : > { %v3924_v42 = vadd.f32 0.8, %v3916_v40  ;;  %7759 = vrsqrt.f32 %v3923_v37  ;;  %5796 = vmatprep.subr.bf16.mxu1 %v7374_v22  ;;  %v7420_v22 = vld [vmem:[%s8746_s20 + $0x3c0] ss:$16 sps:$4 sm:$0xff]  }
 0x51e   : > { %7761 = vrsqrt.f32 %v3924_v42 }
 0x529   : > { %v8904_v43 = vpop.eup %7759 }
 0x52b   : > { %v8906_v44 = vpop.eup %7761 }
 0x52c   : > { %v3947_v46 = vcombine.low %v8904_v43, %v8906_v44  ;;  %v7416_v43 = vld [vmem:[%s8746_s20 + $0x3e4] ss:$16 sps:$4 sm:$0xff]   ;;  %v7411_v44 = vld [vmem:[%s8746_s20 + $0x1e0] ss:$16 sps:$4 sm:$0xff]  }
 0x543   : > { %v3573_v28 = vpop.f32.mrf.mxu0  ;;  %v3614_v27 = vpop.f32.mrf.mxu1 }
 0x544   : > { %v3574_v18 = vadd.f32 %v3573_v28, %v2148_v47  ;;  %v7369_v47 = vld [vmem:[%s8746_s20 + $0xc0] ss:$16 sps:$4 sm:$0xff]  }
 0x545   : > { %v3575_v19 = vpop.f32.mrf.mxu0  ;;  %v3616_v51 = vpop.f32.mrf.mxu1  ;;  %5756 = vmatpush1.bf16.msra.mxu0 %v7369_v47  ;;  %v7426_v47 = vld [vmem:[%s8746_s20 + $0x3a0] ss:$16 sps:$4 sm:$0xff]  }
 0x546   : > { %v8914_v52 = vadd.f32 %v3614_v27, %v3574_v18  ;;  %v3576_v53 = vadd.f32 %v3575_v19, %v2152_v48  ;;  %v7372_v48 = vld [vmem:[%s8746_s20 + $0x2c0] ss:$16 sps:$4 sm:$0xff]   ;;  %v7377_v19 = vld [vmem:[%s8746_s20 + $0xa4] ss:$16 sps:$4 sm:$0xff]  }
 0x547   : > { %v3577_v54 = vpop.f32.mrf.mxu0  ;;  %v3618_v55 = vpop.f32.mrf.mxu1  ;;  %5797 = vmatpush1.bf16.msra.mxu1 %v7372_v48  ;;  %5757 = vmatprep.subr.bf16.mxu0 %v7377_v19  ;;  %v8990_v48 = vsub.s32 4, %v8752_v38  ;;  %v7429_v19 = vld [vmem:[%s8746_s20 + $0x180] ss:$16 sps:$4 sm:$0xff]  }
 0x548   : > { %v3799_v49 = vrot.slane %v8914_v52, 4  ;;  %v3845_v45 = vmul.f32 %v8914_v52, %v8914_v52  ;;  %v8919_v61 = vadd.f32 %v3616_v51, %v3576_v53  ;;  %v7380_v51 = vld [vmem:[%s8746_s20 + $0x2a4] ss:$16 sps:$4 sm:$0xff]   ;;  %v7375_v55 = vld [vmem:[%s8746_s20 + $0xa0] ss:$16 sps:$4 sm:$0xff]  }
 0x549   : > { %v3578_v62 = vpop.f32.mrf.mxu0  ;;  %v3619_v56 = vpop.f32.mrf.mxu1  ;;  %5798 = vmatprep.subr.bf16.mxu1 %v7380_v51  ;;  %5758 = vmatpush1.bf16.msra.mxu0 %v7375_v55  ;;  %v7432_v51 = vld [vmem:[%s8746_s20 + $0x380] ss:$16 sps:$4 sm:$0xff]   ;;  %v7440_v55 = vld [vmem:[%s8746_s20 + $0x364] ss:$16 sps:$4 sm:$0xff]  }
 0x54a   : > { %v3800_v59 = vadd.f32 %v3799_v49, %v8914_v52  ;;  %v3863_v0 = vrot.slane %v3845_v45, 4  ;;  %v3805_v4 = vrot.slane %v8919_v61, 4  ;;  %v3846_v60 = vmul.f32 %v8919_v61, %v8919_v61  ;;  %v7378_v49 = vld [vmem:[%s8746_s20 + $0x2a0] ss:$16 sps:$4 sm:$0xff]   ;;  %v7383_v62 = vld [vmem:[%s8746_s20 + $0x84] ss:$16 sps:$4 sm:$0xff]  }
 0x54b   : > { %5799 = vmatpush1.bf16.msra.mxu1 %v7378_v49  ;;  %v7386_v56 = vld [vmem:[%s8746_s20 + $0x284] ss:$16 sps:$4 sm:$0xff]   ;;  %5759 = vmatprep.subr.bf16.mxu0 %v7383_v62  ;;  %v7438_v62 = vld [vmem:[%s8746_s20 + $0x360] ss:$16 sps:$4 sm:$0xff]  }
 0x54c   : > { %v3801_v8 = vrot.slane %v3800_v59, 2  ;;  %v3864_v57 = vadd.f32 %v3863_v0, %v3845_v45  ;;  %v3806_v10 = vadd.f32 %v3805_v4, %v8919_v61  ;;  %v3869_v12 = vrot.slane %v3846_v60, 4  ;;  %v7384_v0 = vld [vmem:[%s8746_s20 + $0x280] ss:$16 sps:$4 sm:$0xff]   ;;  %5800 = vmatprep.subr.bf16.mxu1 %v7386_v56  ;;  %v7389_v4 = vld [vmem:[%s8746_s20 + $0x64] ss:$16 sps:$4 sm:$0xff]  }
 0x54e   : > { %v3802_v13 = vadd.f32 %v3801_v8, %v3800_v59  ;;  %v3865_v14 = vrot.slane %v3864_v57, 2  ;;  %v3807_v15 = vrot.slane %v3806_v10, 2  ;;  %v3870_v16 = vadd.f32 %v3869_v12, %v3846_v60  ;;  %v7381_v59 = vld [vmem:[%s8746_s20 + $0x80] ss:$16 sps:$4 sm:$0xff]   ;;  %v7392_v60 = vld [vmem:[%s8746_s20 + $0x264] ss:$16 sps:$4 sm:$0xff]  }
 0x54f   : > { %5760 = vmatpush1.bf16.msra.mxu0 %v7381_v59  ;;  %5801 = vmatpush1.bf16.msra.mxu1 %v7384_v0  ;;  %v7387_v8 = vld [vmem:[%s8746_s20 + $0x60] ss:$16 sps:$4 sm:$0xff]   ;;  %v7398_v12 = vld [vmem:[%s8746_s20 + $0x244] ss:$16 sps:$4 sm:$0xff]  }
 0x550   : > { %v3803_v17 = vrot.slane %v3802_v13, 1  ;;  %v3866_v1 = vadd.f32 %v3865_v14, %v3864_v57  ;;  %v3808_v2 = vadd.f32 %v3807_v15, %v3806_v10  ;;  %v3871_v3 = vrot.slane %v3870_v16, 2  ;;  %v7390_v57 = vld [vmem:[%s8746_s20 + $0x260] ss:$16 sps:$4 sm:$0xff]   ;;  %5761 = vmatprep.subr.bf16.mxu0 %v7389_v4  ;;  %5802 = vmatprep.subr.bf16.mxu1 %v7392_v60  ;;  %v7395_v10 = vld [vmem:[%s8746_s20 + $0x44] ss:$16 sps:$4 sm:$0xff]  }
 0x551   : > { %v7396_v14 = vld [vmem:[%s8746_s20 + $0x240] ss:$16 sps:$4 sm:$0xff]   ;;  %v7401_v15 = vld [vmem:[%s8746_s20 + $0x24] ss:$16 sps:$4 sm:$0xff]  }
 0x552   : > { %v3804_v7 = vadd.f32 %v3803_v17, %v3802_v13  ;;  %v3867_v20 = vrot.slane %v3866_v1, 1  ;;  %v3809_v21 = vrot.slane %v3808_v2, 1  ;;  %v3872_v23 = vadd.f32 %v3871_v3, %v3870_v16  ;;  %v7393_v13 = vld [vmem:[%s8746_s20 + $0x40] ss:$16 sps:$4 sm:$0xff]   ;;  %v7404_v16 = vld [vmem:[%s8746_s20 + $0x224] ss:$16 sps:$4 sm:$0xff]  }
 0x553   : > { %5762 = vmatpush1.bf16.msra.mxu0 %v7387_v8  ;;  %5803 = vmatpush1.bf16.msra.mxu1 %v7390_v57  ;;  %v7443_v59 = vld [vmem:[%s8746_s20 + $0x144] ss:$16 sps:$4 sm:$0xff]   ;;  %v7441_v8 = vld [vmem:[%s8746_s20 + $0x140] ss:$16 sps:$4 sm:$0xff]  }
 0x554   : > { %v8930_v31 = vmul.f32 0.125, %v3804_v7  ;;  %v3868_v32 = vadd.f32 %v3867_v20, %v3866_v1  ;;  %v3810_v33 = vadd.f32 %v3809_v21, %v3808_v2  ;;  %v3873_v35 = vrot.slane %v3872_v23, 1  ;;  %5763 = vmatprep.subr.bf16.mxu0 %v7395_v10  ;;  %5804 = vmatprep.subr.bf16.mxu1 %v7398_v12  ;;  %v7399_v1 = vld [vmem:[%s8746_s20 + $0x20] ss:$16 sps:$4 sm:$0xff]   ;;  %v7410_v7 = vld [vmem:[%s8746_s20 + $0x204] ss:$16 sps:$4 sm:$0xff]  }
 0x555   : > { %v7402_v2 = vld [vmem:[%s8746_s20 + $0x220] ss:$16 sps:$4 sm:$0xff]   ;;  %v8968_v20 = vrot.slane %v3947_v46, %v8769_v26  ;;  %v7446_v0 = vld [vmem:[%s8746_s20 + $0x344] ss:$16 sps:$4 sm:$0xff]  }
 0x556   : > { %v3901_v24 = vmul.f32 0.125, %v3868_v32  ;;  %v3909_v37 = vmul.f32 %v8930_v31, %v8930_v31  ;;  %v8936_v40 = vmul.f32 0.125, %v3810_v33  ;;  %v3874_v42 = vadd.f32 %v3873_v35, %v3872_v23  ;;  %v7405_v23 = vld [vmem:[%s8746_s20] ss:$16 sps:$4 sm:$0xff]   ;;  %v7413_v32 = vld [vmem:[%s8746_s20 + $0x1e4] ss:$16 sps:$4 sm:$0xff]  }
 0x557   : > { %5764 = vmatpush1.bf16.msra.mxu0 %v7393_v13  ;;  %5805 = vmatpush1.bf16.msra.mxu1 %v7396_v14  ;;  %v7414_v46 = vld [vmem:[%s8746_s20 + $0x3e0] ss:$16 sps:$4 sm:$0xff]   ;;  %v7419_v33 = vld [vmem:[%s8746_s20 + $0x1c4] ss:$16 sps:$4 sm:$0xff]  }
 0x558   : > { %v3917_v28 = vsub.f32 %v3901_v24, %v3909_v37  ;;  %v3902_v27 = vmul.f32 0.125, %v3874_v42  ;;  %v3910_v18 = vmul.f32 %v8936_v40, %v8936_v40  ;;  %5765 = vmatprep.subr.bf16.mxu0 %v7401_v15  ;;  %5806 = vmatprep.subr.bf16.mxu1 %v7404_v16  ;;  %v7422_v35 = vld [vmem:[%s8746_s20 + $0x3c4] ss:$16 sps:$4 sm:$0xff]   ;;  %v7423_v42 = vld [vmem:[%s8746_s20 + $0x1a0] ss:$16 sps:$4 sm:$0xff]  }
 0x559   : > { %v7425_v24 = vld [vmem:[%s8746_s20 + $0x1a4] ss:$16 sps:$4 sm:$0xff]   ;;  %v7444_v57 = vld [vmem:[%s8746_s20 + $0x340] ss:$16 sps:$4 sm:$0xff]  }
 0x55a   : > { %v3925_v53 = vadd.f32 0.8, %v3917_v28  ;;  %v3918_v54 = vsub.f32 %v3902_v27, %v3910_v18  ;;  %v7428_v37 = vld [vmem:[%s8746_s20 + $0x3a4] ss:$16 sps:$4 sm:$0xff]   ;;  %v8995_v18 = vsub.s32 5, %v8752_v38 }
 0x55b   : > { %5766 = vmatpush1.bf16.msra.mxu0 %v7399_v1  ;;  %5807 = vmatpush1.bf16.msra.mxu1 %v7402_v2  ;;  %v7431_v28 = vld [vmem:[%s8746_s20 + $0x184] ss:$16 sps:$4 sm:$0xff]  }
 0x55c   : > { %v3926_v45 = vadd.f32 0.8, %v3918_v54  ;;  %7763 = vrsqrt.f32 %v3925_v53  ;;  %5767 = vmatprep.subr.bf16.mxu0 %v7407_v6  ;;  %5808 = vmatprep.subr.bf16.mxu1 %v7410_v7  ;;  %v7434_v27 = vld [vmem:[%s8746_s20 + $0x384] ss:$16 sps:$4 sm:$0xff]   ;;  %v2156_v53 = vrot.slane %v8876_v50, %v8990_v48  ;;  %v2160_v49 = vrot.slane %v8876_v50, %v8995_v18 }
 0x55d   : > { %v7437_v54 = vld [vmem:[%s8746_s20 + $0x164] ss:$16 sps:$4 sm:$0xff]  }
 0x55e   : > { %7765 = vrsqrt.f32 %v3926_v45  ;;  %v7435_v45 = vld [vmem:[%s8746_s20 + $0x160] ss:$16 sps:$4 sm:$0xff]   ;;  %v7449_v12 = vld [vmem:[%s8746_s20 + $0x124] ss:$16 sps:$4 sm:$0xff]  }
 0x55f   : > { %5768 = vmatpush1.bf16.msra.mxu0 %v7405_v23  ;;  %5809 = vmatpush1.bf16.msra.mxu1 %v7408_v29  ;;  %v7452_v13 = vld [vmem:[%s8746_s20 + $0x324] ss:$16 sps:$4 sm:$0xff]  }
 0x560   : > { %5769 = vmatprep.subr.bf16.mxu0 %v7413_v32  ;;  %5810 = vmatprep.subr.bf16.mxu1 %v7416_v43  ;;  %v7455_v7 = vld [vmem:[%s8746_s20 + $0x104] ss:$16 sps:$4 sm:$0xff]   ;;  %v7453_v32 = vld [vmem:[%s8746_s20 + $0x100] ss:$16 sps:$4 sm:$0xff]  }
 0x561   : > { %v7458_v23 = vld [vmem:[%s8746_s20 + $0x304] ss:$16 sps:$4 sm:$0xff]   ;;  %v7456_v43 = vld [vmem:[%s8746_s20 + $0x300] ss:$16 sps:$4 sm:$0xff]  }
 0x563   : > { %5770 = vmatpush2.bf16.msra.mxu0 %v7411_v44  ;;  %5811 = vmatpush2.bf16.msra.mxu1 %v7414_v46  ;;  %v7461_v44 = vld [vmem:[%s8746_s20 + $0x4e4] ss:$16 sps:$4 sm:$0xff]  }
 0x564   : > { %5771 = vmatprep.subr.bf16.mxu0 %v7419_v33  ;;  %5812 = vmatprep.subr.bf16.mxu1 %v7422_v35  ;;  %v7464_v46 = vld [vmem:[%s8746_s20 + $0x6e4] ss:$16 sps:$4 sm:$0xff]  }
 0x567   : > { %5772 = vmatpush2.bf16.msra.mxu0 %v7417_v36  ;;  %5813 = vmatpush2.bf16.msra.mxu1 %v7420_v22 }
 0x568   : > { %5773 = vmatprep.subr.bf16.mxu0 %v7425_v24  ;;  %5814 = vmatprep.subr.bf16.mxu1 %v7428_v37 }
 0x569   : > { %v7764_v17 = vpop.eup %7763 }
 0x56b   : > { %v7766_v3 = vpop.eup %7765  ;;  %5774 = vmatpush2.bf16.msra.mxu0 %v7423_v42  ;;  %5815 = vmatpush2.bf16.msra.mxu1 %v7426_v47 }
 0x56c   : > { %v3948_v5 = vcombine.low %v7764_v17, %v7766_v3  ;;  %5775 = vmatprep.subr.bf16.mxu0 %v7431_v28  ;;  %5816 = vmatprep.subr.bf16.mxu1 %v7434_v27  ;;  %v7447_v3 = vld [vmem:[%s8746_s20 + $0x120] ss:$16 sps:$4 sm:$0xff]  }
 0x56e   : > { %v8971_v21 = vrot.slane %v3948_v5, %v8769_v26  ;;  %v7450_v5 = vld [vmem:[%s8746_s20 + $0x320] ss:$16 sps:$4 sm:$0xff]  }
 0x56f   : > { %5776 = vmatpush2.bf16.msra.mxu0 %v7429_v19  ;;  %5817 = vmatpush2.bf16.msra.mxu1 %v7432_v51 }
 0x570   : > { %v3979_v30 = vcombine.low %v8968_v20, %v8971_v21  ;;  %5777 = vmatprep.subr.bf16.mxu0 %v7437_v54  ;;  %5818 = vmatprep.subr.bf16.mxu1 %v7440_v55 }
 0x573   : > { %5778 = vmatpush2.bf16.msra.mxu0 %v7435_v45  ;;  %5819 = vmatpush2.bf16.msra.mxu1 %v7438_v62 }
 0x574   : > { %5779 = vmatprep.subr.bf16.mxu0 %v7443_v59  ;;  %5820 = vmatprep.subr.bf16.mxu1 %v7446_v0 }
 0x577   : > { %5780 = vmatpush2.bf16.msra.mxu0 %v7441_v8  ;;  %5821 = vmatpush2.bf16.msra.mxu1 %v7444_v57 }
 0x578   : > { %5781 = vmatprep.subr.bf16.mxu0 %v7449_v12  ;;  %5822 = vmatprep.subr.bf16.mxu1 %v7452_v13 }
 0x57b   : > { %5782 = vmatpush2.bf16.msra.mxu0 %v7447_v3  ;;  %5823 = vmatpush2.bf16.msra.mxu1 %v7450_v5 }
 0x57c   : > { %5783 = vmatprep.subr.bf16.mxu0 %v7455_v7  ;;  %5824 = vmatprep.subr.bf16.mxu1 %v7458_v23 }
 0x57f   : > { %5784 = vmatpush2.bf16.msra.mxu0 %v7453_v32  ;;  %5825 = vmatpush2.bf16.msra.mxu1 %v7456_v43 }
 0x580   : > { %5835 = vmatprep.subr.bf16.mxu0 %v7461_v44  ;;  %5876 = vmatprep.subr.bf16.mxu1 %v7464_v46 }
 0x583   : > { %v3655_v56 = vpop.f32.mrf.mxu0 }
 0x584   : > { %v3656_v4 = vadd.f32 %v3655_v56, %v2156_v53  ;;  %v3696_v60 = vpop.f32.mrf.mxu1  ;;  %v9034_v53 = vsub.s32 6, %v8752_v38 }
 0x585   : > { %v3657_v10 = vpop.f32.mrf.mxu0 }
 0x586   : > { %v9013_v14 = vadd.f32 %v3696_v60, %v3656_v4  ;;  %v3658_v15 = vadd.f32 %v3657_v10, %v2160_v49  ;;  %v3698_v16 = vpop.f32.mrf.mxu1  ;;  %v9037_v49 = vsub.s32 7, %v8752_v38  ;;  %v2164_v56 = vrot.slane %v8876_v50, %v9034_v53 }
 0x587   : > { %v3659_v17 = vpop.f32.mrf.mxu0 }
 0x588   : > { %v9015_v1 = vadd.f32 %v3698_v16, %v3658_v15  ;;  %v3700_v2 = vpop.f32.mrf.mxu1  ;;  %v3811_v36 = vrot.slane %v9013_v14, 4  ;;  %v3847_v22 = vmul.f32 %v9013_v14, %v9013_v14  ;;  %v2168_v4 = vrot.slane %v8876_v50, %v9037_v49 }
 0x589   : > { %v3660_v6 = vpop.f32.mrf.mxu0 }
 0x58a   : > { %v3701_v29 = vpop.f32.mrf.mxu1  ;;  %v3817_v33 = vrot.slane %v9015_v1, 4  ;;  %v3848_v35 = vmul.f32 %v9015_v1, %v9015_v1  ;;  %v3812_v42 = vadd.f32 %v3811_v36, %v9013_v14  ;;  %v3875_v47 = vrot.slane %v3847_v22, 4 }
 0x58c   : > { %v3818_v24 = vadd.f32 %v3817_v33, %v9015_v1  ;;  %v3881_v37 = vrot.slane %v3848_v35, 4  ;;  %v3813_v19 = vrot.slane %v3812_v42, 2  ;;  %v3876_v51 = vadd.f32 %v3875_v47, %v3847_v22 }
 0x58e   : > { %v3819_v28 = vrot.slane %v3818_v24, 2  ;;  %v3882_v27 = vadd.f32 %v3881_v37, %v3848_v35  ;;  %v3814_v45 = vadd.f32 %v3813_v19, %v3812_v42  ;;  %v3877_v62 = vrot.slane %v3876_v51, 2 }
 0x590   : > { %v3820_v54 = vadd.f32 %v3819_v28, %v3818_v24  ;;  %v3883_v55 = vrot.slane %v3882_v27, 2  ;;  %v3815_v60 = vrot.slane %v3814_v45, 1  ;;  %v3878_v8 = vadd.f32 %v3877_v62, %v3876_v51 }
 0x592   : > { %v3821_v59 = vrot.slane %v3820_v54, 1  ;;  %v3884_v0 = vadd.f32 %v3883_v55, %v3882_v27  ;;  %v3816_v3 = vadd.f32 %v3815_v60, %v3814_v45  ;;  %v3879_v5 = vrot.slane %v3878_v8, 1 }
 0x594   : > { %v3822_v13 = vadd.f32 %v3821_v59, %v3820_v54  ;;  %v3885_v15 = vrot.slane %v3884_v0, 1  ;;  %v9056_v24 = vmul.f32 0.125, %v3816_v3  ;;  %v3880_v37 = vadd.f32 %v3879_v5, %v3878_v8 }
 0x596   : > { %v9050_v32 = vmul.f32 0.125, %v3822_v13  ;;  %v3886_v43 = vadd.f32 %v3885_v15, %v3884_v0  ;;  %v3911_v59 = vmul.f32 %v9056_v24, %v9056_v24 }
 0x598   : > { %v3904_v19 = vmul.f32 0.125, %v3886_v43  ;;  %v3912_v51 = vmul.f32 %v9050_v32, %v9050_v32 }
 0x5c3   : > { %v3737_v57 = vpop.f32.mrf.mxu0 }
 0x5c4   : > { %v3738_v10 = vadd.f32 %v3737_v57, %v2164_v56  ;;  %v3778_v12 = vpop.f32.mrf.mxu1  ;;  %v3903_v56 = vmul.f32 0.125, %v3880_v37  ;;  %v3920_v57 = vsub.f32 %v3904_v19, %v3912_v51 }
 0x5c5   : > { %v3739_v16 = vpop.f32.mrf.mxu0 }
 0x5c6   : > { %v9043_v38 = vadd.f32 %v3778_v12, %v3738_v10  ;;  %v3740_v17 = vadd.f32 %v3739_v16, %v2168_v4  ;;  %v3780_v2 = vpop.f32.mrf.mxu1  ;;  %v3919_v16 = vsub.f32 %v3903_v56, %v3911_v59  ;;  %v3785_v59 = vld [vmem:[#allocation23] sm:$0xff] }
 0x5c7   : > { %v3741_v6 = vpop.f32.mrf.mxu0 }
 0x5c8   : > { %v3823_v7 = vrot.slane %v9043_v38, 4  ;;  %v3849_v50 = vmul.f32 %v9043_v38, %v9043_v38  ;;  %v9048_v23 = vadd.f32 %v3780_v2, %v3740_v17  ;;  %v3782_v29 = vpop.f32.mrf.mxu1  ;;  %v3928_v6 = vadd.f32 0.8, %v3920_v57 }
 0x5c9   : > { %v3742_v44 = vpop.f32.mrf.mxu0 }
 0x5ca   : > { %v3824_v46 = vadd.f32 %v3823_v7, %v9043_v38  ;;  %v3887_v33 = vrot.slane %v3849_v50, 4  ;;  %v3829_v35 = vrot.slane %v9048_v23, 4  ;;  %v3850_v36 = vmul.f32 %v9048_v23, %v9048_v23  ;;  %v3783_v22 = vpop.f32.mrf.mxu1 }
 0x5cb   : > { %v3927_v44 = vadd.f32 0.8, %v3919_v16  ;;  %7767 = vrsqrt.f32 %v3928_v6 }
 0x5cc   : > { %v3825_v42 = vrot.slane %v3824_v46, 2  ;;  %v3888_v47 = vadd.f32 %v3887_v33, %v3849_v50  ;;  %v3830_v28 = vadd.f32 %v3829_v35, %v9048_v23  ;;  %v3893_v27 = vrot.slane %v3850_v36, 4 }
 0x5cd   : > { %7769 = vrsqrt.f32 %v3927_v44 }
 0x5ce   : > { %v3826_v54 = vadd.f32 %v3825_v42, %v3824_v46  ;;  %v3889_v55 = vrot.slane %v3888_v47, 2  ;;  %v3831_v45 = vrot.slane %v3830_v28, 2  ;;  %v3894_v62 = vadd.f32 %v3893_v27, %v3850_v36 }
 0x5d0   : > { %v3827_v0 = vrot.slane %v3826_v54, 1  ;;  %v3890_v4 = vadd.f32 %v3889_v55, %v3888_v47  ;;  %v3832_v60 = vadd.f32 %v3831_v45, %v3830_v28  ;;  %v3895_v8 = vrot.slane %v3894_v62, 2 }
 0x5d2   : > { %v3828_v10 = vadd.f32 %v3827_v0, %v3826_v54  ;;  %v3891_v12 = vrot.slane %v3890_v4, 1  ;;  %v3833_v13 = vrot.slane %v3832_v60, 1  ;;  %v3896_v15 = vadd.f32 %v3895_v8, %v3894_v62 }
 0x5d3   : > { %v3987_v62 = vrot.slane %v3979_v30, %v8769_v26 }
 0x5d4   : > { %v3841_v17 = vmul.f32 0.125, %v3828_v10  ;;  %v3892_v2 = vadd.f32 %v3891_v12, %v3890_v4  ;;  %v3834_v3 = vadd.f32 %v3833_v13, %v3832_v60  ;;  %v3897_v5 = vrot.slane %v3896_v15, 1 }
 0x5d6   : > { %v3905_v7 = vmul.f32 0.125, %v3892_v2  ;;  %v3913_v50 = vmul.f32 %v3841_v17, %v3841_v17  ;;  %v3842_v29 = vmul.f32 0.125, %v3834_v3  ;;  %v3898_v43 = vadd.f32 %v3897_v5, %v3896_v15 }
 0x5d8   : > { %v3921_v46 = vsub.f32 %v3905_v7, %v3913_v50  ;;  %v3906_v33 = vmul.f32 0.125, %v3898_v43  ;;  %v3914_v35 = vmul.f32 %v3842_v29, %v3842_v29  ;;  %v7768_v42 = vpop.eup %7767 }
 0x5da   : > { %v3929_v36 = vadd.f32 0.8, %v3921_v46  ;;  %v3922_v22 = vsub.f32 %v3906_v33, %v3914_v35  ;;  %v7770_v47 = vpop.eup %7769 }
 0x5db   : > { %v3949_v27 = vcombine.low %v7770_v47, %v7768_v42 }
 0x5dc   : > { %v3930_v37 = vadd.f32 0.8, %v3922_v22  ;;  %7771 = vrsqrt.f32 %v3929_v36 }
 0x5dd   : > { %v3971_v54 = vrot.slane %v3949_v27, %v8769_v26 }
 0x5de   : > { %7773 = vrsqrt.f32 %v3930_v37 }
 0x5e9   : > { %v7772_v28 = vpop.eup %7771 }
 0x5eb   : > { %v7774_v19 = vpop.eup %7773 }
 0x5ec   : > { %v3950_v51 = vcombine.low %v7772_v28, %v7774_v19 }
 0x5ee   : > { %v3978_v55 = vrot.slane %v3950_v51, %v8769_v26 }
 0x5f0   : > { %v3980_v45 = vcombine.low %v3971_v54, %v3978_v55 }
 0x5f2   : > { %v3994_v56 = vrot.slane %v3980_v45, %v8769_v26 }
 0x5f4   : > { %v3995_v0 = vcombine.low %v3987_v62, %v3994_v56 }
 0x5f6   : > { %v3997_v4 = vmul.f32 %v3995_v0, %v3785_v59 }
 0x5f8   : > { %v4018_v60 = vrot.slane %v3997_v4, %v8990_v48  ;;  %v4022_v8 = vrot.slane %v3997_v4, %v8995_v18  ;;  %v4026_v57 = vrot.slane %v3997_v4, %v9034_v53  ;;  %v4030_v10 = vrot.slane %v3997_v4, %v9037_v49 }
 0x5f9   : > { %v4002_v12 = vrot.slane %v3997_v4, %v8755_v39  ;;  %v4006_v13 = vrot.slane %v3997_v4, %v8758_v41  ;;  %v4010_v20 = vrot.slane %v3997_v4, %v8797_v9  ;;  %v4014_v21 = vrot.slane %v3997_v4, %v8800_v11 }
 0x5fa   : > { %v4043_v30 = vmul.f32 %v4018_v60, %v9056_v24  ;;  %v4044_v15 = vmul.f32 %v4022_v8, %v9050_v32  ;;  %v4045_v16 = vmul.f32 %v4026_v57, %v3841_v17  ;;  %v4046_v2 = vmul.f32 %v4030_v10, %v3842_v29 }
 0x5fb   : > { %v4113_v3 = vmul.f32 %v4030_v10, %v9048_v23  ;;  %v4039_v5 = vmul.f32 %v4002_v12, %v8896_v25  ;;  %v4040_v6 = vmul.f32 %v4006_v13, %v8900_v34  ;;  %v4041_v7 = vmul.f32 %v4010_v20, %v8930_v31 }
 0x5fc   : > { %v4057_v50 = vcombine.low %v4043_v30, %v4044_v15  ;;  %v4058_v43 = vcombine.low %v4045_v16, %v4046_v2  ;;  %v4042_v44 = vmul.f32 %v4014_v21, %v8936_v40  ;;  %v4107_v46 = vmul.f32 %v4006_v13, %v8889_v63  ;;  %v7462_v13 = vld [vmem:[%s8746_s20 + $0x6e0] ss:$16 sps:$4 sm:$0xff]   ;;  %v7467_v2 = vld [vmem:[%s8746_s20 + $0x4c4] ss:$16 sps:$4 sm:$0xff]  }
 0x5fd   : > { %v4055_v33 = vcombine.low %v4039_v5, %v4040_v6  ;;  %v4109_v24 = vmul.f32 %v4014_v21, %v8919_v61  ;;  %v4106_v32 = vmul.f32 %v4002_v12, %v8884_v58  ;;  %v4108_v17 = vmul.f32 %v4010_v20, %v8914_v52  ;;  %v3786_v58 = vld [vmem:[#allocation25] sm:$0xff]  ;;  %v7459_v12 = vld [vmem:[%s8746_s20 + $0x4e0] ss:$16 sps:$4 sm:$0xff]   ;;  %v7470_v5 = vld [vmem:[%s8746_s20 + $0x6c4] ss:$16 sps:$4 sm:$0xff]  }
 0x5fe   : > { %v4079_v23 = vrot.slane %v4057_v50, %v8769_v26  ;;  %v4086_v25 = vrot.slane %v4058_v43, %v8769_v26  ;;  %v4056_v34 = vcombine.low %v4041_v7, %v4042_v44  ;;  %v4112_v29 = vmul.f32 %v4026_v57, %v9043_v38  ;;  %v7465_v50 = vld [vmem:[%s8746_s20 + $0x4c0] ss:$16 sps:$4 sm:$0xff]  }
 0x5ff   : > { %v4065_v31 = vrot.slane %v4055_v33, %v8769_v26  ;;  %v4111_v37 = vmul.f32 %v4022_v8, %v9015_v1  ;;  %v4110_v42 = vmul.f32 %v4018_v60, %v9013_v14  ;;  %v7468_v43 = vld [vmem:[%s8746_s20 + $0x6c0] ss:$16 sps:$4 sm:$0xff]   ;;  %v7476_v33 = vld [vmem:[%s8746_s20 + $0x6a4] ss:$16 sps:$4 sm:$0xff]  }
 0x600   : > { %v4088_v35 = vcombine.low %v4079_v23, %v4086_v25  ;;  %v4072_v40 = vrot.slane %v4056_v34, %v8769_v26  ;;  %v7482_v23 = vld [vmem:[%s8746_s20 + $0x684] ss:$16 sps:$4 sm:$0xff]   ;;  %v7477_v25 = vld [vmem:[%s8746_s20 + $0x480] ss:$16 sps:$4 sm:$0xff]  }
 0x601   : > { %v7480_v34 = vld [vmem:[%s8746_s20 + $0x680] ss:$16 sps:$4 sm:$0xff]  }
 0x602   : > { %v4102_v63 = vrot.slane %v4088_v35, %v8769_v26  ;;  %v4087_v36 = vcombine.low %v4065_v31, %v4072_v40  ;;  %v7485_v31 = vld [vmem:[%s8746_s20 + $0x464] ss:$16 sps:$4 sm:$0xff]   ;;  %v7483_v35 = vld [vmem:[%s8746_s20 + $0x460] ss:$16 sps:$4 sm:$0xff]  }
 0x603   : > { %v7486_v40 = vld [vmem:[%s8746_s20 + $0x660] ss:$16 sps:$4 sm:$0xff]  }
 0x604   : > { %v4095_v61 = vrot.slane %v4087_v36, %v8769_v26  ;;  %v7494_v36 = vld [vmem:[%s8746_s20 + $0x644] ss:$16 sps:$4 sm:$0xff]  }
 0x606   : > { %v4103_v22 = vcombine.low %v4095_v61, %v4102_v63  ;;  %v7491_v63 = vld [vmem:[%s8746_s20 + $0x444] ss:$16 sps:$4 sm:$0xff]   ;;  %v7489_v61 = vld [vmem:[%s8746_s20 + $0x440] ss:$16 sps:$4 sm:$0xff]  }
 0x608   : > { %v4105_v52 = vsub.f32 %v3786_v58, %v4103_v22  ;;  %v7492_v58 = vld [vmem:[%s8746_s20 + $0x640] ss:$16 sps:$4 sm:$0xff]   ;;  %v7497_v22 = vld [vmem:[%s8746_s20 + $0x424] ss:$16 sps:$4 sm:$0xff]  }
 0x60a   : > { %v4122_v47 = vrot.slane %v4105_v52, %v8758_v41  ;;  %v4130_v28 = vrot.slane %v4105_v52, %v8800_v11  ;;  %v4118_v38 = vrot.slane %v4105_v52, %v8755_v39  ;;  %v4126_v27 = vrot.slane %v4105_v52, %v8797_v9 }
 0x60b   : > { %v4138_v19 = vrot.slane %v4105_v52, %v8995_v18  ;;  %v4146_v51 = vrot.slane %v4105_v52, %v9037_v49  ;;  %v4134_v26 = vrot.slane %v4105_v52, %v8990_v48  ;;  %v4142_v54 = vrot.slane %v4105_v52, %v9034_v53  ;;  %v7500_v52 = vld [vmem:[%s8746_s20 + $0x624] ss:$16 sps:$4 sm:$0xff]  }
 0x60c   : > { %v4156_v55 = vadd.f32 %v4122_v47, %v4107_v46  ;;  %v4158_v1 = vadd.f32 %v4130_v28, %v4109_v24  ;;  %v4155_v45 = vadd.f32 %v4118_v38, %v4106_v32  ;;  %v4157_v14 = vadd.f32 %v4126_v27, %v4108_v17  ;;  %v7473_v46 = vld [vmem:[%s8746_s20 + $0x4a4] ss:$16 sps:$4 sm:$0xff]   ;;  %v7471_v24 = vld [vmem:[%s8746_s20 + $0x4a0] ss:$16 sps:$4 sm:$0xff]  }
 0x60d   : > { %v4160_v62 = vadd.f32 %v4138_v19, %v4111_v37  ;;  %v4162_v56 = vadd.f32 %v4146_v51, %v4113_v3  ;;  %v9106_v59 = vadd.f32 %v4134_v26, %v4110_v42  ;;  %v9108_v0 = vadd.f32 %v4142_v54, %v4112_v29  ;;  %v7474_v32 = vld [vmem:[%s8746_s20 + $0x6a0] ss:$16 sps:$4 sm:$0xff]   ;;  %v7479_v17 = vld [vmem:[%s8746_s20 + $0x484] ss:$16 sps:$4 sm:$0xff]  }
 0x60e   : > { %vm4164_vm8 = vcmp.gt.f32.partialorder %v4156_v55, 0.0  ;;  %v4172_v18 = vmul.f32 0.2, %v4156_v55  ;;  %vm4166_vm9 = vcmp.gt.f32.partialorder %v4158_v1, 0.0  ;;  %v4174_v49 = vmul.f32 0.2, %v4158_v1 }
 0x60f   : > { %vm4163_vm10 = vcmp.gt.f32.partialorder %v4155_v45, 0.0  ;;  %v4171_v48 = vmul.f32 0.2, %v4155_v45  ;;  %vm4165_vm11 = vcmp.gt.f32.partialorder %v4157_v14, 0.0  ;;  %v4173_v53 = vmul.f32 0.2, %v4157_v14 }
 0x610   : > { %v4180_v4 = vsel %vm4164_vm8, %v4156_v55, %v4172_v18  ;;  %v4182_v60 = vsel %vm4166_vm9, %v4158_v1, %v4174_v49  ;;  %vm4168_vm12 = vcmp.gt.f32.partialorder %v4160_v62, 0.0  ;;  %v4176_v8 = vmul.f32 0.2, %v4160_v62  ;;  %v7488_v29 = vld [vmem:[%s8746_s20 + $0x664] ss:$16 sps:$4 sm:$0xff]  }
 0x611   : > { %v9110_v57 = vpack.c.bf16 %v4180_v4, %v4180_v4  ;;  %v9112_v10 = vpack.c.bf16 %v4182_v60, %v4182_v60  ;;  %v4179_v20 = vsel %vm4163_vm10, %v4155_v45, %v4171_v48  ;;  %v4181_v21 = vsel %vm4165_vm11, %v4157_v14, %v4173_v53  ;;  %v7495_v37 = vld [vmem:[%s8746_s20 + $0x420] ss:$16 sps:$4 sm:$0xff]   ;;  %v7503_v47 = vld [vmem:[%s8746_s20 + $0x404] ss:$16 sps:$4 sm:$0xff]  }
 0x612   : > { %v9116_v30 = vpack.c.bf16 %v4179_v20, %v4179_v20  ;;  %v9118_v15 = vpack.c.bf16 %v4181_v21, %v4181_v21  ;;  %v4184_v16 = vsel %vm4168_vm12, %v4160_v62, %v4176_v8  ;;  %vm4170_vm13 = vcmp.gt.f32.partialorder %v4162_v56, 0.0  ;;  %v7498_v42 = vld [vmem:[%s8746_s20 + $0x620] ss:$16 sps:$4 sm:$0xff]   ;;  %v7506_v28 = vld [vmem:[%s8746_s20 + $0x604] ss:$16 sps:$4 sm:$0xff]  }
 0x613   : > { %5785 = vmatprep.mubr.bf16.mxu0 %v9110_v57  ;;  %5826 = vmatprep.mubr.bf16.mxu1 %v9112_v10  ;;  %v4178_v3 = vmul.f32 0.2, %v4162_v56  ;;  %v9126_v6 = vpack.c.bf16 %v4184_v16, %v4184_v16  ;;  %v7501_v38 = vld [vmem:[%s8746_s20 + $0x400] ss:$16 sps:$4 sm:$0xff]   ;;  %v7509_v19 = vld [vmem:[%s8746_s20 + $0x5e4] ss:$16 sps:$4 sm:$0xff]  }
 0x614   : > { %5786 = vmatmul.mubr.bf16.vlgmr.msra.gmra.mxu0 %v9116_v30  ;;  %5827 = vmatmul.mubr.bf16.vlgmr.msra.gmra.mxu1 %v9118_v15  ;;  %v7504_v27 = vld [vmem:[%s8746_s20 + $0x600] ss:$16 sps:$4 sm:$0xff]   ;;  %v7512_v51 = vld [vmem:[%s8746_s20 + $0x7e4] ss:$16 sps:$4 sm:$0xff]   ;;  %vm4167_vm14 = vcmp.gt.f32.partialorder %v9106_v59, 0.0  ;;  %vm4169_vm15 = vcmp.gt.f32.partialorder %v9108_v0, 0.0 }
 0x615   : > { %5836 = vmatpush1.bf16.msra.mxu0 %v7459_v12  ;;  %5877 = vmatpush1.bf16.msra.mxu1 %v7462_v13  ;;  %v4186_v7 = vsel %vm4170_vm13, %v4162_v56, %v4178_v3  ;;  %v7507_v26 = vld [vmem:[%s8746_s20 + $0x5e0] ss:$16 sps:$4 sm:$0xff]   ;;  %v7515_v55 = vld [vmem:[%s8746_s20 + $0x5c4] ss:$16 sps:$4 sm:$0xff]  }
 0x616   : > { %5867 = vmatprep.mubr.bf16.mxu0 %v9126_v6  ;;  %v9131_v44 = vpack.c.bf16 %v4186_v7, %v4186_v7  ;;  %5837 = vmatprep.subr.bf16.mxu0 %v7467_v2  ;;  %v7510_v54 = vld [vmem:[%s8746_s20 + $0x7e0] ss:$16 sps:$4 sm:$0xff]   ;;  %v7518_v1 = vld [vmem:[%s8746_s20 + $0x7c4] ss:$16 sps:$4 sm:$0xff]  }
 0x617   : > { %5878 = vmatprep.subr.bf16.mxu1 %v7470_v5  ;;  %v7513_v45 = vld [vmem:[%s8746_s20 + $0x5c0] ss:$16 sps:$4 sm:$0xff]   ;;  %v7521_v62 = vld [vmem:[%s8746_s20 + $0x5a4] ss:$16 sps:$4 sm:$0xff]  }
 0x618   : > { %5908 = vmatprep.mubr.bf16.mxu1 %v9131_v44  ;;  %v7516_v14 = vld [vmem:[%s8746_s20 + $0x7c0] ss:$16 sps:$4 sm:$0xff]   ;;  %v7524_v56 = vld [vmem:[%s8746_s20 + $0x7a4] ss:$16 sps:$4 sm:$0xff]  }
 0x619   : > { %5838 = vmatpush1.bf16.msra.mxu0 %v7465_v50  ;;  %5879 = vmatpush1.bf16.msra.mxu1 %v7468_v43  ;;  %v7519_v18 = vld [vmem:[%s8746_s20 + $0x5a0] ss:$16 sps:$4 sm:$0xff]   ;;  %v7527_v48 = vld [vmem:[%s8746_s20 + $0x584] ss:$16 sps:$4 sm:$0xff]  }
 0x61a   : > { %5839 = vmatprep.subr.bf16.mxu0 %v7473_v46  ;;  %5880 = vmatprep.subr.bf16.mxu1 %v7476_v33  ;;  %v7522_v49 = vld [vmem:[%s8746_s20 + $0x7a0] ss:$16 sps:$4 sm:$0xff]   ;;  %v7530_v53 = vld [vmem:[%s8746_s20 + $0x784] ss:$16 sps:$4 sm:$0xff]  }
 0x61b   : > { %v7525_v4 = vld [vmem:[%s8746_s20 + $0x580] ss:$16 sps:$4 sm:$0xff]   ;;  %v7533_v8 = vld [vmem:[%s8746_s20 + $0x564] ss:$16 sps:$4 sm:$0xff]  }
 0x61c   : > { %v7528_v60 = vld [vmem:[%s8746_s20 + $0x780] ss:$16 sps:$4 sm:$0xff]   ;;  %v7536_v12 = vld [vmem:[%s8746_s20 + $0x764] ss:$16 sps:$4 sm:$0xff]  }
 0x61d   : > { %5840 = vmatpush1.bf16.msra.mxu0 %v7471_v24  ;;  %5881 = vmatpush1.bf16.msra.mxu1 %v7474_v32  ;;  %v7531_v13 = vld [vmem:[%s8746_s20 + $0x560] ss:$16 sps:$4 sm:$0xff]   ;;  %v7539_v21 = vld [vmem:[%s8746_s20 + $0x544] ss:$16 sps:$4 sm:$0xff]   ;;  %v4175_v24 = vmul.f32 0.2, %v9106_v59 }
 0x61e   : > { %5841 = vmatprep.subr.bf16.mxu0 %v7479_v17  ;;  %5882 = vmatprep.subr.bf16.mxu1 %v7482_v23  ;;  %v7534_v20 = vld [vmem:[%s8746_s20 + $0x760] ss:$16 sps:$4 sm:$0xff]   ;;  %v7542_v16 = vld [vmem:[%s8746_s20 + $0x744] ss:$16 sps:$4 sm:$0xff]   ;;  %v4177_v32 = vmul.f32 0.2, %v9108_v0 }
 0x61f   : > { %v7537_v2 = vld [vmem:[%s8746_s20 + $0x540] ss:$16 sps:$4 sm:$0xff]   ;;  %v7545_v5 = vld [vmem:[%s8746_s20 + $0x524] ss:$16 sps:$4 sm:$0xff]  }
 0x620   : > { %v7540_v3 = vld [vmem:[%s8746_s20 + $0x740] ss:$16 sps:$4 sm:$0xff]   ;;  %v7548_v7 = vld [vmem:[%s8746_s20 + $0x724] ss:$16 sps:$4 sm:$0xff]  }
 0x621   : > { %5842 = vmatpush1.bf16.msra.mxu0 %v7477_v25  ;;  %5883 = vmatpush1.bf16.msra.mxu1 %v7480_v34  ;;  %v7543_v50 = vld [vmem:[%s8746_s20 + $0x520] ss:$16 sps:$4 sm:$0xff]   ;;  %v7551_v46 = vld [vmem:[%s8746_s20 + $0x504] ss:$16 sps:$4 sm:$0xff]   ;;  %v7557_v25 = vld [vmem:[%s8746_s20 + $0xec] ss:$16 sps:$4 sm:$0xff]  }
 0x622   : > { %5843 = vmatprep.subr.bf16.mxu0 %v7485_v31  ;;  %5884 = vmatprep.subr.bf16.mxu1 %v7488_v29  ;;  %v7546_v43 = vld [vmem:[%s8746_s20 + $0x720] ss:$16 sps:$4 sm:$0xff]   ;;  %v7554_v33 = vld [vmem:[%s8746_s20 + $0x704] ss:$16 sps:$4 sm:$0xff]   ;;  %v7560_v34 = vld [vmem:[%s8746_s20 + $0x2ec] ss:$16 sps:$4 sm:$0xff]   ;;  %v4183_v31 = vsel %vm4167_vm14, %v9106_v59, %v4175_v24  ;;  %v4185_v29 = vsel %vm4169_vm15, %v9108_v0, %v4177_v32 }
 0x623   : > { %v7549_v17 = vld [vmem:[%s8746_s20 + $0x500] ss:$16 sps:$4 sm:$0xff]   ;;  %v7561_v59 = vld [vmem:[%s8746_s20 + $0xc8] ss:$16 sps:$4 sm:$0xff]   ;;  %v7629_v24 = vld [vmem:[%s8746_s20 + $0x16c] ss:$16 sps:$4 sm:$0xff]  }
 0x624   : > { %v7552_v23 = vld [vmem:[%s8746_s20 + $0x700] ss:$16 sps:$4 sm:$0xff]   ;;  %v7564_v0 = vld [vmem:[%s8746_s20 + $0x2c8] ss:$16 sps:$4 sm:$0xff]   ;;  %v7632_v32 = vld [vmem:[%s8746_s20 + $0x36c] ss:$16 sps:$4 sm:$0xff]  }
 0x625   : > { %5844 = vmatpush1.bf16.msra.mxu0 %v7483_v35  ;;  %5885 = vmatpush1.bf16.msra.mxu1 %v7486_v40  ;;  %v7555_v35 = vld [vmem:[%s8746_s20 + $0xe8] ss:$16 sps:$4 sm:$0xff]   ;;  %v9199_v40 = vpack.c.bf16 %v4183_v31, %v4183_v31 }
 0x626   : > { %5845 = vmatprep.subr.bf16.mxu0 %v7491_v63  ;;  %5886 = vmatprep.subr.bf16.mxu1 %v7494_v36  ;;  %v9201_v63 = vpack.c.bf16 %v4185_v29, %v4185_v29  ;;  %v7558_v36 = vld [vmem:[%s8746_s20 + $0x2e8] ss:$16 sps:$4 sm:$0xff]  }
 0x627   : > { %v7633_v31 = vld [vmem:[%s8746_s20 + $0x148] ss:$16 sps:$4 sm:$0xff]  }
 0x628   : > { %v7636_v29 = vld [vmem:[%s8746_s20 + $0x348] ss:$16 sps:$4 sm:$0xff]  }
 0x629   : > { %5846 = vmatpush1.bf16.msra.mxu0 %v7489_v61  ;;  %5887 = vmatpush1.bf16.msra.mxu1 %v7492_v58  ;;  %v7563_v61 = vld [vmem:[%s8746_s20 + $0xcc] ss:$16 sps:$4 sm:$0xff]  }
 0x62a   : > { %5847 = vmatprep.subr.bf16.mxu0 %v7497_v22  ;;  %5888 = vmatprep.subr.bf16.mxu1 %v7500_v52  ;;  %v7566_v58 = vld [vmem:[%s8746_s20 + $0x2cc] ss:$16 sps:$4 sm:$0xff]  }
 0x62b   : > { %v7569_v22 = vld [vmem:[%s8746_s20 + $0xac] ss:$16 sps:$4 sm:$0xff]  }
 0x62c   : > { %v7572_v52 = vld [vmem:[%s8746_s20 + $0x2ac] ss:$16 sps:$4 sm:$0xff]  }
 0x62d   : > { %5848 = vmatpush1.bf16.msra.mxu0 %v7495_v37  ;;  %5889 = vmatpush1.bf16.msra.mxu1 %v7498_v42  ;;  %v7567_v37 = vld [vmem:[%s8746_s20 + $0xa8] ss:$16 sps:$4 sm:$0xff]   ;;  %v7575_v42 = vld [vmem:[%s8746_s20 + $0x8c] ss:$16 sps:$4 sm:$0xff]  }
 0x62e   : > { %5849 = vmatprep.subr.bf16.mxu0 %v7503_v47  ;;  %5890 = vmatprep.subr.bf16.mxu1 %v7506_v28  ;;  %v7578_v47 = vld [vmem:[%s8746_s20 + $0x28c] ss:$16 sps:$4 sm:$0xff]   ;;  %v7576_v28 = vld [vmem:[%s8746_s20 + $0x288] ss:$16 sps:$4 sm:$0xff]  }
 0x631   : > { %5850 = vmatpush1.bf16.msra.mxu0 %v7501_v38  ;;  %5891 = vmatpush1.bf16.msra.mxu1 %v7504_v27  ;;  %v7581_v38 = vld [vmem:[%s8746_s20 + $0x6c] ss:$16 sps:$4 sm:$0xff]  }
 0x632   : > { %5851 = vmatprep.subr.bf16.mxu0 %v7509_v19  ;;  %5892 = vmatprep.subr.bf16.mxu1 %v7512_v51  ;;  %v7584_v27 = vld [vmem:[%s8746_s20 + $0x26c] ss:$16 sps:$4 sm:$0xff]   ;;  %v7579_v19 = vld [vmem:[%s8746_s20 + $0x68] ss:$16 sps:$4 sm:$0xff]  }
 0x633   : > { %v7582_v51 = vld [vmem:[%s8746_s20 + $0x268] ss:$16 sps:$4 sm:$0xff]  }
 0x635   : > { %5852 = vmatpush2.bf16.msra.mxu0 %v7507_v26  ;;  %5893 = vmatpush2.bf16.msra.mxu1 %v7510_v54  ;;  %v7587_v26 = vld [vmem:[%s8746_s20 + $0x4c] ss:$16 sps:$4 sm:$0xff]  }
 0x636   : > { %5853 = vmatprep.subr.bf16.mxu0 %v7515_v55  ;;  %5894 = vmatprep.subr.bf16.mxu1 %v7518_v1  ;;  %v7590_v54 = vld [vmem:[%s8746_s20 + $0x24c] ss:$16 sps:$4 sm:$0xff]   ;;  %v7585_v55 = vld [vmem:[%s8746_s20 + $0x48] ss:$16 sps:$4 sm:$0xff]  }
 0x637   : > { %v7588_v1 = vld [vmem:[%s8746_s20 + $0x248] ss:$16 sps:$4 sm:$0xff]  }
 0x639   : > { %5854 = vmatpush2.bf16.msra.mxu0 %v7513_v45  ;;  %5895 = vmatpush2.bf16.msra.mxu1 %v7516_v14  ;;  %v7593_v45 = vld [vmem:[%s8746_s20 + $0x2c] ss:$16 sps:$4 sm:$0xff]  }
 0x63a   : > { %5855 = vmatprep.subr.bf16.mxu0 %v7521_v62  ;;  %5896 = vmatprep.subr.bf16.mxu1 %v7524_v56  ;;  %v7596_v14 = vld [vmem:[%s8746_s20 + $0x22c] ss:$16 sps:$4 sm:$0xff]   ;;  %v7591_v62 = vld [vmem:[%s8746_s20 + $0x28] ss:$16 sps:$4 sm:$0xff]  }
 0x63b   : > { %v7594_v56 = vld [vmem:[%s8746_s20 + $0x228] ss:$16 sps:$4 sm:$0xff]  }
 0x63d   : > { %5856 = vmatpush2.bf16.msra.mxu0 %v7519_v18  ;;  %5897 = vmatpush2.bf16.msra.mxu1 %v7522_v49  ;;  %v7599_v18 = vld [vmem:[%s8746_s20 + $0xc] ss:$16 sps:$4 sm:$0xff]  }
 0x63e   : > { %5857 = vmatprep.subr.bf16.mxu0 %v7527_v48  ;;  %5898 = vmatprep.subr.bf16.mxu1 %v7530_v53  ;;  %v7602_v49 = vld [vmem:[%s8746_s20 + $0x20c] ss:$16 sps:$4 sm:$0xff]   ;;  %v7597_v48 = vld [vmem:[%s8746_s20 + $0x8] ss:$16 sps:$4 sm:$0xff]  }
 0x63f   : > { %v7600_v53 = vld [vmem:[%s8746_s20 + $0x208] ss:$16 sps:$4 sm:$0xff]  }
 0x641   : > { %5858 = vmatpush2.bf16.msra.mxu0 %v7525_v4  ;;  %5899 = vmatpush2.bf16.msra.mxu1 %v7528_v60  ;;  %v7605_v4 = vld [vmem:[%s8746_s20 + $0x1ec] ss:$16 sps:$4 sm:$0xff]  }
 0x642   : > { %5859 = vmatprep.subr.bf16.mxu0 %v7533_v8  ;;  %5900 = vmatprep.subr.bf16.mxu1 %v7536_v12  ;;  %v7608_v60 = vld [vmem:[%s8746_s20 + $0x3ec] ss:$16 sps:$4 sm:$0xff]   ;;  %v7603_v8 = vld [vmem:[%s8746_s20 + $0x1e8] ss:$16 sps:$4 sm:$0xff]  }
 0x643   : > { %v7606_v12 = vld [vmem:[%s8746_s20 + $0x3e8] ss:$16 sps:$4 sm:$0xff]  }
 0x645   : > { %5860 = vmatpush2.bf16.msra.mxu0 %v7531_v13  ;;  %5901 = vmatpush2.bf16.msra.mxu1 %v7534_v20  ;;  %v7611_v13 = vld [vmem:[%s8746_s20 + $0x1cc] ss:$16 sps:$4 sm:$0xff]  }
 0x646   : > { %5861 = vmatprep.subr.bf16.mxu0 %v7539_v21  ;;  %5902 = vmatprep.subr.bf16.mxu1 %v7542_v16  ;;  %v7614_v20 = vld [vmem:[%s8746_s20 + $0x3cc] ss:$16 sps:$4 sm:$0xff]   ;;  %v7609_v21 = vld [vmem:[%s8746_s20 + $0x1c8] ss:$16 sps:$4 sm:$0xff]  }
 0x647   : > { %v7612_v16 = vld [vmem:[%s8746_s20 + $0x3c8] ss:$16 sps:$4 sm:$0xff]  }
 0x649   : > { %5862 = vmatpush2.bf16.msra.mxu0 %v7537_v2  ;;  %5903 = vmatpush2.bf16.msra.mxu1 %v7540_v3  ;;  %v7617_v2 = vld [vmem:[%s8746_s20 + $0x1ac] ss:$16 sps:$4 sm:$0xff]  }
 0x64a   : > { %5863 = vmatprep.subr.bf16.mxu0 %v7545_v5  ;;  %5904 = vmatprep.subr.bf16.mxu1 %v7548_v7  ;;  %v7620_v3 = vld [vmem:[%s8746_s20 + $0x3ac] ss:$16 sps:$4 sm:$0xff]   ;;  %v7615_v5 = vld [vmem:[%s8746_s20 + $0x1a8] ss:$16 sps:$4 sm:$0xff]  }
 0x64b   : > { %v7618_v7 = vld [vmem:[%s8746_s20 + $0x3a8] ss:$16 sps:$4 sm:$0xff]  }
 0x64d   : > { %5864 = vmatpush2.bf16.msra.mxu0 %v7543_v50  ;;  %5905 = vmatpush2.bf16.msra.mxu1 %v7546_v43  ;;  %v7623_v50 = vld [vmem:[%s8746_s20 + $0x18c] ss:$16 sps:$4 sm:$0xff]  }
 0x64e   : > { %5865 = vmatprep.subr.bf16.mxu0 %v7551_v46  ;;  %5906 = vmatprep.subr.bf16.mxu1 %v7554_v33  ;;  %v7626_v43 = vld [vmem:[%s8746_s20 + $0x38c] ss:$16 sps:$4 sm:$0xff]   ;;  %v7621_v46 = vld [vmem:[%s8746_s20 + $0x188] ss:$16 sps:$4 sm:$0xff]  }
 0x64f   : > { %v7624_v33 = vld [vmem:[%s8746_s20 + $0x388] ss:$16 sps:$4 sm:$0xff]  }
 0x651   : > { %5866 = vmatpush2.bf16.msra.mxu0 %v7549_v17  ;;  %5907 = vmatpush2.bf16.msra.mxu1 %v7552_v23  ;;  %v7627_v17 = vld [vmem:[%s8746_s20 + $0x168] ss:$16 sps:$4 sm:$0xff]  }
 0x652   : > { %5917 = vmatprep.subr.bf16.mxu0 %v7557_v25  ;;  %5958 = vmatprep.subr.bf16.mxu1 %v7560_v34  ;;  %v7630_v23 = vld [vmem:[%s8746_s20 + $0x368] ss:$16 sps:$4 sm:$0xff]   ;;  %v7635_v25 = vld [vmem:[%s8746_s20 + $0x14c] ss:$16 sps:$4 sm:$0xff]  }
 0x653   : > { %v7638_v34 = vld [vmem:[%s8746_s20 + $0x34c] ss:$16 sps:$4 sm:$0xff]  }
 0x654   : > { %5868 = vmatmul.mubr.bf16.vlgmr.msra.gmra.mxu0 %v9199_v40  ;;  %5909 = vmatmul.mubr.bf16.vlgmr.msra.gmra.mxu1 %v9201_v63 }
 0x655   : > { %5918 = vmatpush1.bf16.msra.mxu0 %v7555_v35  ;;  %5949 = vmatprep.mubr.bf16.mxu0 %v9110_v57  ;;  %v7570_v57 = vld [vmem:[%s8746_s20 + $0x2a8] ss:$16 sps:$4 sm:$0xff]   ;;  %v7641_v35 = vld [vmem:[%s8746_s20 + $0x12c] ss:$16 sps:$4 sm:$0xff]  }
 0x656   : > { %5959 = vmatpush1.bf16.msra.mxu1 %v7558_v36  ;;  %5990 = vmatprep.mubr.bf16.mxu1 %v9112_v10  ;;  %v7573_v10 = vld [vmem:[%s8746_s20 + $0x88] ss:$16 sps:$4 sm:$0xff]   ;;  %v7644_v36 = vld [vmem:[%s8746_s20 + $0x32c] ss:$16 sps:$4 sm:$0xff]  }
 0x657   : > { %5919 = vmatprep.subr.bf16.mxu0 %v7563_v61  ;;  %5960 = vmatprep.subr.bf16.mxu1 %v7566_v58  ;;  %v7639_v61 = vld [vmem:[%s8746_s20 + $0x128] ss:$16 sps:$4 sm:$0xff]  }
 0x658   : > { %v7642_v58 = vld [vmem:[%s8746_s20 + $0x328] ss:$16 sps:$4 sm:$0xff]  }
 0x659   : > { %5920 = vmatpush1.bf16.msra.mxu0 %v7561_v59  ;;  %v7647_v59 = vld [vmem:[%s8746_s20 + $0x10c] ss:$16 sps:$4 sm:$0xff]  }
 0x65a   : > { %5961 = vmatpush1.bf16.msra.mxu1 %v7564_v0  ;;  %5921 = vmatprep.subr.bf16.mxu0 %v7569_v22  ;;  %v7650_v0 = vld [vmem:[%s8746_s20 + $0x30c] ss:$16 sps:$4 sm:$0xff]   ;;  %v7645_v22 = vld [vmem:[%s8746_s20 + $0x108] ss:$16 sps:$4 sm:$0xff]  }
 0x65b   : > { %5962 = vmatprep.subr.bf16.mxu1 %v7572_v52  ;;  %v7648_v52 = vld [vmem:[%s8746_s20 + $0x308] ss:$16 sps:$4 sm:$0xff]  }
 0x65d   : > { %5922 = vmatpush1.bf16.msra.mxu0 %v7567_v37  ;;  %v7653_v37 = vld [vmem:[%s8746_s20 + $0x4ec] ss:$16 sps:$4 sm:$0xff]  }
 0x65e   : > { %5963 = vmatpush1.bf16.msra.mxu1 %v7570_v57  ;;  %5923 = vmatprep.subr.bf16.mxu0 %v7575_v42  ;;  %v7656_v57 = vld [vmem:[%s8746_s20 + $0x6ec] ss:$16 sps:$4 sm:$0xff]   ;;  %v7651_v42 = vld [vmem:[%s8746_s20 + $0x4e8] ss:$16 sps:$4 sm:$0xff]  }
 0x65f   : > { %5964 = vmatprep.subr.bf16.mxu1 %v7578_v47  ;;  %v7654_v47 = vld [vmem:[%s8746_s20 + $0x6e8] ss:$16 sps:$4 sm:$0xff]  }
 0x661   : > { %5924 = vmatpush1.bf16.msra.mxu0 %v7573_v10  ;;  %v7659_v10 = vld [vmem:[%s8746_s20 + $0x4cc] ss:$16 sps:$4 sm:$0xff]  }
 0x662   : > { %5965 = vmatpush1.bf16.msra.mxu1 %v7576_v28  ;;  %5925 = vmatprep.subr.bf16.mxu0 %v7581_v38  ;;  %v7662_v28 = vld [vmem:[%s8746_s20 + $0x6cc] ss:$16 sps:$4 sm:$0xff]   ;;  %v7657_v38 = vld [vmem:[%s8746_s20 + $0x4c8] ss:$16 sps:$4 sm:$0xff]  }
 0x663   : > { %5966 = vmatprep.subr.bf16.mxu1 %v7584_v27  ;;  %v7660_v27 = vld [vmem:[%s8746_s20 + $0x6c8] ss:$16 sps:$4 sm:$0xff]  }
 0x665   : > { %5926 = vmatpush1.bf16.msra.mxu0 %v7579_v19  ;;  %v7665_v19 = vld [vmem:[%s8746_s20 + $0x4ac] ss:$16 sps:$4 sm:$0xff]  }
 0x666   : > { %5967 = vmatpush1.bf16.msra.mxu1 %v7582_v51  ;;  %5927 = vmatprep.subr.bf16.mxu0 %v7587_v26  ;;  %v7666_v51 = vld [vmem:[%s8746_s20 + $0x6a8] ss:$16 sps:$4 sm:$0xff]   ;;  %v7674_v26 = vld [vmem:[%s8746_s20 + $0x68c] ss:$16 sps:$4 sm:$0xff]  }
 0x667   : > { %5968 = vmatprep.subr.bf16.mxu1 %v7590_v54  ;;  %v7672_v54 = vld [vmem:[%s8746_s20 + $0x688] ss:$16 sps:$4 sm:$0xff]  }
 0x669   : > { %5928 = vmatpush1.bf16.msra.mxu0 %v7585_v55  ;;  %v7677_v55 = vld [vmem:[%s8746_s20 + $0x46c] ss:$16 sps:$4 sm:$0xff]  }
 0x66a   : > { %5969 = vmatpush1.bf16.msra.mxu1 %v7588_v1  ;;  %5929 = vmatprep.subr.bf16.mxu0 %v7593_v45  ;;  %v7680_v1 = vld [vmem:[%s8746_s20 + $0x66c] ss:$16 sps:$4 sm:$0xff]   ;;  %v7675_v45 = vld [vmem:[%s8746_s20 + $0x468] ss:$16 sps:$4 sm:$0xff]  }
 0x66b   : > { %5970 = vmatprep.subr.bf16.mxu1 %v7596_v14  ;;  %v7678_v14 = vld [vmem:[%s8746_s20 + $0x668] ss:$16 sps:$4 sm:$0xff]  }
 0x66d   : > { %5930 = vmatpush1.bf16.msra.mxu0 %v7591_v62  ;;  %v7683_v62 = vld [vmem:[%s8746_s20 + $0x44c] ss:$16 sps:$4 sm:$0xff]  }
 0x66e   : > { %5971 = vmatpush1.bf16.msra.mxu1 %v7594_v56  ;;  %5931 = vmatprep.subr.bf16.mxu0 %v7599_v18  ;;  %v7686_v56 = vld [vmem:[%s8746_s20 + $0x64c] ss:$16 sps:$4 sm:$0xff]   ;;  %v7681_v18 = vld [vmem:[%s8746_s20 + $0x448] ss:$16 sps:$4 sm:$0xff]  }
 0x66f   : > { %5972 = vmatprep.subr.bf16.mxu1 %v7602_v49  ;;  %v7684_v49 = vld [vmem:[%s8746_s20 + $0x648] ss:$16 sps:$4 sm:$0xff]  }
 0x671   : > { %5932 = vmatpush1.bf16.msra.mxu0 %v7597_v48  ;;  %v7689_v48 = vld [vmem:[%s8746_s20 + $0x42c] ss:$16 sps:$4 sm:$0xff]  }
 0x672   : > { %5973 = vmatpush1.bf16.msra.mxu1 %v7600_v53  ;;  %5933 = vmatprep.subr.bf16.mxu0 %v7605_v4  ;;  %v7692_v53 = vld [vmem:[%s8746_s20 + $0x62c] ss:$16 sps:$4 sm:$0xff]   ;;  %v7687_v4 = vld [vmem:[%s8746_s20 + $0x428] ss:$16 sps:$4 sm:$0xff]  }
 0x673   : > { %5974 = vmatprep.subr.bf16.mxu1 %v7608_v60  ;;  %v7690_v60 = vld [vmem:[%s8746_s20 + $0x628] ss:$16 sps:$4 sm:$0xff]  }
 0x675   : > { %5934 = vmatpush2.bf16.msra.mxu0 %v7603_v8  ;;  %v7695_v8 = vld [vmem:[%s8746_s20 + $0x40c] ss:$16 sps:$4 sm:$0xff]  }
 0x676   : > { %5975 = vmatpush2.bf16.msra.mxu1 %v7606_v12  ;;  %5935 = vmatprep.subr.bf16.mxu0 %v7611_v13  ;;  %v7698_v12 = vld [vmem:[%s8746_s20 + $0x60c] ss:$16 sps:$4 sm:$0xff]   ;;  %v7693_v13 = vld [vmem:[%s8746_s20 + $0x408] ss:$16 sps:$4 sm:$0xff]  }
 0x677   : > { %5976 = vmatprep.subr.bf16.mxu1 %v7614_v20  ;;  %v7696_v20 = vld [vmem:[%s8746_s20 + $0x608] ss:$16 sps:$4 sm:$0xff]  }
 0x679   : > { %5936 = vmatpush2.bf16.msra.mxu0 %v7609_v21  ;;  %v7701_v21 = vld [vmem:[%s8746_s20 + $0x5ec] ss:$16 sps:$4 sm:$0xff]  }
 0x67a   : > { %5977 = vmatpush2.bf16.msra.mxu1 %v7612_v16  ;;  %5937 = vmatprep.subr.bf16.mxu0 %v7617_v2  ;;  %v7704_v16 = vld [vmem:[%s8746_s20 + $0x7ec] ss:$16 sps:$4 sm:$0xff]   ;;  %v7699_v2 = vld [vmem:[%s8746_s20 + $0x5e8] ss:$16 sps:$4 sm:$0xff]  }
 0x67b   : > { %5978 = vmatprep.subr.bf16.mxu1 %v7620_v3  ;;  %v7702_v3 = vld [vmem:[%s8746_s20 + $0x7e8] ss:$16 sps:$4 sm:$0xff]  }
 0x67d   : > { %5938 = vmatpush2.bf16.msra.mxu0 %v7615_v5  ;;  %v7707_v5 = vld [vmem:[%s8746_s20 + $0x5cc] ss:$16 sps:$4 sm:$0xff]  }
 0x67e   : > { %5979 = vmatpush2.bf16.msra.mxu1 %v7618_v7  ;;  %5939 = vmatprep.subr.bf16.mxu0 %v7623_v50  ;;  %v7710_v7 = vld [vmem:[%s8746_s20 + $0x7cc] ss:$16 sps:$4 sm:$0xff]   ;;  %v7705_v50 = vld [vmem:[%s8746_s20 + $0x5c8] ss:$16 sps:$4 sm:$0xff]  }
 0x67f   : > { %5980 = vmatprep.subr.bf16.mxu1 %v7626_v43  ;;  %v7708_v43 = vld [vmem:[%s8746_s20 + $0x7c8] ss:$16 sps:$4 sm:$0xff]  }
 0x681   : > { %5940 = vmatpush2.bf16.msra.mxu0 %v7621_v46  ;;  %v7713_v46 = vld [vmem:[%s8746_s20 + $0x5ac] ss:$16 sps:$4 sm:$0xff]  }
 0x682   : > { %5981 = vmatpush2.bf16.msra.mxu1 %v7624_v33  ;;  %5941 = vmatprep.subr.bf16.mxu0 %v7629_v24  ;;  %v7716_v33 = vld [vmem:[%s8746_s20 + $0x7ac] ss:$16 sps:$4 sm:$0xff]   ;;  %v7711_v24 = vld [vmem:[%s8746_s20 + $0x5a8] ss:$16 sps:$4 sm:$0xff]  }
 0x683   : > { %5982 = vmatprep.subr.bf16.mxu1 %v7632_v32  ;;  %v7714_v32 = vld [vmem:[%s8746_s20 + $0x7a8] ss:$16 sps:$4 sm:$0xff]  }
 0x685   : > { %5942 = vmatpush2.bf16.msra.mxu0 %v7627_v17  ;;  %v7719_v17 = vld [vmem:[%s8746_s20 + $0x58c] ss:$16 sps:$4 sm:$0xff]  }
 0x686   : > { %5983 = vmatpush2.bf16.msra.mxu1 %v7630_v23  ;;  %5943 = vmatprep.subr.bf16.mxu0 %v7635_v25  ;;  %v7722_v23 = vld [vmem:[%s8746_s20 + $0x78c] ss:$16 sps:$4 sm:$0xff]   ;;  %v7717_v25 = vld [vmem:[%s8746_s20 + $0x588] ss:$16 sps:$4 sm:$0xff]  }
 0x687   : > { %5984 = vmatprep.subr.bf16.mxu1 %v7638_v34  ;;  %v7720_v34 = vld [vmem:[%s8746_s20 + $0x788] ss:$16 sps:$4 sm:$0xff]  }
 0x689   : > { %5944 = vmatpush2.bf16.msra.mxu0 %v7633_v31  ;;  %v7725_v31 = vld [vmem:[%s8746_s20 + $0x56c] ss:$16 sps:$4 sm:$0xff]  }
 0x68a   : > { %5985 = vmatpush2.bf16.msra.mxu1 %v7636_v29  ;;  %5945 = vmatprep.subr.bf16.mxu0 %v7641_v35  ;;  %v7728_v29 = vld [vmem:[%s8746_s20 + $0x76c] ss:$16 sps:$4 sm:$0xff]   ;;  %v7723_v35 = vld [vmem:[%s8746_s20 + $0x568] ss:$16 sps:$4 sm:$0xff]  }
 0x68b   : > { %5986 = vmatprep.subr.bf16.mxu1 %v7644_v36  ;;  %v7726_v36 = vld [vmem:[%s8746_s20 + $0x768] ss:$16 sps:$4 sm:$0xff]  }
 0x68d   : > { %5946 = vmatpush2.bf16.msra.mxu0 %v7639_v61  ;;  %v7731_v61 = vld [vmem:[%s8746_s20 + $0x54c] ss:$16 sps:$4 sm:$0xff]  }
 0x68e   : > { %5987 = vmatpush2.bf16.msra.mxu1 %v7642_v58  ;;  %5947 = vmatprep.subr.bf16.mxu0 %v7647_v59  ;;  %v7734_v58 = vld [vmem:[%s8746_s20 + $0x74c] ss:$16 sps:$4 sm:$0xff]   ;;  %v7729_v59 = vld [vmem:[%s8746_s20 + $0x548] ss:$16 sps:$4 sm:$0xff]  }
 0x68f   : > { %5988 = vmatprep.subr.bf16.mxu1 %v7650_v0  ;;  %v7732_v0 = vld [vmem:[%s8746_s20 + $0x748] ss:$16 sps:$4 sm:$0xff]  }
 0x691   : > { %5948 = vmatpush2.bf16.msra.mxu0 %v7645_v22  ;;  %v7737_v22 = vld [vmem:[%s8746_s20 + $0x52c] ss:$16 sps:$4 sm:$0xff]  }
 0x692   : > { %5989 = vmatpush2.bf16.msra.mxu1 %v7648_v52  ;;  %5999 = vmatprep.subr.bf16.mxu0 %v7653_v37  ;;  %v7740_v52 = vld [vmem:[%s8746_s20 + $0x72c] ss:$16 sps:$4 sm:$0xff]   ;;  %v7735_v37 = vld [vmem:[%s8746_s20 + $0x528] ss:$16 sps:$4 sm:$0xff]  }
 0x693   : > { %6040 = vmatprep.subr.bf16.mxu1 %v7656_v57  ;;  %v7738_v57 = vld [vmem:[%s8746_s20 + $0x728] ss:$16 sps:$4 sm:$0xff]  }
 0x694   : > { %5950 = vmatmul.mubr.bf16.vlgmr.msra.gmra.mxu0 %v9116_v30  ;;  %v7668_v30 = vld [vmem:[%s8746_s20 + $0x6ac] ss:$16 sps:$4 sm:$0xff]  }
 0x695   : > { %5991 = vmatmul.mubr.bf16.vlgmr.msra.gmra.mxu1 %v9118_v15  ;;  %6000 = vmatpush1.bf16.msra.mxu0 %v7651_v42  ;;  %v7663_v15 = vld [vmem:[%s8746_s20 + $0x4a8] ss:$16 sps:$4 sm:$0xff]   ;;  %v7743_v42 = vld [vmem:[%s8746_s20 + $0x50c] ss:$16 sps:$4 sm:$0xff]  }
 0x696   : > { %6031 = vmatprep.mubr.bf16.mxu0 %v9126_v6  ;;  %6041 = vmatpush1.bf16.msra.mxu1 %v7654_v47  ;;  %v7671_v6 = vld [vmem:[%s8746_s20 + $0x48c] ss:$16 sps:$4 sm:$0xff]  }
 0x697   : > { %6072 = vmatprep.mubr.bf16.mxu1 %v9131_v44  ;;  %6001 = vmatprep.subr.bf16.mxu0 %v7659_v10  ;;  %v7669_v44 = vld [vmem:[%s8746_s20 + $0x488] ss:$16 sps:$4 sm:$0xff]   ;;  %v7746_v47 = vld [vmem:[%s8746_s20 + $0x70c] ss:$16 sps:$4 sm:$0xff]  }
 0x698   : > { %6042 = vmatprep.subr.bf16.mxu1 %v7662_v28  ;;  %v7741_v10 = vld [vmem:[%s8746_s20 + $0x508] ss:$16 sps:$4 sm:$0xff]  }
 0x699   : > { %6002 = vmatpush1.bf16.msra.mxu0 %v7657_v38  ;;  %v7744_v28 = vld [vmem:[%s8746_s20 + $0x708] ss:$16 sps:$4 sm:$0xff]  }
 0x69a   : > { %6043 = vmatpush1.bf16.msra.mxu1 %v7660_v27  ;;  %6003 = vmatprep.subr.bf16.mxu0 %v7665_v19 }
 0x69b   : > { %6044 = vmatprep.subr.bf16.mxu1 %v7668_v30 }
 0x69d   : > { %6004 = vmatpush1.bf16.msra.mxu0 %v7663_v15 }
 0x69e   : > { %6045 = vmatpush1.bf16.msra.mxu1 %v7666_v51  ;;  %6005 = vmatprep.subr.bf16.mxu0 %v7671_v6 }
 0x69f   : > { %6046 = vmatprep.subr.bf16.mxu1 %v7674_v26 }
 0x6a1   : > { %6006 = vmatpush1.bf16.msra.mxu0 %v7669_v44  ;;  %v4451_v44 = vld [vmem:[%s742_s29] sm:$0xf] }
 0x6a2   : > { %6047 = vmatpush1.bf16.msra.mxu1 %v7672_v54  ;;  %6007 = vmatprep.subr.bf16.mxu0 %v7677_v55  ;;  %v4456_v54 = vrot.slane %v4451_v44, %v8755_v39  ;;  %v4460_v55 = vrot.slane %v4451_v44, %v8758_v41 }
 0x6a3   : > { %6048 = vmatprep.subr.bf16.mxu1 %v7680_v1 }
 0x6a5   : > { %6008 = vmatpush1.bf16.msra.mxu0 %v7675_v45 }
 0x6a6   : > { %6049 = vmatpush1.bf16.msra.mxu1 %v7678_v14  ;;  %6009 = vmatprep.subr.bf16.mxu0 %v7683_v62 }
 0x6a7   : > { %6050 = vmatprep.subr.bf16.mxu1 %v7686_v56 }
 0x6a9   : > { %6010 = vmatpush1.bf16.msra.mxu0 %v7681_v18 }
 0x6aa   : > { %6051 = vmatpush1.bf16.msra.mxu1 %v7684_v49  ;;  %6011 = vmatprep.subr.bf16.mxu0 %v7689_v48 }
 0x6ab   : > { %6052 = vmatprep.subr.bf16.mxu1 %v7692_v53 }
 0x6ad   : > { %6012 = vmatpush1.bf16.msra.mxu0 %v7687_v4 }
 0x6ae   : > { %6053 = vmatpush1.bf16.msra.mxu1 %v7690_v60  ;;  %6013 = vmatprep.subr.bf16.mxu0 %v7695_v8 }
 0x6af   : > { %6054 = vmatprep.subr.bf16.mxu1 %v7698_v12 }
 0x6b1   : > { %6014 = vmatpush1.bf16.msra.mxu0 %v7693_v13 }
 0x6b2   : > { %6055 = vmatpush1.bf16.msra.mxu1 %v7696_v20  ;;  %6015 = vmatprep.subr.bf16.mxu0 %v7701_v21 }
 0x6b3   : > { %6056 = vmatprep.subr.bf16.mxu1 %v7704_v16 }
 0x6b5   : > { %6016 = vmatpush2.bf16.msra.mxu0 %v7699_v2 }
 0x6b6   : > { %6057 = vmatpush2.bf16.msra.mxu1 %v7702_v3  ;;  %6017 = vmatprep.subr.bf16.mxu0 %v7707_v5 }
 0x6b7   : > { %6058 = vmatprep.subr.bf16.mxu1 %v7710_v7 }
 0x6b9   : > { %6018 = vmatpush2.bf16.msra.mxu0 %v7705_v50 }
 0x6ba   : > { %6059 = vmatpush2.bf16.msra.mxu1 %v7708_v43  ;;  %6019 = vmatprep.subr.bf16.mxu0 %v7713_v46  ;;  %v4464_v43 = vrot.slane %v4451_v44, %v8797_v9  ;;  %v4468_v46 = vrot.slane %v4451_v44, %v8800_v11 }
 0x6bb   : > { %6060 = vmatprep.subr.bf16.mxu1 %v7716_v33 }
 0x6bd   : > { %6020 = vmatpush2.bf16.msra.mxu0 %v7711_v24 }
 0x6be   : > { %6061 = vmatpush2.bf16.msra.mxu1 %v7714_v32  ;;  %6021 = vmatprep.subr.bf16.mxu0 %v7719_v17 }
 0x6bf   : > { %6062 = vmatprep.subr.bf16.mxu1 %v7722_v23 }
 0x6c1   : > { %6022 = vmatpush2.bf16.msra.mxu0 %v7717_v25 }
 0x6c2   : > { %6063 = vmatpush2.bf16.msra.mxu1 %v7720_v34  ;;  %6023 = vmatprep.subr.bf16.mxu0 %v7725_v31 }
 0x6c3   : > { %6064 = vmatprep.subr.bf16.mxu1 %v7728_v29 }
 0x6c5   : > { %6024 = vmatpush2.bf16.msra.mxu0 %v7723_v35 }
 0x6c6   : > { %6065 = vmatpush2.bf16.msra.mxu1 %v7726_v36  ;;  %6025 = vmatprep.subr.bf16.mxu0 %v7731_v61 }
 0x6c7   : > { %6066 = vmatprep.subr.bf16.mxu1 %v7734_v58 }
 0x6c9   : > { %6026 = vmatpush2.bf16.msra.mxu0 %v7729_v59 }
 0x6ca   : > { %6067 = vmatpush2.bf16.msra.mxu1 %v7732_v0  ;;  %6027 = vmatprep.subr.bf16.mxu0 %v7737_v22 }
 0x6cb   : > { %6068 = vmatprep.subr.bf16.mxu1 %v7740_v52 }
 0x6cd   : > { %6028 = vmatpush2.bf16.msra.mxu0 %v7735_v37 }
 0x6ce   : > { %6069 = vmatpush2.bf16.msra.mxu1 %v7738_v57  ;;  %6029 = vmatprep.subr.bf16.mxu0 %v7743_v42 }
 0x6cf   : > { %6070 = vmatprep.subr.bf16.mxu1 %v7746_v47 }
 0x6d1   : > { %6030 = vmatpush2.bf16.msra.mxu0 %v7741_v10 }
 0x6d2   : > { %6071 = vmatpush2.bf16.msra.mxu1 %v7744_v28 }
 0x6d4   : > { %6032 = vmatmul.mubr.bf16.vlgmr.msra.gmra.mxu0 %v9199_v40  ;;  %v5787_v38 = vpop.f32.mrf.mxu0  ;;  %v5828_v27 = vpop.f32.mrf.mxu1 }
 0x6d5   : > { %6073 = vmatmul.mubr.bf16.vlgmr.msra.gmra.mxu1 %v9201_v63  ;;  %v5788_v1 = vadd.f32 %v5787_v38, %v4456_v54 }
 0x6d6   : > { %v5789_v19 = vpop.f32.mrf.mxu0  ;;  %v5830_v30 = vpop.f32.mrf.mxu1 }
 0x6d7   : > { %v5790_v45 = vadd.f32 %v5789_v19, %v4460_v55  ;;  %v5829_v40 = vadd.f32 %v5828_v27, %v5788_v1 }
 0x6d8   : > { %v5791_v15 = vpop.f32.mrf.mxu0  ;;  %v5832_v51 = vpop.f32.mrf.mxu1 }
 0x6d9   : > { %v5831_v63 = vadd.f32 %v5830_v30, %v5790_v45 }
 0x6da   : > { %v5792_v6 = vpop.f32.mrf.mxu0  ;;  %v5833_v26 = vpop.f32.mrf.mxu1 }
 0x714   : > { %v5869_v14 = vpop.f32.mrf.mxu0  ;;  %v5910_v62 = vpop.f32.mrf.mxu1 }
 0x715   : > { %v5870_v56 = vadd.f32 %v5869_v14, %v5829_v40 }
 0x716   : > { %v5871_v18 = vpop.f32.mrf.mxu0  ;;  %v5912_v49 = vpop.f32.mrf.mxu1 }
 0x717   : > { %v5911_v48 = vadd.f32 %v5910_v62, %v5870_v56  ;;  %v5872_v53 = vadd.f32 %v5871_v18, %v5831_v63 }
 0x718   : > { %v5873_v4 = vpop.f32.mrf.mxu0  ;;  %v5914_v60 = vpop.f32.mrf.mxu1 }
 0x719   : > { %7775 = vtanh.f32 %v5911_v48  ;;  %v5913_v8 = vadd.f32 %v5912_v49, %v5872_v53 }
 0x71a   : > { %v5874_v12 = vpop.f32.mrf.mxu0  ;;  %v5915_v39 = vpop.f32.mrf.mxu1 }
 0x71b   : > { %7777 = vtanh.f32 %v5913_v8 }
 0x726   : > { %v7776_v41 = vpop.eup %7775 }
 0x727   : > { %6085 = vst [vmem:[%s9342_s7] sm:$0xff] %v7776_v41 }
 0x728   : > { %v7778_v13 = vpop.eup %7777 }
 0x729   : > { %6086 = vst [vmem:[%s9342_s7 + $0x8] sm:$0xff] %v7778_v13 }
 0x754   : > { %v5951_v20 = vpop.f32.mrf.mxu0 }
 0x755   : > { %v5992_v21 = vpop.f32.mrf.mxu1  ;;  %v5952_v33 = vadd.f32 %v5951_v20, %v4464_v43 }
 0x756   : > { %v5953_v16 = vpop.f32.mrf.mxu0 }
 0x757   : > { %v5994_v2 = vpop.f32.mrf.mxu1  ;;  %v5954_v24 = vadd.f32 %v5953_v16, %v4468_v46  ;;  %v5993_v32 = vadd.f32 %v5992_v21, %v5952_v33 }
 0x758   : > { %v5955_v3 = vpop.f32.mrf.mxu0 }
 0x759   : > { %v5996_v5 = vpop.f32.mrf.mxu1  ;;  %v5995_v23 = vadd.f32 %v5994_v2, %v5954_v24 }
 0x75a   : > { %v5956_v7 = vpop.f32.mrf.mxu0 }
 0x75b   : > { %v5997_v50 = vpop.f32.mrf.mxu1 }
 0x794   : > { %v6033_v17 = vpop.f32.mrf.mxu0 }
 0x795   : > { %v6034_v25 = vadd.f32 %v6033_v17, %v5993_v32  ;;  %v6074_v34 = vpop.f32.mrf.mxu1 }
 0x796   : > { %v6035_v31 = vpop.f32.mrf.mxu0 }
 0x797   : > { %v6075_v29 = vadd.f32 %v6074_v34, %v6034_v25  ;;  %v6036_v35 = vadd.f32 %v6035_v31, %v5995_v23  ;;  %v6076_v36 = vpop.f32.mrf.mxu1 }
 0x798   : > { %v6037_v61 = vpop.f32.mrf.mxu0 }
 0x799   : > { %7779 = vtanh.f32 %v6075_v29  ;;  %v6077_v9 = vadd.f32 %v6076_v36, %v6036_v35  ;;  %v6078_v11 = vpop.f32.mrf.mxu1 }
 0x79a   : > { %v6038_v58 = vpop.f32.mrf.mxu0 }
 0x79b   : > { %7781 = vtanh.f32 %v6077_v9  ;;  %v6079_v59 = vpop.f32.mrf.mxu1 }
 0x7a6   : > { %v7780_v0 = vpop.eup %7779 }
 0x7a7   : > { %6087 = vst [vmem:[%s9342_s7 + $0x10] sm:$0xff] %v7780_v0 }
 0x7a8   : > { %v7782_v22 = vpop.eup %7781 }
 0x7a9   : > { %6088 = vst [vmem:[%s9342_s7 + $0x18] sm:$0xff] %v7782_v22 }
 0x7aa   : > { %8242 = shalt.err (!%p8239_p6)
}
 0x7ab   : > { %s8243_s19 = scalar_lea.hbm %s9354_s13, 512  ;;  %s8247_s18 = scalar_lea.hbm %s9485_s3, 4608 }
 0x7ac   : > { %p8244_p0 = scmp.ne.s32.totalorder %s9354_s13, %s8243_s19  ;;  %p8248_p3 = scmp.lt.s32.totalorder %s9354_s13, %s9485_s3 }
 0x7ad   : > { %p8249_p9 = scmp.lt.s32.totalorder %s8247_s18, %s8243_s19 }
 0x7ae   : > { %p8245_p2 = pnand %p8244_p0, %p9486_p11 }
 0x7af   : > { %p8250_p5 = por %p8249_p9, %p8248_p3 }
 0x7b0   : > { %p8246_p7 = pneg %p8245_p2 }
 0x7b2   : > { %p8251_p1 = pnand %p8250_p5, %p8246_p7 }
 0x7b4   : > { %8254 = shalt.err (!%p8251_p1)
}
 0x7b5   : > { %7084 = dma.vmem_to_hbm [thread:$0]  (%p9486_p11), %s6105_s5, 512, %s9354_s13, %s6090_s22  }
 0x7b6 PF: > { %p7174_p10 = scmp.ge.s32.totalorder %s8325_s27, 2  ;;  %s6116_s7 = sand.u32 1, %s8313_s24  }
 0x7b7   : > { %p9487_p4 = scmp.ne.s32.totalorder %s9452_s14, 0  ;;  %s6117_s21 = scalar_lea.sflag [#allocation4], %s6116_s7 }
 0x7b9   : > { %p7140_p13 = pnand %p7174_p10, %p9487_p4 }
 0x7bb   : > { %p7141_p12 = pneg %p7140_p13 }
 0x7bd   : > { %8308 = dma.done.wait (%p7141_p12), %s6117_s21, 512  }
 0x7be   : > { %8310 = vsyncadd (%p7141_p12), %s6117_s21, 4294966784  ;;  %s9488_s15 = sld [smem:[#allocation41_spill]]  ;;  %p38_p8 = scmp.ge.s32.totalorder %s8556_s17, 11  }
 0x7bf   : > { %s9489_s24 = smov %s8317_s25  ;;  %s9490_s25 = smov %s8321_s26 }
 0x7c0   : > { %s9492_s27 = smov %s8556_s17  ;;  %40 = sbr.rel (!%p38_p8) target bundleno = 27 (0x1b), region = 205 }
 0x7c4   : > { %s9491_s26 = smov %s9488_s15 }
 0x7c5   :  { %6122 = vsyncpa [#allocation3], 1 }
 0x7c6   :  { %6124 = vsyncpa [#allocation3 + $0x1], 1 }
 0x7c7   :  { %6125 = vsyncpa [#allocation6], 1 }
 0x7c8   :  { %6126 = vsyncpa [#allocation9], 1 }
 0x7c9   :  { %6127 = vsyncpa [#allocation12], 1 }
 0x7ca   :  { %6128 = vsyncpa [#allocation15], 1 }
 0x7cb   :  { %6129 = vsyncpa [#allocation18], 1 }
 0x7cc   :  { %6130 = vsyncpa [#allocation21], 1 }
 0x7cd   :  { %6131 = vsyncpa [#allocation24], 1 }
 0x7ce   :  { %6132 = vsyncpa [#allocation27], 1 }
 0x7cf   :  { %6134 = vsyncpa [#allocation27 + $0x1], 1 }
 0x7d0   :  { %6135 = vsyncpa [#allocation4], 1 }
 0x7d1   :  { %6137 = vsyncpa [#allocation4 + $0x1], 1 }

</bundles_post_ra>
